<compile_context>
chip_gen: v7x
topology: tpu7x:2x2x1
jax: 0.10.0
libtpu: 0.0.40
codegen_flags: <defaults>
</compile_context>

<pallas_src>
import functools
import math

import jax
import jax.numpy as jnp
from jax import lax
from jax.experimental import pallas as pl
from jax.experimental.pallas import tpu as pltpu


def _mha_kernel(q_ref, k_ref, v_ref,
                wq_ref, bq_ref, wk_ref, bk_ref, wv_ref, bv_ref,
                wd_ref, bd_ref, o_ref,
                *, n_heads, head_dim, tb, sq, sk, mask, batched_heads):
    atten_dim = n_heads * head_dim
    scale = 1.0 / math.sqrt(float(head_dim))

    # Fused full-width Q/K/V projections: one MXU matmul each (bf16 x bf16,
    # f32 accumulation).  Activations already arrive in bf16 from the wrapper.
    qp = jnp.dot(q_ref[...], wq_ref[...],
                 preferred_element_type=jnp.float32) + bq_ref[...]
    kp = jnp.dot(k_ref[...], wk_ref[...],
                 preferred_element_type=jnp.float32) + bk_ref[...]
    vp = jnp.dot(v_ref[...], wv_ref[...],
                 preferred_element_type=jnp.float32) + bv_ref[...]

    if mask:
        # Built once in f32 (finite -1e30); shared by every head.
        row = lax.broadcasted_iota(jnp.int32, (sq, sk), 0)
        col = lax.broadcasted_iota(jnp.int32, (sq, sk), 1)
        neg = jnp.where(col <= row, 0.0, -1e30).astype(jnp.float32)

    if batched_heads:
        # All heads in one batched matmul pair: no per-head lane slices, no
        # lane-axis concatenate, bounded live ranges (single cast per tensor).
        qh = qp.reshape(tb, sq, n_heads, head_dim).astype(jnp.bfloat16)
        kh = kp.reshape(tb, sk, n_heads, head_dim).astype(jnp.bfloat16)
        vh = vp.reshape(tb, sk, n_heads, head_dim).astype(jnp.bfloat16)

        logits = jnp.einsum('bqhd,bkhd->bhqk', qh, kh,
                            preferred_element_type=jnp.float32) * scale
        if mask:
            logits = logits + neg                 # one broadcast over (tb, h)
        logits = logits - jnp.max(logits, axis=-1, keepdims=True)
        p = jnp.exp(logits)
        inv = pl.reciprocal(jnp.sum(p, axis=-1, keepdims=True))   # exact EUP rcp
        attn = (p * inv).astype(jnp.bfloat16)
        ctx = jnp.einsum('bhqk,bkhd->bqhd', attn, vh,
                         preferred_element_type=jnp.float32)
        ctx2 = ctx.reshape(tb * sq, atten_dim).astype(jnp.bfloat16)
    else:
        # Fallback path: static loop over heads (only used if the batched
        # formulation fails to lower on the installed Mosaic).
        qp3 = qp.reshape(tb, sq, atten_dim).astype(jnp.bfloat16)
        kp3 = kp.reshape(tb, sk, atten_dim).astype(jnp.bfloat16)
        vp3 = vp.reshape(tb, sk, atten_dim).astype(jnp.bfloat16)
        if mask:
            mask_add = jnp.broadcast_to(neg, (tb, sq, sk))   # hoisted broadcast
        ctx_heads = []
        for h in range(n_heads):
            lo = h * head_dim
            hi = lo + head_dim
            qh = qp3[:, :, lo:hi]
            kh = kp3[:, :, lo:hi]
            vh = vp3[:, :, lo:hi]
            logits = jnp.einsum('bqd,bkd->bqk', qh, kh,
                                preferred_element_type=jnp.float32) * scale
            if mask:
                logits = logits + mask_add
            logits = logits - jnp.max(logits, axis=-1, keepdims=True)
            p = jnp.exp(logits)
            inv = pl.reciprocal(jnp.sum(p, axis=-1, keepdims=True))
            ctx_heads.append(
                jnp.einsum('bqk,bkd->bqd', (p * inv).astype(jnp.bfloat16), vh,
                           preferred_element_type=jnp.float32))
        ctx2 = jnp.concatenate(ctx_heads, axis=-1).reshape(
            tb * sq, atten_dim).astype(jnp.bfloat16)

    # Single full-width dense matmul over the concatenated heads.
    out = jnp.dot(ctx2, wd_ref[...],
                  preferred_element_type=jnp.float32) + bd_ref[...]
    o_ref[...] = out.astype(o_ref.dtype)


def _tpu_vmem_bytes():
    try:
        return int(pltpu.get_tpu_info().vmem_capacity_bytes)
    except Exception:
        return 64 * 2**20          # conservative (v7x-sized) default


def _choose_tb(bl, sq, sk, big_vmem):
    """Groups per grid step; keeps (tile rows) a multiple of 8."""
    def legal(d):
        return ((d * sq) % 8 == 0 and (d * sk) % 8 == 0) or d == bl

    divs = [d for d in range(1, bl + 1) if bl % d == 0 and legal(d)]
    if not divs:
        return bl
    target_rows = 512 if big_vmem else 256
    max_groups = max(1, target_rows // max(sq, 1))
    cands = [d for d in divs if d <= max_groups] or [min(divs)]
    tb = max(cands)
    if not big_vmem:
        # 64-MiB megacore parts (v7x): prefer an even step count so both
        # TensorCores stay busy; 128-MiB single-TC parts just take max tile.
        even = [d for d in cands if (bl // d) % 2 == 0]
        multi = [d for d in cands if bl // d >= 2]
        if even:
            tb = max(even)
        elif multi:
            tb = max(multi)
    return tb


def _vmem_limit(tb, sq, sk, q_dim, k_dim, v_dim, atten, v_out, n_heads,
                out_isize, single_buf_weights, vmem_cap):
    """Explicit VMEM inventory (+50% slack) instead of a flat multiplier."""
    bf, f4 = 2, 4
    rq, rk = tb * sq, tb * sk
    io = (2 * (rq * q_dim + rk * k_dim + rk * v_dim) * bf     # dbl-buf bf16 in
          + 2 * rq * v_out * out_isize)                       # dbl-buf output
    wmult = 1 if single_buf_weights else 2
    wbytes = wmult * (((q_dim + k_dim + v_dim) * atten + atten * v_out) * bf
                      + (3 * atten + v_out) * f4)
    inter = ((rq + 2 * rk) * atten * (f4 + bf)     # qp/kp/vp f32 + bf16 copies
             + 2 * tb * n_heads * sq * sk * f4     # logits + probs (f32)
             + rq * atten * (f4 + bf)              # context f32 + bf16 copy
             + rq * v_out * f4)                    # dense accumulator
    est = int(1.5 * (io + wbytes + inter))
    return int(min(int(0.9 * vmem_cap), max(32 * 2**20, est)))


def multi_head_attention(query, key, value, params, *, n_heads, mask=False):
    """query: (B, L, Sq, q_dim); key: (B, L, Sk, k_dim); value: (B, L, Sk, v_dim)."""
    wq, bq, wk, bk, wv, bv, wd, bd = params
    B, L, Sq, q_dim = query.shape
    Sk, k_dim = key.shape[2], key.shape[3]
    v_dim = value.shape[3]
    atten_dim = wq.shape[1]
    assert atten_dim % n_heads == 0
    head_dim = atten_dim // n_heads
    BL = B * L
    out_dtype = query.dtype
    out_isize = jnp.dtype(out_dtype).itemsize

    # bf16 activations at the kernel interface: halves streamed HBM bytes and
    # the input double-buffer footprint (matmuls already run in bf16).
    qf = query.reshape(BL * Sq, q_dim).astype(jnp.bfloat16)
    kf = key.reshape(BL * Sk, k_dim).astype(jnp.bfloat16)
    vf = value.reshape(BL * Sk, v_dim).astype(jnp.bfloat16)

    wq_b = wq.astype(jnp.bfloat16)
    wk_b = wk.astype(jnp.bfloat16)
    wv_b = wv.astype(jnp.bfloat16)
    bq2 = bq.reshape(1, atten_dim).astype(jnp.float32)
    bk2 = bk.reshape(1, atten_dim).astype(jnp.float32)
    bv2 = bv.reshape(1, atten_dim).astype(jnp.float32)

    # Lane padding of the dense output only when its overhead is small
    # (<= 25%); otherwise emit (rows, v_dim) directly (full-extent last dim).
    v_ceil = ((v_dim + 127) // 128) * 128
    pad_ok = (v_dim % 128 == 0) or (v_ceil * 4 <= v_dim * 5)
    v_out = v_ceil if pad_ok else v_dim
    if v_out == v_dim:
        wd_p = wd.astype(jnp.bfloat16)
        bd_p = bd.reshape(1, v_dim).astype(jnp.float32)
    else:
        wd_p = jnp.zeros((atten_dim, v_out), jnp.bfloat16).at[:, :v_dim].set(
            wd.astype(jnp.bfloat16))
        bd_p = jnp.zeros((1, v_out), jnp.float32).at[:, :v_dim].set(
            bd.astype(jnp.float32))

    vmem_cap = _tpu_vmem_bytes()
    big_vmem = vmem_cap >= 100 * 2**20     # v5e/v6e (128 MiB) vs v7x (64 MiB)
    TB = _choose_tb(BL, Sq, Sk, big_vmem)
    grid = (BL // TB,)

    def build(batched_heads, single_buf_weights):
        kernel = functools.partial(
            _mha_kernel, n_heads=n_heads, head_dim=head_dim, tb=TB,
            sq=Sq, sk=Sk, mask=mask, batched_heads=batched_heads)

        def wspec(shape):
            if single_buf_weights:
                # Grid-invariant blocks: single-buffer to reclaim VMEM.
                return pl.BlockSpec(shape, lambda i: (0,) * len(shape),
                                    pipeline_mode=pl.Buffered(1))
            return pl.BlockSpec(shape, lambda i: (0,) * len(shape))

        vmem_limit = _vmem_limit(TB, Sq, Sk, q_dim, k_dim, v_dim, atten_dim,
                                 v_out, n_heads, out_isize,
                                 single_buf_weights, vmem_cap)
        return pl.pallas_call(
            kernel,
            out_shape=jax.ShapeDtypeStruct((BL * Sq, v_out), out_dtype),
            grid=grid,
            in_specs=[
                pl.BlockSpec((TB * Sq, q_dim), lambda i: (i, 0)),
                pl.BlockSpec((TB * Sk, k_dim), lambda i: (i, 0)),
                pl.BlockSpec((TB * Sk, v_dim), lambda i: (i, 0)),
                wspec((q_dim, atten_dim)),
                wspec((1, atten_dim)),
                wspec((k_dim, atten_dim)),
                wspec((1, atten_dim)),
                wspec((v_dim, atten_dim)),
                wspec((1, atten_dim)),
                wspec((atten_dim, v_out)),
                wspec((1, v_out)),
            ],
            out_specs=pl.BlockSpec((TB * Sq, v_out), lambda i: (i, 0)),
            compiler_params=pltpu.CompilerParams(
                dimension_semantics=("parallel",),
                vmem_limit_bytes=vmem_limit),
        )

    args = (qf, kf, vf, wq_b, bq2, wk_b, bk2, wv_b, bv2, wd_p, bd_p)
    out = None
    last_err = None
    # Prefer (batched heads, single-buffered weights); fall back only if the
    # installed Mosaic rejects a feature (pipeline_mode / batched dot_general).
    for batched_heads in (True, False):
        for single_buf in (True, False):
            try:
                out = jax.block_until_ready(build(batched_heads, single_buf)(*args))
            except Exception as e:          # lowering/API fallback only
                last_err = e
                out = None
                continue
            break
        if out is not None:
            break
    if out is None:
        raise last_err

    if v_out != v_dim:
        out = out[:, :v_dim]
    return out.reshape(B, L, Sq, v_dim)


def reference(query, key, value, params, *, n_heads, mask=False):
    """Pure-JAX (f32) mirror of the PyTorch forward pass, for correctness."""
    wq, bq, wk, bk, wv, bv, wd, bd = params
    B, L, Sq, _ = query.shape
    Sk = key.shape[2]
    atten_dim = wq.shape[1]
    head_dim = atten_dim // n_heads
    v_dim = wd.shape[1]
    BL = B * L

    q = query.reshape(BL, Sq, -1) @ wq + bq
    k = key.reshape(BL, Sk, -1) @ wk + bk
    v = value.reshape(BL, Sk, -1) @ wv + bv

    def split(x, s):
        return x.reshape(BL, s, n_heads, head_dim).transpose(0, 2, 1, 3)

    qh, kh, vh = split(q, Sq), split(k, Sk), split(v, Sk)
    logits = (qh @ kh.transpose(0, 1, 3, 2)) / jnp.sqrt(jnp.float32(head_dim))
    if mask:
        tri = jnp.tril(jnp.ones((Sq, Sk), jnp.float32))
        logits = jnp.where(tri == 0, -jnp.inf, logits)
    w = jax.nn.softmax(logits, axis=-1)
    ctx = (w @ vh).transpose(0, 2, 1, 3).reshape(BL, Sq, atten_dim)
    out = ctx @ wd + bd
    return out.reshape(B, L, Sq, v_dim)


def init_params(key, q_dim, k_dim, v_dim, atten_dim):
    ks = jax.random.split(key, 8)
    scale = 0.1
    wq = scale * jax.random.normal(ks[0], (q_dim, atten_dim), jnp.float32)
    bq = scale * jax.random.normal(ks[1], (atten_dim,), jnp.float32)
    wk = scale * jax.random.normal(ks[2], (k_dim, atten_dim), jnp.float32)
    bk = scale * jax.random.normal(ks[3], (atten_dim,), jnp.float32)
    wv = scale * jax.random.normal(ks[4], (v_dim, atten_dim), jnp.float32)
    bv = scale * jax.random.normal(ks[5], (atten_dim,), jnp.float32)
    wd = scale * jax.random.normal(ks[6], (atten_dim, v_dim), jnp.float32)
    bd = scale * jax.random.normal(ks[7], (v_dim,), jnp.float32)
    return (wq, bq, wk, bk, wv, bv, wd, bd)


if __name__ == "__main__":
    # Small deterministic example consistent with the module's forward:
    # query (B, L, Sq, q_dim), key/value (B, L, Sk, {k,v}_dim).
    B, L, Sq, Sk = 2, 2, 8, 8
    q_dim = k_dim = v_dim = 16
    atten_dim, n_heads = 64, 8   # head_dim = 8

    root = jax.random.PRNGKey(0)
    kq, kk, kv, kp = jax.random.split(root, 4)
    q_in = jax.random.normal(kq, (B, L, Sq, q_dim), jnp.float32)
    k_in = jax.random.normal(kk, (B, L, Sk, k_dim), jnp.float32)
    v_in = jax.random.normal(kv, (B, L, Sk, v_dim), jnp.float32)
    params = init_params(kp, q_dim, k_dim, v_dim, atten_dim)

    for use_mask in (False, True):
        out = multi_head_attention(q_in, k_in, v_in, params,
                                   n_heads=n_heads, mask=use_mask)
        out = jax.block_until_ready(out)
        ref = reference(q_in, k_in, v_in, params, n_heads=n_heads, mask=use_mask)
        assert out.shape == (B, L, Sq, v_dim), out.shape
        # bf16 MXU operands with f32 accumulation -> small numerical delta.
        err = float(jnp.max(jnp.abs(out - ref)))
        assert err < 3e-2, (use_mask, err)

    print("KERNEL_OK")
</pallas_src>

<mosaic_0001>
module attributes {stable_mosaic.version = 11 : i64} {
  func.func @_mha_kernel(%arg0: i32, %arg1: memref<16x16xbf16, #tpu.memory_space<vmem>>, %arg2: memref<16x16xbf16, #tpu.memory_space<vmem>>, %arg3: memref<16x16xbf16, #tpu.memory_space<vmem>>, %arg4: memref<16x64xbf16, #tpu.memory_space<vmem>>, %arg5: memref<1x64xf32, #tpu.memory_space<vmem>>, %arg6: memref<16x64xbf16, #tpu.memory_space<vmem>>, %arg7: memref<1x64xf32, #tpu.memory_space<vmem>>, %arg8: memref<16x64xbf16, #tpu.memory_space<vmem>>, %arg9: memref<1x64xf32, #tpu.memory_space<vmem>>, %arg10: memref<64x16xbf16, #tpu.memory_space<vmem>>, %arg11: memref<1x16xf32, #tpu.memory_space<vmem>>, %arg12: memref<16x16xf32, #tpu.memory_space<vmem>>) attributes {dimension_semantics = [#tpu.dimension_semantics<parallel>], iteration_bounds = array<i64: 2>, scalar_prefetch = 0 : i64, scratch_operands = 0 : i64, tpu.core_type = #tpu.core_type<tc>, window_params = [{transform_indices = @transform_0, window_bounds = array<i64: 16, 16>}, {transform_indices = @transform_1, window_bounds = array<i64: 16, 16>}, {transform_indices = @transform_2, window_bounds = array<i64: 16, 16>}, {pipeline_mode = #tpu.pipeline_mode<synchronous>, transform_indices = @transform_3, window_bounds = array<i64: 16, 64>}, {pipeline_mode = #tpu.pipeline_mode<synchronous>, transform_indices = @transform_4, window_bounds = array<i64: 1, 64>}, {pipeline_mode = #tpu.pipeline_mode<synchronous>, transform_indices = @transform_5, window_bounds = array<i64: 16, 64>}, {pipeline_mode = #tpu.pipeline_mode<synchronous>, transform_indices = @transform_6, window_bounds = array<i64: 1, 64>}, {pipeline_mode = #tpu.pipeline_mode<synchronous>, transform_indices = @transform_7, window_bounds = array<i64: 16, 64>}, {pipeline_mode = #tpu.pipeline_mode<synchronous>, transform_indices = @transform_8, window_bounds = array<i64: 1, 64>}, {pipeline_mode = #tpu.pipeline_mode<synchronous>, transform_indices = @transform_9, window_bounds = array<i64: 64, 16>}, {pipeline_mode = #tpu.pipeline_mode<synchronous>, transform_indices = @transform_10, window_bounds = array<i64: 1, 16>}, {transform_indices = @transform_11, window_bounds = array<i64: 16, 16>}]} {
    %c0 = arith.constant 0 : index
    %c0_0 = arith.constant 0 : index
    %0 = vector.load %arg1[%c0, %c0_0] : memref<16x16xbf16, #tpu.memory_space<vmem>>, vector<16x16xbf16>
    %c0_1 = arith.constant 0 : index
    %c0_2 = arith.constant 0 : index
    %1 = vector.load %arg4[%c0_1, %c0_2] : memref<16x64xbf16, #tpu.memory_space<vmem>>, vector<16x64xbf16>
    %cst = arith.constant dense<0.000000e+00> : vector<16x64xf32>
    %2 = tpu.matmul %0, %1, %cst {dimension_numbers = #tpu.dot_dimension_numbers<[1], [0], [0], [1], [0, 0, 1, 1], [], []>} : vector<16x16xbf16>, vector<16x64xbf16>, vector<16x64xf32> -> vector<16x64xf32>
    %c0_3 = arith.constant 0 : index
    %c0_4 = arith.constant 0 : index
    %3 = vector.load %arg5[%c0_3, %c0_4] : memref<1x64xf32, #tpu.memory_space<vmem>>, vector<1x64xf32>
    %4 = vector.broadcast %3 : vector<1x64xf32> to vector<16x64xf32>
    %5 = arith.addf %2, %4 : vector<16x64xf32>
    %c0_5 = arith.constant 0 : index
    %c0_6 = arith.constant 0 : index
    %6 = vector.load %arg2[%c0_5, %c0_6] : memref<16x16xbf16, #tpu.memory_space<vmem>>, vector<16x16xbf16>
    %c0_7 = arith.constant 0 : index
    %c0_8 = arith.constant 0 : index
    %7 = vector.load %arg6[%c0_7, %c0_8] : memref<16x64xbf16, #tpu.memory_space<vmem>>, vector<16x64xbf16>
    %cst_9 = arith.constant dense<0.000000e+00> : vector<16x64xf32>
    %8 = tpu.matmul %6, %7, %cst_9 {dimension_numbers = #tpu.dot_dimension_numbers<[1], [0], [0], [1], [0, 0, 1, 1], [], []>} : vector<16x16xbf16>, vector<16x64xbf16>, vector<16x64xf32> -> vector<16x64xf32>
    %c0_10 = arith.constant 0 : index
    %c0_11 = arith.constant 0 : index
    %9 = vector.load %arg7[%c0_10, %c0_11] : memref<1x64xf32, #tpu.memory_space<vmem>>, vector<1x64xf32>
    %10 = vector.broadcast %9 : vector<1x64xf32> to vector<16x64xf32>
    %11 = arith.addf %8, %10 : vector<16x64xf32>
    %c0_12 = arith.constant 0 : index
    %c0_13 = arith.constant 0 : index
    %12 = vector.load %arg3[%c0_12, %c0_13] : memref<16x16xbf16, #tpu.memory_space<vmem>>, vector<16x16xbf16>
    %c0_14 = arith.constant 0 : index
    %c0_15 = arith.constant 0 : index
    %13 = vector.load %arg8[%c0_14, %c0_15] : memref<16x64xbf16, #tpu.memory_space<vmem>>, vector<16x64xbf16>
    %cst_16 = arith.constant dense<0.000000e+00> : vector<16x64xf32>
    %14 = tpu.matmul %12, %13, %cst_16 {dimension_numbers = #tpu.dot_dimension_numbers<[1], [0], [0], [1], [0, 0, 1, 1], [], []>} : vector<16x16xbf16>, vector<16x64xbf16>, vector<16x64xf32> -> vector<16x64xf32>
    %c0_17 = arith.constant 0 : index
    %c0_18 = arith.constant 0 : index
    %15 = vector.load %arg9[%c0_17, %c0_18] : memref<1x64xf32, #tpu.memory_space<vmem>>, vector<1x64xf32>
    %16 = vector.broadcast %15 : vector<1x64xf32> to vector<16x64xf32>
    %17 = arith.addf %14, %16 : vector<16x64xf32>
    %18 = vector.shape_cast %5 : vector<16x64xf32> to vector<2x8x64xf32>
    %19 = arith.truncf %18 : vector<2x8x64xf32> to vector<2x8x64xbf16>
    %20 = vector.shape_cast %11 : vector<16x64xf32> to vector<2x8x64xf32>
    %21 = arith.truncf %20 : vector<2x8x64xf32> to vector<2x8x64xbf16>
    %22 = vector.shape_cast %17 : vector<16x64xf32> to vector<2x8x64xf32>
    %23 = arith.truncf %22 : vector<2x8x64xf32> to vector<2x8x64xbf16>
    %24 = vector.extract_strided_slice %19 {offsets = [0, 0, 0], sizes = [2, 8, 8], strides = [1, 1, 1]} : vector<2x8x64xbf16> to vector<2x8x8xbf16>
    %25 = vector.extract_strided_slice %21 {offsets = [0, 0, 0], sizes = [2, 8, 8], strides = [1, 1, 1]} : vector<2x8x64xbf16> to vector<2x8x8xbf16>
    %26 = vector.extract_strided_slice %23 {offsets = [0, 0, 0], sizes = [2, 8, 8], strides = [1, 1, 1]} : vector<2x8x64xbf16> to vector<2x8x8xbf16>
    "tpu.trace_start"() <{level = 10 : i32, message = "bqd,bkd->bqk"}> : () -> ()
    %cst_19 = arith.constant dense<0.000000e+00> : vector<2x8x8xf32>
    %27 = tpu.matmul %24, %25, %cst_19 {dimension_numbers = #tpu.dot_dimension_numbers<[2], [2], [1], [1], [0, 0, 0, 1, 1, 1], [0], [0]>} : vector<2x8x8xbf16>, vector<2x8x8xbf16>, vector<2x8x8xf32> -> vector<2x8x8xf32>
    "tpu.trace_stop"() : () -> ()
    %cst_20 = arith.constant 0.353553385 : f32
    %28 = vector.broadcast %cst_20 : f32 to vector<2x8x8xf32>
    %29 = arith.mulf %27, %28 : vector<2x8x8xf32>
    %cst_21 = arith.constant dense<0xFF800000> : vector<2x8xf32>
    %30 = vector.multi_reduction <maximumf>, %29, %cst_21 [2] : vector<2x8x8xf32> to vector<2x8xf32>
    %31 = vector.shape_cast %30 : vector<2x8xf32> to vector<2x8x1xf32>
    %32 = vector.broadcast %31 : vector<2x8x1xf32> to vector<2x8x8xf32>
    %33 = arith.subf %29, %32 : vector<2x8x8xf32>
    %34 = math.exp %33 : vector<2x8x8xf32>
    %cst_22 = arith.constant dense<0.000000e+00> : vector<2x8xf32>
    %35 = vector.multi_reduction <add>, %34, %cst_22 [2] : vector<2x8x8xf32> to vector<2x8xf32>
    %36 = vector.shape_cast %35 : vector<2x8xf32> to vector<2x8x1xf32>
    %37 = tpu.reciprocal %36 : vector<2x8x1xf32> -> vector<2x8x1xf32>
    %38 = vector.broadcast %37 : vector<2x8x1xf32> to vector<2x8x8xf32>
    %39 = arith.mulf %34, %38 : vector<2x8x8xf32>
    %40 = arith.truncf %39 : vector<2x8x8xf32> to vector<2x8x8xbf16>
    "tpu.trace_start"() <{level = 10 : i32, message = "bqk,bkd->bqd"}> : () -> ()
    %cst_23 = arith.constant dense<0.000000e+00> : vector<2x8x8xf32>
    %41 = tpu.matmul %40, %26, %cst_23 {dimension_numbers = #tpu.dot_dimension_numbers<[2], [1], [1], [2], [0, 0, 0, 1, 1, 2], [0], [0]>} : vector<2x8x8xbf16>, vector<2x8x8xbf16>, vector<2x8x8xf32> -> vector<2x8x8xf32>
    "tpu.trace_stop"() : () -> ()
    %42 = vector.extract_strided_slice %19 {offsets = [0, 0, 8], sizes = [2, 8, 8], strides = [1, 1, 1]} : vector<2x8x64xbf16> to vector<2x8x8xbf16>
    %43 = vector.extract_strided_slice %21 {offsets = [0, 0, 8], sizes = [2, 8, 8], strides = [1, 1, 1]} : vector<2x8x64xbf16> to vector<2x8x8xbf16>
    %44 = vector.extract_strided_slice %23 {offsets = [0, 0, 8], sizes = [2, 8, 8], strides = [1, 1, 1]} : vector<2x8x64xbf16> to vector<2x8x8xbf16>
    "tpu.trace_start"() <{level = 10 : i32, message = "bqd,bkd->bqk"}> : () -> ()
    %cst_24 = arith.constant dense<0.000000e+00> : vector<2x8x8xf32>
    %45 = tpu.matmul %42, %43, %cst_24 {dimension_numbers = #tpu.dot_dimension_numbers<[2], [2], [1], [1], [0, 0, 0, 1, 1, 1], [0], [0]>} : vector<2x8x8xbf16>, vector<2x8x8xbf16>, vector<2x8x8xf32> -> vector<2x8x8xf32>
    "tpu.trace_stop"() : () -> ()
    %cst_25 = arith.constant 0.353553385 : f32
    %46 = vector.broadcast %cst_25 : f32 to vector<2x8x8xf32>
    %47 = arith.mulf %45, %46 : vector<2x8x8xf32>
    %cst_26 = arith.constant dense<0xFF800000> : vector<2x8xf32>
    %48 = vector.multi_reduction <maximumf>, %47, %cst_26 [2] : vector<2x8x8xf32> to vector<2x8xf32>
    %49 = vector.shape_cast %48 : vector<2x8xf32> to vector<2x8x1xf32>
    %50 = vector.broadcast %49 : vector<2x8x1xf32> to vector<2x8x8xf32>
    %51 = arith.subf %47, %50 : vector<2x8x8xf32>
    %52 = math.exp %51 : vector<2x8x8xf32>
    %cst_27 = arith.constant dense<0.000000e+00> : vector<2x8xf32>
    %53 = vector.multi_reduction <add>, %52, %cst_27 [2] : vector<2x8x8xf32> to vector<2x8xf32>
    %54 = vector.shape_cast %53 : vector<2x8xf32> to vector<2x8x1xf32>
    %55 = tpu.reciprocal %54 : vector<2x8x1xf32> -> vector<2x8x1xf32>
    %56 = vector.broadcast %55 : vector<2x8x1xf32> to vector<2x8x8xf32>
    %57 = arith.mulf %52, %56 : vector<2x8x8xf32>
    %58 = arith.truncf %57 : vector<2x8x8xf32> to vector<2x8x8xbf16>
    "tpu.trace_start"() <{level = 10 : i32, message = "bqk,bkd->bqd"}> : () -> ()
    %cst_28 = arith.constant dense<0.000000e+00> : vector<2x8x8xf32>
    %59 = tpu.matmul %58, %44, %cst_28 {dimension_numbers = #tpu.dot_dimension_numbers<[2], [1], [1], [2], [0, 0, 0, 1, 1, 2], [0], [0]>} : vector<2x8x8xbf16>, vector<2x8x8xbf16>, vector<2x8x8xf32> -> vector<2x8x8xf32>
    "tpu.trace_stop"() : () -> ()
    %60 = vector.extract_strided_slice %19 {offsets = [0, 0, 16], sizes = [2, 8, 8], strides = [1, 1, 1]} : vector<2x8x64xbf16> to vector<2x8x8xbf16>
    %61 = vector.extract_strided_slice %21 {offsets = [0, 0, 16], sizes = [2, 8, 8], strides = [1, 1, 1]} : vector<2x8x64xbf16> to vector<2x8x8xbf16>
    %62 = vector.extract_strided_slice %23 {offsets = [0, 0, 16], sizes = [2, 8, 8], strides = [1, 1, 1]} : vector<2x8x64xbf16> to vector<2x8x8xbf16>
    "tpu.trace_start"() <{level = 10 : i32, message = "bqd,bkd->bqk"}> : () -> ()
    %cst_29 = arith.constant dense<0.000000e+00> : vector<2x8x8xf32>
    %63 = tpu.matmul %60, %61, %cst_29 {dimension_numbers = #tpu.dot_dimension_numbers<[2], [2], [1], [1], [0, 0, 0, 1, 1, 1], [0], [0]>} : vector<2x8x8xbf16>, vector<2x8x8xbf16>, vector<2x8x8xf32> -> vector<2x8x8xf32>
    "tpu.trace_stop"() : () -> ()
    %cst_30 = arith.constant 0.353553385 : f32
    %64 = vector.broadcast %cst_30 : f32 to vector<2x8x8xf32>
    %65 = arith.mulf %63, %64 : vector<2x8x8xf32>
    %cst_31 = arith.constant dense<0xFF800000> : vector<2x8xf32>
    %66 = vector.multi_reduction <maximumf>, %65, %cst_31 [2] : vector<2x8x8xf32> to vector<2x8xf32>
    %67 = vector.shape_cast %66 : vector<2x8xf32> to vector<2x8x1xf32>
    %68 = vector.broadcast %67 : vector<2x8x1xf32> to vector<2x8x8xf32>
    %69 = arith.subf %65, %68 : vector<2x8x8xf32>
    %70 = math.exp %69 : vector<2x8x8xf32>
    %cst_32 = arith.constant dense<0.000000e+00> : vector<2x8xf32>
    %71 = vector.multi_reduction <add>, %70, %cst_32 [2] : vector<2x8x8xf32> to vector<2x8xf32>
    %72 = vector.shape_cast %71 : vector<2x8xf32> to vector<2x8x1xf32>
    %73 = tpu.reciprocal %72 : vector<2x8x1xf32> -> vector<2x8x1xf32>
    %74 = vector.broadcast %73 : vector<2x8x1xf32> to vector<2x8x8xf32>
    %75 = arith.mulf %70, %74 : vector<2x8x8xf32>
    %76 = arith.truncf %75 : vector<2x8x8xf32> to vector<2x8x8xbf16>
    "tpu.trace_start"() <{level = 10 : i32, message = "bqk,bkd->bqd"}> : () -> ()
    %cst_33 = arith.constant dense<0.000000e+00> : vector<2x8x8xf32>
    %77 = tpu.matmul %76, %62, %cst_33 {dimension_numbers = #tpu.dot_dimension_numbers<[2], [1], [1], [2], [0, 0, 0, 1, 1, 2], [0], [0]>} : vector<2x8x8xbf16>, vector<2x8x8xbf16>, vector<2x8x8xf32> -> vector<2x8x8xf32>
    "tpu.trace_stop"() : () -> ()
    %78 = vector.extract_strided_slice %19 {offsets = [0, 0, 24], sizes = [2, 8, 8], strides = [1, 1, 1]} : vector<2x8x64xbf16> to vector<2x8x8xbf16>
    %79 = vector.extract_strided_slice %21 {offsets = [0, 0, 24], sizes = [2, 8, 8], strides = [1, 1, 1]} : vector<2x8x64xbf16> to vector<2x8x8xbf16>
    %80 = vector.extract_strided_slice %23 {offsets = [0, 0, 24], sizes = [2, 8, 8], strides = [1, 1, 1]} : vector<2x8x64xbf16> to vector<2x8x8xbf16>
    "tpu.trace_start"() <{level = 10 : i32, message = "bqd,bkd->bqk"}> : () -> ()
    %cst_34 = arith.constant dense<0.000000e+00> : vector<2x8x8xf32>
    %81 = tpu.matmul %78, %79, %cst_34 {dimension_numbers = #tpu.dot_dimension_numbers<[2], [2], [1], [1], [0, 0, 0, 1, 1, 1], [0], [0]>} : vector<2x8x8xbf16>, vector<2x8x8xbf16>, vector<2x8x8xf32> -> vector<2x8x8xf32>
    "tpu.trace_stop"() : () -> ()
    %cst_35 = arith.constant 0.353553385 : f32
    %82 = vector.broadcast %cst_35 : f32 to vector<2x8x8xf32>
    %83 = arith.mulf %81, %82 : vector<2x8x8xf32>
    %cst_36 = arith.constant dense<0xFF800000> : vector<2x8xf32>
    %84 = vector.multi_reduction <maximumf>, %83, %cst_36 [2] : vector<2x8x8xf32> to vector<2x8xf32>
    %85 = vector.shape_cast %84 : vector<2x8xf32> to vector<2x8x1xf32>
    %86 = vector.broadcast %85 : vector<2x8x1xf32> to vector<2x8x8xf32>
    %87 = arith.subf %83, %86 : vector<2x8x8xf32>
    %88 = math.exp %87 : vector<2x8x8xf32>
    %cst_37 = arith.constant dense<0.000000e+00> : vector<2x8xf32>
    %89 = vector.multi_reduction <add>, %88, %cst_37 [2] : vector<2x8x8xf32> to vector<2x8xf32>
    %90 = vector.shape_cast %89 : vector<2x8xf32> to vector<2x8x1xf32>
    %91 = tpu.reciprocal %90 : vector<2x8x1xf32> -> vector<2x8x1xf32>
    %92 = vector.broadcast %91 : vector<2x8x1xf32> to vector<2x8x8xf32>
    %93 = arith.mulf %88, %92 : vector<2x8x8xf32>
    %94 = arith.truncf %93 : vector<2x8x8xf32> to vector<2x8x8xbf16>
    "tpu.trace_start"() <{level = 10 : i32, message = "bqk,bkd->bqd"}> : () -> ()
    %cst_38 = arith.constant dense<0.000000e+00> : vector<2x8x8xf32>
    %95 = tpu.matmul %94, %80, %cst_38 {dimension_numbers = #tpu.dot_dimension_numbers<[2], [1], [1], [2], [0, 0, 0, 1, 1, 2], [0], [0]>} : vector<2x8x8xbf16>, vector<2x8x8xbf16>, vector<2x8x8xf32> -> vector<2x8x8xf32>
    "tpu.trace_stop"() : () -> ()
    %96 = vector.extract_strided_slice %19 {offsets = [0, 0, 32], sizes = [2, 8, 8], strides = [1, 1, 1]} : vector<2x8x64xbf16> to vector<2x8x8xbf16>
    %97 = vector.extract_strided_slice %21 {offsets = [0, 0, 32], sizes = [2, 8, 8], strides = [1, 1, 1]} : vector<2x8x64xbf16> to vector<2x8x8xbf16>
    %98 = vector.extract_strided_slice %23 {offsets = [0, 0, 32], sizes = [2, 8, 8], strides = [1, 1, 1]} : vector<2x8x64xbf16> to vector<2x8x8xbf16>
    "tpu.trace_start"() <{level = 10 : i32, message = "bqd,bkd->bqk"}> : () -> ()
    %cst_39 = arith.constant dense<0.000000e+00> : vector<2x8x8xf32>
    %99 = tpu.matmul %96, %97, %cst_39 {dimension_numbers = #tpu.dot_dimension_numbers<[2], [2], [1], [1], [0, 0, 0, 1, 1, 1], [0], [0]>} : vector<2x8x8xbf16>, vector<2x8x8xbf16>, vector<2x8x8xf32> -> vector<2x8x8xf32>
    "tpu.trace_stop"() : () -> ()
    %cst_40 = arith.constant 0.353553385 : f32
    %100 = vector.broadcast %cst_40 : f32 to vector<2x8x8xf32>
    %101 = arith.mulf %99, %100 : vector<2x8x8xf32>
    %cst_41 = arith.constant dense<0xFF800000> : vector<2x8xf32>
    %102 = vector.multi_reduction <maximumf>, %101, %cst_41 [2] : vector<2x8x8xf32> to vector<2x8xf32>
    %103 = vector.shape_cast %102 : vector<2x8xf32> to vector<2x8x1xf32>
    %104 = vector.broadcast %103 : vector<2x8x1xf32> to vector<2x8x8xf32>
    %105 = arith.subf %101, %104 : vector<2x8x8xf32>
    %106 = math.exp %105 : vector<2x8x8xf32>
    %cst_42 = arith.constant dense<0.000000e+00> : vector<2x8xf32>
    %107 = vector.multi_reduction <add>, %106, %cst_42 [2] : vector<2x8x8xf32> to vector<2x8xf32>
    %108 = vector.shape_cast %107 : vector<2x8xf32> to vector<2x8x1xf32>
    %109 = tpu.reciprocal %108 : vector<2x8x1xf32> -> vector<2x8x1xf32>
    %110 = vector.broadcast %109 : vector<2x8x1xf32> to vector<2x8x8xf32>
    %111 = arith.mulf %106, %110 : vector<2x8x8xf32>
    %112 = arith.truncf %111 : vector<2x8x8xf32> to vector<2x8x8xbf16>
    "tpu.trace_start"() <{level = 10 : i32, message = "bqk,bkd->bqd"}> : () -> ()
    %cst_43 = arith.constant dense<0.000000e+00> : vector<2x8x8xf32>
    %113 = tpu.matmul %112, %98, %cst_43 {dimension_numbers = #tpu.dot_dimension_numbers<[2], [1], [1], [2], [0, 0, 0, 1, 1, 2], [0], [0]>} : vector<2x8x8xbf16>, vector<2x8x8xbf16>, vector<2x8x8xf32> -> vector<2x8x8xf32>
    "tpu.trace_stop"() : () -> ()
    %114 = vector.extract_strided_slice %19 {offsets = [0, 0, 40], sizes = [2, 8, 8], strides = [1, 1, 1]} : vector<2x8x64xbf16> to vector<2x8x8xbf16>
    %115 = vector.extract_strided_slice %21 {offsets = [0, 0, 40], sizes = [2, 8, 8], strides = [1, 1, 1]} : vector<2x8x64xbf16> to vector<2x8x8xbf16>
    %116 = vector.extract_strided_slice %23 {offsets = [0, 0, 40], sizes = [2, 8, 8], strides = [1, 1, 1]} : vector<2x8x64xbf16> to vector<2x8x8xbf16>
    "tpu.trace_start"() <{level = 10 : i32, message = "bqd,bkd->bqk"}> : () -> ()
    %cst_44 = arith.constant dense<0.000000e+00> : vector<2x8x8xf32>
    %117 = tpu.matmul %114, %115, %cst_44 {dimension_numbers = #tpu.dot_dimension_numbers<[2], [2], [1], [1], [0, 0, 0, 1, 1, 1], [0], [0]>} : vector<2x8x8xbf16>, vector<2x8x8xbf16>, vector<2x8x8xf32> -> vector<2x8x8xf32>
    "tpu.trace_stop"() : () -> ()
    %cst_45 = arith.constant 0.353553385 : f32
    %118 = vector.broadcast %cst_45 : f32 to vector<2x8x8xf32>
    %119 = arith.mulf %117, %118 : vector<2x8x8xf32>
    %cst_46 = arith.constant dense<0xFF800000> : vector<2x8xf32>
    %120 = vector.multi_reduction <maximumf>, %119, %cst_46 [2] : vector<2x8x8xf32> to vector<2x8xf32>
    %121 = vector.shape_cast %120 : vector<2x8xf32> to vector<2x8x1xf32>
    %122 = vector.broadcast %121 : vector<2x8x1xf32> to vector<2x8x8xf32>
    %123 = arith.subf %119, %122 : vector<2x8x8xf32>
    %124 = math.exp %123 : vector<2x8x8xf32>
    %cst_47 = arith.constant dense<0.000000e+00> : vector<2x8xf32>
    %125 = vector.multi_reduction <add>, %124, %cst_47 [2] : vector<2x8x8xf32> to vector<2x8xf32>
    %126 = vector.shape_cast %125 : vector<2x8xf32> to vector<2x8x1xf32>
    %127 = tpu.reciprocal %126 : vector<2x8x1xf32> -> vector<2x8x1xf32>
    %128 = vector.broadcast %127 : vector<2x8x1xf32> to vector<2x8x8xf32>
    %129 = arith.mulf %124, %128 : vector<2x8x8xf32>
    %130 = arith.truncf %129 : vector<2x8x8xf32> to vector<2x8x8xbf16>
    "tpu.trace_start"() <{level = 10 : i32, message = "bqk,bkd->bqd"}> : () -> ()
    %cst_48 = arith.constant dense<0.000000e+00> : vector<2x8x8xf32>
    %131 = tpu.matmul %130, %116, %cst_48 {dimension_numbers = #tpu.dot_dimension_numbers<[2], [1], [1], [2], [0, 0, 0, 1, 1, 2], [0], [0]>} : vector<2x8x8xbf16>, vector<2x8x8xbf16>, vector<2x8x8xf32> -> vector<2x8x8xf32>
    "tpu.trace_stop"() : () -> ()
    %132 = vector.extract_strided_slice %19 {offsets = [0, 0, 48], sizes = [2, 8, 8], strides = [1, 1, 1]} : vector<2x8x64xbf16> to vector<2x8x8xbf16>
    %133 = vector.extract_strided_slice %21 {offsets = [0, 0, 48], sizes = [2, 8, 8], strides = [1, 1, 1]} : vector<2x8x64xbf16> to vector<2x8x8xbf16>
    %134 = vector.extract_strided_slice %23 {offsets = [0, 0, 48], sizes = [2, 8, 8], strides = [1, 1, 1]} : vector<2x8x64xbf16> to vector<2x8x8xbf16>
    "tpu.trace_start"() <{level = 10 : i32, message = "bqd,bkd->bqk"}> : () -> ()
    %cst_49 = arith.constant dense<0.000000e+00> : vector<2x8x8xf32>
    %135 = tpu.matmul %132, %133, %cst_49 {dimension_numbers = #tpu.dot_dimension_numbers<[2], [2], [1], [1], [0, 0, 0, 1, 1, 1], [0], [0]>} : vector<2x8x8xbf16>, vector<2x8x8xbf16>, vector<2x8x8xf32> -> vector<2x8x8xf32>
    "tpu.trace_stop"() : () -> ()
    %cst_50 = arith.constant 0.353553385 : f32
    %136 = vector.broadcast %cst_50 : f32 to vector<2x8x8xf32>
    %137 = arith.mulf %135, %136 : vector<2x8x8xf32>
    %cst_51 = arith.constant dense<0xFF800000> : vector<2x8xf32>
    %138 = vector.multi_reduction <maximumf>, %137, %cst_51 [2] : vector<2x8x8xf32> to vector<2x8xf32>
    %139 = vector.shape_cast %138 : vector<2x8xf32> to vector<2x8x1xf32>
    %140 = vector.broadcast %139 : vector<2x8x1xf32> to vector<2x8x8xf32>
    %141 = arith.subf %137, %140 : vector<2x8x8xf32>
    %142 = math.exp %141 : vector<2x8x8xf32>
    %cst_52 = arith.constant dense<0.000000e+00> : vector<2x8xf32>
    %143 = vector.multi_reduction <add>, %142, %cst_52 [2] : vector<2x8x8xf32> to vector<2x8xf32>
    %144 = vector.shape_cast %143 : vector<2x8xf32> to vector<2x8x1xf32>
    %145 = tpu.reciprocal %144 : vector<2x8x1xf32> -> vector<2x8x1xf32>
    %146 = vector.broadcast %145 : vector<2x8x1xf32> to vector<2x8x8xf32>
    %147 = arith.mulf %142, %146 : vector<2x8x8xf32>
    %148 = arith.truncf %147 : vector<2x8x8xf32> to vector<2x8x8xbf16>
    "tpu.trace_start"() <{level = 10 : i32, message = "bqk,bkd->bqd"}> : () -> ()
    %cst_53 = arith.constant dense<0.000000e+00> : vector<2x8x8xf32>
    %149 = tpu.matmul %148, %134, %cst_53 {dimension_numbers = #tpu.dot_dimension_numbers<[2], [1], [1], [2], [0, 0, 0, 1, 1, 2], [0], [0]>} : vector<2x8x8xbf16>, vector<2x8x8xbf16>, vector<2x8x8xf32> -> vector<2x8x8xf32>
    "tpu.trace_stop"() : () -> ()
    %150 = vector.extract_strided_slice %19 {offsets = [0, 0, 56], sizes = [2, 8, 8], strides = [1, 1, 1]} : vector<2x8x64xbf16> to vector<2x8x8xbf16>
    %151 = vector.extract_strided_slice %21 {offsets = [0, 0, 56], sizes = [2, 8, 8], strides = [1, 1, 1]} : vector<2x8x64xbf16> to vector<2x8x8xbf16>
    %152 = vector.extract_strided_slice %23 {offsets = [0, 0, 56], sizes = [2, 8, 8], strides = [1, 1, 1]} : vector<2x8x64xbf16> to vector<2x8x8xbf16>
    "tpu.trace_start"() <{level = 10 : i32, message = "bqd,bkd->bqk"}> : () -> ()
    %cst_54 = arith.constant dense<0.000000e+00> : vector<2x8x8xf32>
    %153 = tpu.matmul %150, %151, %cst_54 {dimension_numbers = #tpu.dot_dimension_numbers<[2], [2], [1], [1], [0, 0, 0, 1, 1, 1], [0], [0]>} : vector<2x8x8xbf16>, vector<2x8x8xbf16>, vector<2x8x8xf32> -> vector<2x8x8xf32>
    "tpu.trace_stop"() : () -> ()
    %cst_55 = arith.constant 0.353553385 : f32
    %154 = vector.broadcast %cst_55 : f32 to vector<2x8x8xf32>
    %155 = arith.mulf %153, %154 : vector<2x8x8xf32>
    %cst_56 = arith.constant dense<0xFF800000> : vector<2x8xf32>
    %156 = vector.multi_reduction <maximumf>, %155, %cst_56 [2] : vector<2x8x8xf32> to vector<2x8xf32>
    %157 = vector.shape_cast %156 : vector<2x8xf32> to vector<2x8x1xf32>
    %158 = vector.broadcast %157 : vector<2x8x1xf32> to vector<2x8x8xf32>
    %159 = arith.subf %155, %158 : vector<2x8x8xf32>
    %160 = math.exp %159 : vector<2x8x8xf32>
    %cst_57 = arith.constant dense<0.000000e+00> : vector<2x8xf32>
    %161 = vector.multi_reduction <add>, %160, %cst_57 [2] : vector<2x8x8xf32> to vector<2x8xf32>
    %162 = vector.shape_cast %161 : vector<2x8xf32> to vector<2x8x1xf32>
    %163 = tpu.reciprocal %162 : vector<2x8x1xf32> -> vector<2x8x1xf32>
    %164 = vector.broadcast %163 : vector<2x8x1xf32> to vector<2x8x8xf32>
    %165 = arith.mulf %160, %164 : vector<2x8x8xf32>
    %166 = arith.truncf %165 : vector<2x8x8xf32> to vector<2x8x8xbf16>
    "tpu.trace_start"() <{level = 10 : i32, message = "bqk,bkd->bqd"}> : () -> ()
    %cst_58 = arith.constant dense<0.000000e+00> : vector<2x8x8xf32>
    %167 = tpu.matmul %166, %152, %cst_58 {dimension_numbers = #tpu.dot_dimension_numbers<[2], [1], [1], [2], [0, 0, 0, 1, 1, 2], [0], [0]>} : vector<2x8x8xbf16>, vector<2x8x8xbf16>, vector<2x8x8xf32> -> vector<2x8x8xf32>
    "tpu.trace_stop"() : () -> ()
    %168 = tpu.concatenate %41, %59, %77, %95, %113, %131, %149, %167 in 2 : vector<2x8x8xf32>, vector<2x8x8xf32>, vector<2x8x8xf32>, vector<2x8x8xf32>, vector<2x8x8xf32>, vector<2x8x8xf32>, vector<2x8x8xf32>, vector<2x8x8xf32> -> vector<2x8x64xf32>
    %169 = vector.shape_cast %168 : vector<2x8x64xf32> to vector<16x64xf32>
    %170 = arith.truncf %169 : vector<16x64xf32> to vector<16x64xbf16>
    %c0_59 = arith.constant 0 : index
    %c0_60 = arith.constant 0 : index
    %171 = vector.load %arg10[%c0_59, %c0_60] : memref<64x16xbf16, #tpu.memory_space<vmem>>, vector<64x16xbf16>
    %cst_61 = arith.constant dense<0.000000e+00> : vector<16x16xf32>
    %172 = tpu.matmul %170, %171, %cst_61 {dimension_numbers = #tpu.dot_dimension_numbers<[1], [0], [0], [1], [0, 0, 1, 1], [], []>} : vector<16x64xbf16>, vector<64x16xbf16>, vector<16x16xf32> -> vector<16x16xf32>
    %c0_62 = arith.constant 0 : index
    %c0_63 = arith.constant 0 : index
    %173 = vector.load %arg11[%c0_62, %c0_63] : memref<1x16xf32, #tpu.memory_space<vmem>>, vector<1x16xf32>
    %174 = vector.broadcast %173 : vector<1x16xf32> to vector<16x16xf32>
    %175 = arith.addf %172, %174 : vector<16x16xf32>
    %c0_64 = arith.constant 0 : index
    %c0_65 = arith.constant 0 : index
    %176 = vector.load %arg12[%c0_64, %c0_65] : memref<16x16xf32, #tpu.memory_space<vmem>>, vector<16x16xf32>
    tpu.vector_store %arg12[%c0_64, %c0_65], %175 {strides = array<i32>} : memref<16x16xf32, #tpu.memory_space<vmem>>, vector<16x16xf32>,
    return
  }
  func.func @transform_0(%arg0: i32) -> (i32, i32) {
    %c0_i32 = arith.constant 0 : i32
    %c0_i32_0 = arith.constant 0 : i32
    return %arg0, %c0_i32 : i32, i32
  }
  func.func @transform_1(%arg0: i32) -> (i32, i32) {
    %c0_i32 = arith.constant 0 : i32
    %c0_i32_0 = arith.constant 0 : i32
    return %arg0, %c0_i32 : i32, i32
  }
  func.func @transform_2(%arg0: i32) -> (i32, i32) {
    %c0_i32 = arith.constant 0 : i32
    %c0_i32_0 = arith.constant 0 : i32
    return %arg0, %c0_i32 : i32, i32
  }
  func.func @transform_3(%arg0: i32) -> (i32, i32) {
    %c0_i32 = arith.constant 0 : i32
    %c0_i32_0 = arith.constant 0 : i32
    %c0_i32_1 = arith.constant 0 : i32
    return %c0_i32, %c0_i32_0 : i32, i32
  }
  func.func @transform_4(%arg0: i32) -> (i32, i32) {
    %c0_i32 = arith.constant 0 : i32
    %c0_i32_0 = arith.constant 0 : i32
    %c0_i32_1 = arith.constant 0 : i32
    return %c0_i32, %c0_i32_0 : i32, i32
  }
  func.func @transform_5(%arg0: i32) -> (i32, i32) {
    %c0_i32 = arith.constant 0 : i32
    %c0_i32_0 = arith.constant 0 : i32
    %c0_i32_1 = arith.constant 0 : i32
    return %c0_i32, %c0_i32_0 : i32, i32
  }
  func.func @transform_6(%arg0: i32) -> (i32, i32) {
    %c0_i32 = arith.constant 0 : i32
    %c0_i32_0 = arith.constant 0 : i32
    %c0_i32_1 = arith.constant 0 : i32
    return %c0_i32, %c0_i32_0 : i32, i32
  }
  func.func @transform_7(%arg0: i32) -> (i32, i32) {
    %c0_i32 = arith.constant 0 : i32
    %c0_i32_0 = arith.constant 0 : i32
    %c0_i32_1 = arith.constant 0 : i32
    return %c0_i32, %c0_i32_0 : i32, i32
  }
  func.func @transform_8(%arg0: i32) -> (i32, i32) {
    %c0_i32 = arith.constant 0 : i32
    %c0_i32_0 = arith.constant 0 : i32
    %c0_i32_1 = arith.constant 0 : i32
    return %c0_i32, %c0_i32_0 : i32, i32
  }
  func.func @transform_9(%arg0: i32) -> (i32, i32) {
    %c0_i32 = arith.constant 0 : i32
    %c0_i32_0 = arith.constant 0 : i32
    %c0_i32_1 = arith.constant 0 : i32
    return %c0_i32, %c0_i32_0 : i32, i32
  }
  func.func @transform_10(%arg0: i32) -> (i32, i32) {
    %c0_i32 = arith.constant 0 : i32
    %c0_i32_0 = arith.constant 0 : i32
    %c0_i32_1 = arith.constant 0 : i32
    return %c0_i32, %c0_i32_0 : i32, i32
  }
  func.func @transform_11(%arg0: i32) -> (i32, i32) {
    %c0_i32 = arith.constant 0 : i32
    %c0_i32_0 = arith.constant 0 : i32
    return %arg0, %c0_i32 : i32, i32
  }
}

module attributes {stable_mosaic.version = 11 : i64} {
  func.func @_mha_kernel(%arg0: i32, %arg1: memref<16x16xbf16, #tpu.memory_space<vmem>>, %arg2: memref<16x16xbf16, #tpu.memory_space<vmem>>, %arg3: memref<16x16xbf16, #tpu.memory_space<vmem>>, %arg4: memref<16x64xbf16, #tpu.memory_space<vmem>>, %arg5: memref<1x64xf32, #tpu.memory_space<vmem>>, %arg6: memref<16x64xbf16, #tpu.memory_space<vmem>>, %arg7: memref<1x64xf32, #tpu.memory_space<vmem>>, %arg8: memref<16x64xbf16, #tpu.memory_space<vmem>>, %arg9: memref<1x64xf32, #tpu.memory_space<vmem>>, %arg10: memref<64x16xbf16, #tpu.memory_space<vmem>>, %arg11: memref<1x16xf32, #tpu.memory_space<vmem>>, %arg12: memref<16x16xf32, #tpu.memory_space<vmem>>) attributes {dimension_semantics = [#tpu.dimension_semantics<parallel>], iteration_bounds = array<i64: 2>, scalar_prefetch = 0 : i64, scratch_operands = 0 : i64, tpu.core_type = #tpu.core_type<tc>, window_params = [{transform_indices = @transform_0, window_bounds = array<i64: 16, 16>}, {transform_indices = @transform_1, window_bounds = array<i64: 16, 16>}, {transform_indices = @transform_2, window_bounds = array<i64: 16, 16>}, {pipeline_mode = #tpu.pipeline_mode<synchronous>, transform_indices = @transform_3, window_bounds = array<i64: 16, 64>}, {pipeline_mode = #tpu.pipeline_mode<synchronous>, transform_indices = @transform_4, window_bounds = array<i64: 1, 64>}, {pipeline_mode = #tpu.pipeline_mode<synchronous>, transform_indices = @transform_5, window_bounds = array<i64: 16, 64>}, {pipeline_mode = #tpu.pipeline_mode<synchronous>, transform_indices = @transform_6, window_bounds = array<i64: 1, 64>}, {pipeline_mode = #tpu.pipeline_mode<synchronous>, transform_indices = @transform_7, window_bounds = array<i64: 16, 64>}, {pipeline_mode = #tpu.pipeline_mode<synchronous>, transform_indices = @transform_8, window_bounds = array<i64: 1, 64>}, {pipeline_mode = #tpu.pipeline_mode<synchronous>, transform_indices = @transform_9, window_bounds = array<i64: 64, 16>}, {pipeline_mode = #tpu.pipeline_mode<synchronous>, transform_indices = @transform_10, window_bounds = array<i64: 1, 16>}, {transform_indices = @transform_11, window_bounds = array<i64: 16, 16>}]} {
    %c0 = arith.constant 0 : index
    %c0_0 = arith.constant 0 : index
    %0 = vector.load %arg1[%c0, %c0_0] : memref<16x16xbf16, #tpu.memory_space<vmem>>, vector<16x16xbf16>
    %c0_1 = arith.constant 0 : index
    %c0_2 = arith.constant 0 : index
    %1 = vector.load %arg4[%c0_1, %c0_2] : memref<16x64xbf16, #tpu.memory_space<vmem>>, vector<16x64xbf16>
    %cst = arith.constant dense<0.000000e+00> : vector<16x64xf32>
    %2 = tpu.matmul %0, %1, %cst {dimension_numbers = #tpu.dot_dimension_numbers<[1], [0], [0], [1], [0, 0, 1, 1], [], []>} : vector<16x16xbf16>, vector<16x64xbf16>, vector<16x64xf32> -> vector<16x64xf32>
    %c0_3 = arith.constant 0 : index
    %c0_4 = arith.constant 0 : index
    %3 = vector.load %arg5[%c0_3, %c0_4] : memref<1x64xf32, #tpu.memory_space<vmem>>, vector<1x64xf32>
    %4 = vector.broadcast %3 : vector<1x64xf32> to vector<16x64xf32>
    %5 = arith.addf %2, %4 : vector<16x64xf32>
    %c0_5 = arith.constant 0 : index
    %c0_6 = arith.constant 0 : index
    %6 = vector.load %arg2[%c0_5, %c0_6] : memref<16x16xbf16, #tpu.memory_space<vmem>>, vector<16x16xbf16>
    %c0_7 = arith.constant 0 : index
    %c0_8 = arith.constant 0 : index
    %7 = vector.load %arg6[%c0_7, %c0_8] : memref<16x64xbf16, #tpu.memory_space<vmem>>, vector<16x64xbf16>
    %cst_9 = arith.constant dense<0.000000e+00> : vector<16x64xf32>
    %8 = tpu.matmul %6, %7, %cst_9 {dimension_numbers = #tpu.dot_dimension_numbers<[1], [0], [0], [1], [0, 0, 1, 1], [], []>} : vector<16x16xbf16>, vector<16x64xbf16>, vector<16x64xf32> -> vector<16x64xf32>
    %c0_10 = arith.constant 0 : index
    %c0_11 = arith.constant 0 : index
    %9 = vector.load %arg7[%c0_10, %c0_11] : memref<1x64xf32, #tpu.memory_space<vmem>>, vector<1x64xf32>
    %10 = vector.broadcast %9 : vector<1x64xf32> to vector<16x64xf32>
    %11 = arith.addf %8, %10 : vector<16x64xf32>
    %c0_12 = arith.constant 0 : index
    %c0_13 = arith.constant 0 : index
    %12 = vector.load %arg3[%c0_12, %c0_13] : memref<16x16xbf16, #tpu.memory_space<vmem>>, vector<16x16xbf16>
    %c0_14 = arith.constant 0 : index
    %c0_15 = arith.constant 0 : index
    %13 = vector.load %arg8[%c0_14, %c0_15] : memref<16x64xbf16, #tpu.memory_space<vmem>>, vector<16x64xbf16>
    %cst_16 = arith.constant dense<0.000000e+00> : vector<16x64xf32>
    %14 = tpu.matmul %12, %13, %cst_16 {dimension_numbers = #tpu.dot_dimension_numbers<[1], [0], [0], [1], [0, 0, 1, 1], [], []>} : vector<16x16xbf16>, vector<16x64xbf16>, vector<16x64xf32> -> vector<16x64xf32>
    %c0_17 = arith.constant 0 : index
    %c0_18 = arith.constant 0 : index
    %15 = vector.load %arg9[%c0_17, %c0_18] : memref<1x64xf32, #tpu.memory_space<vmem>>, vector<1x64xf32>
    %16 = vector.broadcast %15 : vector<1x64xf32> to vector<16x64xf32>
    %17 = arith.addf %14, %16 : vector<16x64xf32>
    %18 = vector.shape_cast %5 : vector<16x64xf32> to vector<2x8x64xf32>
    %19 = arith.truncf %18 : vector<2x8x64xf32> to vector<2x8x64xbf16>
    %20 = vector.shape_cast %11 : vector<16x64xf32> to vector<2x8x64xf32>
    %21 = arith.truncf %20 : vector<2x8x64xf32> to vector<2x8x64xbf16>
    %22 = vector.shape_cast %17 : vector<16x64xf32> to vector<2x8x64xf32>
    %23 = arith.truncf %22 : vector<2x8x64xf32> to vector<2x8x64xbf16>
    %24 = vector.extract_strided_slice %19 {offsets = [0, 0, 0], sizes = [2, 8, 8], strides = [1, 1, 1]} : vector<2x8x64xbf16> to vector<2x8x8xbf16>
    %25 = vector.extract_strided_slice %21 {offsets = [0, 0, 0], sizes = [2, 8, 8], strides = [1, 1, 1]} : vector<2x8x64xbf16> to vector<2x8x8xbf16>
    %26 = vector.extract_strided_slice %23 {offsets = [0, 0, 0], sizes = [2, 8, 8], strides = [1, 1, 1]} : vector<2x8x64xbf16> to vector<2x8x8xbf16>
    "tpu.trace_start"() <{level = 10 : i32, message = "bqd,bkd->bqk"}> : () -> ()
    %cst_19 = arith.constant dense<0.000000e+00> : vector<2x8x8xf32>
    %27 = tpu.matmul %24, %25, %cst_19 {dimension_numbers = #tpu.dot_dimension_numbers<[2], [2], [1], [1], [0, 0, 0, 1, 1, 1], [0], [0]>} : vector<2x8x8xbf16>, vector<2x8x8xbf16>, vector<2x8x8xf32> -> vector<2x8x8xf32>
    "tpu.trace_stop"() : () -> ()
    %cst_20 = arith.constant 0.353553385 : f32
    %28 = vector.broadcast %cst_20 : f32 to vector<2x8x8xf32>
    %29 = arith.mulf %27, %28 : vector<2x8x8xf32>
    %cst_21 = arith.constant dense<0xFF800000> : vector<2x8xf32>
    %30 = vector.multi_reduction <maximumf>, %29, %cst_21 [2] : vector<2x8x8xf32> to vector<2x8xf32>
    %31 = vector.shape_cast %30 : vector<2x8xf32> to vector<2x8x1xf32>
    %32 = vector.broadcast %31 : vector<2x8x1xf32> to vector<2x8x8xf32>
    %33 = arith.subf %29, %32 : vector<2x8x8xf32>
    %34 = math.exp %33 : vector<2x8x8xf32>
    %cst_22 = arith.constant dense<0.000000e+00> : vector<2x8xf32>
    %35 = vector.multi_reduction <add>, %34, %cst_22 [2] : vector<2x8x8xf32> to vector<2x8xf32>
    %36 = vector.shape_cast %35 : vector<2x8xf32> to vector<2x8x1xf32>
    %37 = tpu.reciprocal %36 : vector<2x8x1xf32> -> vector<2x8x1xf32>
    %38 = vector.broadcast %37 : vector<2x8x1xf32> to vector<2x8x8xf32>
    %39 = arith.mulf %34, %38 : vector<2x8x8xf32>
    %40 = arith.truncf %39 : vector<2x8x8xf32> to vector<2x8x8xbf16>
    "tpu.trace_start"() <{level = 10 : i32, message = "bqk,bkd->bqd"}> : () -> ()
    %cst_23 = arith.constant dense<0.000000e+00> : vector<2x8x8xf32>
    %41 = tpu.matmul %40, %26, %cst_23 {dimension_numbers = #tpu.dot_dimension_numbers<[2], [1], [1], [2], [0, 0, 0, 1, 1, 2], [0], [0]>} : vector<2x8x8xbf16>, vector<2x8x8xbf16>, vector<2x8x8xf32> -> vector<2x8x8xf32>
    "tpu.trace_stop"() : () -> ()
    %42 = vector.extract_strided_slice %19 {offsets = [0, 0, 8], sizes = [2, 8, 8], strides = [1, 1, 1]} : vector<2x8x64xbf16> to vector<2x8x8xbf16>
    %43 = vector.extract_strided_slice %21 {offsets = [0, 0, 8], sizes = [2, 8, 8], strides = [1, 1, 1]} : vector<2x8x64xbf16> to vector<2x8x8xbf16>
    %44 = vector.extract_strided_slice %23 {offsets = [0, 0, 8], sizes = [2, 8, 8], strides = [1, 1, 1]} : vector<2x8x64xbf16> to vector<2x8x8xbf16>
    "tpu.trace_start"() <{level = 10 : i32, message = "bqd,bkd->bqk"}> : () -> ()
    %cst_24 = arith.constant dense<0.000000e+00> : vector<2x8x8xf32>
    %45 = tpu.matmul %42, %43, %cst_24 {dimension_numbers = #tpu.dot_dimension_numbers<[2], [2], [1], [1], [0, 0, 0, 1, 1, 1], [0], [0]>} : vector<2x8x8xbf16>, vector<2x8x8xbf16>, vector<2x8x8xf32> -> vector<2x8x8xf32>
    "tpu.trace_stop"() : () -> ()
    %cst_25 = arith.constant 0.353553385 : f32
    %46 = vector.broadcast %cst_25 : f32 to vector<2x8x8xf32>
    %47 = arith.mulf %45, %46 : vector<2x8x8xf32>
    %cst_26 = arith.constant dense<0xFF800000> : vector<2x8xf32>
    %48 = vector.multi_reduction <maximumf>, %47, %cst_26 [2] : vector<2x8x8xf32> to vector<2x8xf32>
    %49 = vector.shape_cast %48 : vector<2x8xf32> to vector<2x8x1xf32>
    %50 = vector.broadcast %49 : vector<2x8x1xf32> to vector<2x8x8xf32>
    %51 = arith.subf %47, %50 : vector<2x8x8xf32>
    %52 = math.exp %51 : vector<2x8x8xf32>
    %cst_27 = arith.constant dense<0.000000e+00> : vector<2x8xf32>
    %53 = vector.multi_reduction <add>, %52, %cst_27 [2] : vector<2x8x8xf32> to vector<2x8xf32>
    %54 = vector.shape_cast %53 : vector<2x8xf32> to vector<2x8x1xf32>
    %55 = tpu.reciprocal %54 : vector<2x8x1xf32> -> vector<2x8x1xf32>
    %56 = vector.broadcast %55 : vector<2x8x1xf32> to vector<2x8x8xf32>
    %57 = arith.mulf %52, %56 : vector<2x8x8xf32>
    %58 = arith.truncf %57 : vector<2x8x8xf32> to vector<2x8x8xbf16>
    "tpu.trace_start"() <{level = 10 : i32, message = "bqk,bkd->bqd"}> : () -> ()
    %cst_28 = arith.constant dense<0.000000e+00> : vector<2x8x8xf32>
    %59 = tpu.matmul %58, %44, %cst_28 {dimension_numbers = #tpu.dot_dimension_numbers<[2], [1], [1], [2], [0, 0, 0, 1, 1, 2], [0], [0]>} : vector<2x8x8xbf16>, vector<2x8x8xbf16>, vector<2x8x8xf32> -> vector<2x8x8xf32>
    "tpu.trace_stop"() : () -> ()
    %60 = vector.extract_strided_slice %19 {offsets = [0, 0, 16], sizes = [2, 8, 8], strides = [1, 1, 1]} : vector<2x8x64xbf16> to vector<2x8x8xbf16>
    %61 = vector.extract_strided_slice %21 {offsets = [0, 0, 16], sizes = [2, 8, 8], strides = [1, 1, 1]} : vector<2x8x64xbf16> to vector<2x8x8xbf16>
    %62 = vector.extract_strided_slice %23 {offsets = [0, 0, 16], sizes = [2, 8, 8], strides = [1, 1, 1]} : vector<2x8x64xbf16> to vector<2x8x8xbf16>
    "tpu.trace_start"() <{level = 10 : i32, message = "bqd,bkd->bqk"}> : () -> ()
    %cst_29 = arith.constant dense<0.000000e+00> : vector<2x8x8xf32>
    %63 = tpu.matmul %60, %61, %cst_29 {dimension_numbers = #tpu.dot_dimension_numbers<[2], [2], [1], [1], [0, 0, 0, 1, 1, 1], [0], [0]>} : vector<2x8x8xbf16>, vector<2x8x8xbf16>, vector<2x8x8xf32> -> vector<2x8x8xf32>
    "tpu.trace_stop"() : () -> ()
    %cst_30 = arith.constant 0.353553385 : f32
    %64 = vector.broadcast %cst_30 : f32 to vector<2x8x8xf32>
    %65 = arith.mulf %63, %64 : vector<2x8x8xf32>
    %cst_31 = arith.constant dense<0xFF800000> : vector<2x8xf32>
    %66 = vector.multi_reduction <maximumf>, %65, %cst_31 [2] : vector<2x8x8xf32> to vector<2x8xf32>
    %67 = vector.shape_cast %66 : vector<2x8xf32> to vector<2x8x1xf32>
    %68 = vector.broadcast %67 : vector<2x8x1xf32> to vector<2x8x8xf32>
    %69 = arith.subf %65, %68 : vector<2x8x8xf32>
    %70 = math.exp %69 : vector<2x8x8xf32>
    %cst_32 = arith.constant dense<0.000000e+00> : vector<2x8xf32>
    %71 = vector.multi_reduction <add>, %70, %cst_32 [2] : vector<2x8x8xf32> to vector<2x8xf32>
    %72 = vector.shape_cast %71 : vector<2x8xf32> to vector<2x8x1xf32>
    %73 = tpu.reciprocal %72 : vector<2x8x1xf32> -> vector<2x8x1xf32>
    %74 = vector.broadcast %73 : vector<2x8x1xf32> to vector<2x8x8xf32>
    %75 = arith.mulf %70, %74 : vector<2x8x8xf32>
    %76 = arith.truncf %75 : vector<2x8x8xf32> to vector<2x8x8xbf16>
    "tpu.trace_start"() <{level = 10 : i32, message = "bqk,bkd->bqd"}> : () -> ()
    %cst_33 = arith.constant dense<0.000000e+00> : vector<2x8x8xf32>
    %77 = tpu.matmul %76, %62, %cst_33 {dimension_numbers = #tpu.dot_dimension_numbers<[2], [1], [1], [2], [0, 0, 0, 1, 1, 2], [0], [0]>} : vector<2x8x8xbf16>, vector<2x8x8xbf16>, vector<2x8x8xf32> -> vector<2x8x8xf32>
    "tpu.trace_stop"() : () -> ()
    %78 = vector.extract_strided_slice %19 {offsets = [0, 0, 24], sizes = [2, 8, 8], strides = [1, 1, 1]} : vector<2x8x64xbf16> to vector<2x8x8xbf16>
    %79 = vector.extract_strided_slice %21 {offsets = [0, 0, 24], sizes = [2, 8, 8], strides = [1, 1, 1]} : vector<2x8x64xbf16> to vector<2x8x8xbf16>
    %80 = vector.extract_strided_slice %23 {offsets = [0, 0, 24], sizes = [2, 8, 8], strides = [1, 1, 1]} : vector<2x8x64xbf16> to vector<2x8x8xbf16>
    "tpu.trace_start"() <{level = 10 : i32, message = "bqd,bkd->bqk"}> : () -> ()
    %cst_34 = arith.constant dense<0.000000e+00> : vector<2x8x8xf32>
    %81 = tpu.matmul %78, %79, %cst_34 {dimension_numbers = #tpu.dot_dimension_numbers<[2], [2], [1], [1], [0, 0, 0, 1, 1, 1], [0], [0]>} : vector<2x8x8xbf16>, vector<2x8x8xbf16>, vector<2x8x8xf32> -> vector<2x8x8xf32>
    "tpu.trace_stop"() : () -> ()
    %cst_35 = arith.constant 0.353553385 : f32
    %82 = vector.broadcast %cst_35 : f32 to vector<2x8x8xf32>
    %83 = arith.mulf %81, %82 : vector<2x8x8xf32>
    %cst_36 = arith.constant dense<0xFF800000> : vector<2x8xf32>
    %84 = vector.multi_reduction <maximumf>, %83, %cst_36 [2] : vector<2x8x8xf32> to vector<2x8xf32>
    %85 = vector.shape_cast %84 : vector<2x8xf32> to vector<2x8x1xf32>
    %86 = vector.broadcast %85 : vector<2x8x1xf32> to vector<2x8x8xf32>
    %87 = arith.subf %83, %86 : vector<2x8x8xf32>
    %88 = math.exp %87 : vector<2x8x8xf32>
    %cst_37 = arith.constant dense<0.000000e+00> : vector<2x8xf32>
    %89 = vector.multi_reduction <add>, %88, %cst_37 [2] : vector<2x8x8xf32> to vector<2x8xf32>
    %90 = vector.shape_cast %89 : vector<2x8xf32> to vector<2x8x1xf32>
    %91 = tpu.reciprocal %90 : vector<2x8x1xf32> -> vector<2x8x1xf32>
    %92 = vector.broadcast %91 : vector<2x8x1xf32> to vector<2x8x8xf32>
    %93 = arith.mulf %88, %92 : vector<2x8x8xf32>
    %94 = arith.truncf %93 : vector<2x8x8xf32> to vector<2x8x8xbf16>
    "tpu.trace_start"() <{level = 10 : i32, message = "bqk,bkd->bqd"}> : () -> ()
    %cst_38 = arith.constant dense<0.000000e+00> : vector<2x8x8xf32>
    %95 = tpu.matmul %94, %80, %cst_38 {dimension_numbers = #tpu.dot_dimension_numbers<[2], [1], [1], [2], [0, 0, 0, 1, 1, 2], [0], [0]>} : vector<2x8x8xbf16>, vector<2x8x8xbf16>, vector<2x8x8xf32> -> vector<2x8x8xf32>
    "tpu.trace_stop"() : () -> ()
    %96 = vector.extract_strided_slice %19 {offsets = [0, 0, 32], sizes = [2, 8, 8], strides = [1, 1, 1]} : vector<2x8x64xbf16> to vector<2x8x8xbf16>
    %97 = vector.extract_strided_slice %21 {offsets = [0, 0, 32], sizes = [2, 8, 8], strides = [1, 1, 1]} : vector<2x8x64xbf16> to vector<2x8x8xbf16>
    %98 = vector.extract_strided_slice %23 {offsets = [0, 0, 32], sizes = [2, 8, 8], strides = [1, 1, 1]} : vector<2x8x64xbf16> to vector<2x8x8xbf16>
    "tpu.trace_start"() <{level = 10 : i32, message = "bqd,bkd->bqk"}> : () -> ()
    %cst_39 = arith.constant dense<0.000000e+00> : vector<2x8x8xf32>
    %99 = tpu.matmul %96, %97, %cst_39 {dimension_numbers = #tpu.dot_dimension_numbers<[2], [2], [1], [1], [0, 0, 0, 1, 1, 1], [0], [0]>} : vector<2x8x8xbf16>, vector<2x8x8xbf16>, vector<2x8x8xf32> -> vector<2x8x8xf32>
    "tpu.trace_stop"() : () -> ()
    %cst_40 = arith.constant 0.353553385 : f32
    %100 = vector.broadcast %cst_40 : f32 to vector<2x8x8xf32>
    %101 = arith.mulf %99, %100 : vector<2x8x8xf32>
    %cst_41 = arith.constant dense<0xFF800000> : vector<2x8xf32>
    %102 = vector.multi_reduction <maximumf>, %101, %cst_41 [2] : vector<2x8x8xf32> to vector<2x8xf32>
    %103 = vector.shape_cast %102 : vector<2x8xf32> to vector<2x8x1xf32>
    %104 = vector.broadcast %103 : vector<2x8x1xf32> to vector<2x8x8xf32>
    %105 = arith.subf %101, %104 : vector<2x8x8xf32>
    %106 = math.exp %105 : vector<2x8x8xf32>
    %cst_42 = arith.constant dense<0.000000e+00> : vector<2x8xf32>
    %107 = vector.multi_reduction <add>, %106, %cst_42 [2] : vector<2x8x8xf32> to vector<2x8xf32>
    %108 = vector.shape_cast %107 : vector<2x8xf32> to vector<2x8x1xf32>
    %109 = tpu.reciprocal %108 : vector<2x8x1xf32> -> vector<2x8x1xf32>
    %110 = vector.broadcast %109 : vector<2x8x1xf32> to vector<2x8x8xf32>
    %111 = arith.mulf %106, %110 : vector<2x8x8xf32>
    %112 = arith.truncf %111 : vector<2x8x8xf32> to vector<2x8x8xbf16>
    "tpu.trace_start"() <{level = 10 : i32, message = "bqk,bkd->bqd"}> : () -> ()
    %cst_43 = arith.constant dense<0.000000e+00> : vector<2x8x8xf32>
    %113 = tpu.matmul %112, %98, %cst_43 {dimension_numbers = #tpu.dot_dimension_numbers<[2], [1], [1], [2], [0, 0, 0, 1, 1, 2], [0], [0]>} : vector<2x8x8xbf16>, vector<2x8x8xbf16>, vector<2x8x8xf32> -> vector<2x8x8xf32>
    "tpu.trace_stop"() : () -> ()
    %114 = vector.extract_strided_slice %19 {offsets = [0, 0, 40], sizes = [2, 8, 8], strides = [1, 1, 1]} : vector<2x8x64xbf16> to vector<2x8x8xbf16>
    %115 = vector.extract_strided_slice %21 {offsets = [0, 0, 40], sizes = [2, 8, 8], strides = [1, 1, 1]} : vector<2x8x64xbf16> to vector<2x8x8xbf16>
    %116 = vector.extract_strided_slice %23 {offsets = [0, 0, 40], sizes = [2, 8, 8], strides = [1, 1, 1]} : vector<2x8x64xbf16> to vector<2x8x8xbf16>
    "tpu.trace_start"() <{level = 10 : i32, message = "bqd,bkd->bqk"}> : () -> ()
    %cst_44 = arith.constant dense<0.000000e+00> : vector<2x8x8xf32>
    %117 = tpu.matmul %114, %115, %cst_44 {dimension_numbers = #tpu.dot_dimension_numbers<[2], [2], [1], [1], [0, 0, 0, 1, 1, 1], [0], [0]>} : vector<2x8x8xbf16>, vector<2x8x8xbf16>, vector<2x8x8xf32> -> vector<2x8x8xf32>
    "tpu.trace_stop"() : () -> ()
    %cst_45 = arith.constant 0.353553385 : f32
    %118 = vector.broadcast %cst_45 : f32 to vector<2x8x8xf32>
    %119 = arith.mulf %117, %118 : vector<2x8x8xf32>
    %cst_46 = arith.constant dense<0xFF800000> : vector<2x8xf32>
    %120 = vector.multi_reduction <maximumf>, %119, %cst_46 [2] : vector<2x8x8xf32> to vector<2x8xf32>
    %121 = vector.shape_cast %120 : vector<2x8xf32> to vector<2x8x1xf32>
    %122 = vector.broadcast %121 : vector<2x8x1xf32> to vector<2x8x8xf32>
    %123 = arith.subf %119, %122 : vector<2x8x8xf32>
    %124 = math.exp %123 : vector<2x8x8xf32>
    %cst_47 = arith.constant dense<0.000000e+00> : vector<2x8xf32>
    %125 = vector.multi_reduction <add>, %124, %cst_47 [2] : vector<2x8x8xf32> to vector<2x8xf32>
    %126 = vector.shape_cast %125 : vector<2x8xf32> to vector<2x8x1xf32>
    %127 = tpu.reciprocal %126 : vector<2x8x1xf32> -> vector<2x8x1xf32>
    %128 = vector.broadcast %127 : vector<2x8x1xf32> to vector<2x8x8xf32>
    %129 = arith.mulf %124, %128 : vector<2x8x8xf32>
    %130 = arith.truncf %129 : vector<2x8x8xf32> to vector<2x8x8xbf16>
    "tpu.trace_start"() <{level = 10 : i32, message = "bqk,bkd->bqd"}> : () -> ()
    %cst_48 = arith.constant dense<0.000000e+00> : vector<2x8x8xf32>
    %131 = tpu.matmul %130, %116, %cst_48 {dimension_numbers = #tpu.dot_dimension_numbers<[2], [1], [1], [2], [0, 0, 0, 1, 1, 2], [0], [0]>} : vector<2x8x8xbf16>, vector<2x8x8xbf16>, vector<2x8x8xf32> -> vector<2x8x8xf32>
    "tpu.trace_stop"() : () -> ()
    %132 = vector.extract_strided_slice %19 {offsets = [0, 0, 48], sizes = [2, 8, 8], strides = [1, 1, 1]} : vector<2x8x64xbf16> to vector<2x8x8xbf16>
    %133 = vector.extract_strided_slice %21 {offsets = [0, 0, 48], sizes = [2, 8, 8], strides = [1, 1, 1]} : vector<2x8x64xbf16> to vector<2x8x8xbf16>
    %134 = vector.extract_strided_slice %23 {offsets = [0, 0, 48], sizes = [2, 8, 8], strides = [1, 1, 1]} : vector<2x8x64xbf16> to vector<2x8x8xbf16>
    "tpu.trace_start"() <{level = 10 : i32, message = "bqd,bkd->bqk"}> : () -> ()
    %cst_49 = arith.constant dense<0.000000e+00> : vector<2x8x8xf32>
    %135 = tpu.matmul %132, %133, %cst_49 {dimension_numbers = #tpu.dot_dimension_numbers<[2], [2], [1], [1], [0, 0, 0, 1, 1, 1], [0], [0]>} : vector<2x8x8xbf16>, vector<2x8x8xbf16>, vector<2x8x8xf32> -> vector<2x8x8xf32>
    "tpu.trace_stop"() : () -> ()
    %cst_50 = arith.constant 0.353553385 : f32
    %136 = vector.broadcast %cst_50 : f32 to vector<2x8x8xf32>
    %137 = arith.mulf %135, %136 : vector<2x8x8xf32>
    %cst_51 = arith.constant dense<0xFF800000> : vector<2x8xf32>
    %138 = vector.multi_reduction <maximumf>, %137, %cst_51 [2] : vector<2x8x8xf32> to vector<2x8xf32>
    %139 = vector.shape_cast %138 : vector<2x8xf32> to vector<2x8x1xf32>
    %140 = vector.broadcast %139 : vector<2x8x1xf32> to vector<2x8x8xf32>
    %141 = arith.subf %137, %140 : vector<2x8x8xf32>
    %142 = math.exp %141 : vector<2x8x8xf32>
    %cst_52 = arith.constant dense<0.000000e+00> : vector<2x8xf32>
    %143 = vector.multi_reduction <add>, %142, %cst_52 [2] : vector<2x8x8xf32> to vector<2x8xf32>
    %144 = vector.shape_cast %143 : vector<2x8xf32> to vector<2x8x1xf32>
    %145 = tpu.reciprocal %144 : vector<2x8x1xf32> -> vector<2x8x1xf32>
    %146 = vector.broadcast %145 : vector<2x8x1xf32> to vector<2x8x8xf32>
    %147 = arith.mulf %142, %146 : vector<2x8x8xf32>
    %148 = arith.truncf %147 : vector<2x8x8xf32> to vector<2x8x8xbf16>
    "tpu.trace_start"() <{level = 10 : i32, message = "bqk,bkd->bqd"}> : () -> ()
    %cst_53 = arith.constant dense<0.000000e+00> : vector<2x8x8xf32>
    %149 = tpu.matmul %148, %134, %cst_53 {dimension_numbers = #tpu.dot_dimension_numbers<[2], [1], [1], [2], [0, 0, 0, 1, 1, 2], [0], [0]>} : vector<2x8x8xbf16>, vector<2x8x8xbf16>, vector<2x8x8xf32> -> vector<2x8x8xf32>
    "tpu.trace_stop"() : () -> ()
    %150 = vector.extract_strided_slice %19 {offsets = [0, 0, 56], sizes = [2, 8, 8], strides = [1, 1, 1]} : vector<2x8x64xbf16> to vector<2x8x8xbf16>
    %151 = vector.extract_strided_slice %21 {offsets = [0, 0, 56], sizes = [2, 8, 8], strides = [1, 1, 1]} : vector<2x8x64xbf16> to vector<2x8x8xbf16>
    %152 = vector.extract_strided_slice %23 {offsets = [0, 0, 56], sizes = [2, 8, 8], strides = [1, 1, 1]} : vector<2x8x64xbf16> to vector<2x8x8xbf16>
    "tpu.trace_start"() <{level = 10 : i32, message = "bqd,bkd->bqk"}> : () -> ()
    %cst_54 = arith.constant dense<0.000000e+00> : vector<2x8x8xf32>
    %153 = tpu.matmul %150, %151, %cst_54 {dimension_numbers = #tpu.dot_dimension_numbers<[2], [2], [1], [1], [0, 0, 0, 1, 1, 1], [0], [0]>} : vector<2x8x8xbf16>, vector<2x8x8xbf16>, vector<2x8x8xf32> -> vector<2x8x8xf32>
    "tpu.trace_stop"() : () -> ()
    %cst_55 = arith.constant 0.353553385 : f32
    %154 = vector.broadcast %cst_55 : f32 to vector<2x8x8xf32>
    %155 = arith.mulf %153, %154 : vector<2x8x8xf32>
    %cst_56 = arith.constant dense<0xFF800000> : vector<2x8xf32>
    %156 = vector.multi_reduction <maximumf>, %155, %cst_56 [2] : vector<2x8x8xf32> to vector<2x8xf32>
    %157 = vector.shape_cast %156 : vector<2x8xf32> to vector<2x8x1xf32>
    %158 = vector.broadcast %157 : vector<2x8x1xf32> to vector<2x8x8xf32>
    %159 = arith.subf %155, %158 : vector<2x8x8xf32>
    %160 = math.exp %159 : vector<2x8x8xf32>
    %cst_57 = arith.constant dense<0.000000e+00> : vector<2x8xf32>
    %161 = vector.multi_reduction <add>, %160, %cst_57 [2] : vector<2x8x8xf32> to vector<2x8xf32>
    %162 = vector.shape_cast %161 : vector<2x8xf32> to vector<2x8x1xf32>
    %163 = tpu.reciprocal %162 : vector<2x8x1xf32> -> vector<2x8x1xf32>
    %164 = vector.broadcast %163 : vector<2x8x1xf32> to vector<2x8x8xf32>
    %165 = arith.mulf %160, %164 : vector<2x8x8xf32>
    %166 = arith.truncf %165 : vector<2x8x8xf32> to vector<2x8x8xbf16>
    "tpu.trace_start"() <{level = 10 : i32, message = "bqk,bkd->bqd"}> : () -> ()
    %cst_58 = arith.constant dense<0.000000e+00> : vector<2x8x8xf32>
    %167 = tpu.matmul %166, %152, %cst_58 {dimension_numbers = #tpu.dot_dimension_numbers<[2], [1], [1], [2], [0, 0, 0, 1, 1, 2], [0], [0]>} : vector<2x8x8xbf16>, vector<2x8x8xbf16>, vector<2x8x8xf32> -> vector<2x8x8xf32>
    "tpu.trace_stop"() : () -> ()
    %168 = tpu.concatenate %41, %59, %77, %95, %113, %131, %149, %167 in 2 : vector<2x8x8xf32>, vector<2x8x8xf32>, vector<2x8x8xf32>, vector<2x8x8xf32>, vector<2x8x8xf32>, vector<2x8x8xf32>, vector<2x8x8xf32>, vector<2x8x8xf32> -> vector<2x8x64xf32>
    %169 = vector.shape_cast %168 : vector<2x8x64xf32> to vector<16x64xf32>
    %170 = arith.truncf %169 : vector<16x64xf32> to vector<16x64xbf16>
    %c0_59 = arith.constant 0 : index
    %c0_60 = arith.constant 0 : index
    %171 = vector.load %arg10[%c0_59, %c0_60] : memref<64x16xbf16, #tpu.memory_space<vmem>>, vector<64x16xbf16>
    %cst_61 = arith.constant dense<0.000000e+00> : vector<16x16xf32>
    %172 = tpu.matmul %170, %171, %cst_61 {dimension_numbers = #tpu.dot_dimension_numbers<[1], [0], [0], [1], [0, 0, 1, 1], [], []>} : vector<16x64xbf16>, vector<64x16xbf16>, vector<16x16xf32> -> vector<16x16xf32>
    %c0_62 = arith.constant 0 : index
    %c0_63 = arith.constant 0 : index
    %173 = vector.load %arg11[%c0_62, %c0_63] : memref<1x16xf32, #tpu.memory_space<vmem>>, vector<1x16xf32>
    %174 = vector.broadcast %173 : vector<1x16xf32> to vector<16x16xf32>
    %175 = arith.addf %172, %174 : vector<16x16xf32>
    %c0_64 = arith.constant 0 : index
    %c0_65 = arith.constant 0 : index
    %176 = vector.load %arg12[%c0_64, %c0_65] : memref<16x16xf32, #tpu.memory_space<vmem>>, vector<16x16xf32>
    tpu.vector_store %arg12[%c0_64, %c0_65], %175 {strides = array<i32>} : memref<16x16xf32, #tpu.memory_space<vmem>>, vector<16x16xf32>,
    return
  }
  func.func @transform_0(%arg0: i32) -> (i32, i32) {
    %c0_i32 = arith.constant 0 : i32
    %c0_i32_0 = arith.constant 0 : i32
    return %arg0, %c0_i32 : i32, i32
  }
  func.func @transform_1(%arg0: i32) -> (i32, i32) {
    %c0_i32 = arith.constant 0 : i32
    %c0_i32_0 = arith.constant 0 : i32
    return %arg0, %c0_i32 : i32, i32
  }
  func.func @transform_2(%arg0: i32) -> (i32, i32) {
    %c0_i32 = arith.constant 0 : i32
    %c0_i32_0 = arith.constant 0 : i32
    return %arg0, %c0_i32 : i32, i32
  }
  func.func @transform_3(%arg0: i32) -> (i32, i32) {
    %c0_i32 = arith.constant 0 : i32
    %c0_i32_0 = arith.constant 0 : i32
    %c0_i32_1 = arith.constant 0 : i32
    return %c0_i32, %c0_i32_0 : i32, i32
  }
  func.func @transform_4(%arg0: i32) -> (i32, i32) {
    %c0_i32 = arith.constant 0 : i32
    %c0_i32_0 = arith.constant 0 : i32
    %c0_i32_1 = arith.constant 0 : i32
    return %c0_i32, %c0_i32_0 : i32, i32
  }
  func.func @transform_5(%arg0: i32) -> (i32, i32) {
    %c0_i32 = arith.constant 0 : i32
    %c0_i32_0 = arith.constant 0 : i32
    %c0_i32_1 = arith.constant 0 : i32
    return %c0_i32, %c0_i32_0 : i32, i32
  }
  func.func @transform_6(%arg0: i32) -> (i32, i32) {
    %c0_i32 = arith.constant 0 : i32
    %c0_i32_0 = arith.constant 0 : i32
    %c0_i32_1 = arith.constant 0 : i32
    return %c0_i32, %c0_i32_0 : i32, i32
  }
  func.func @transform_7(%arg0: i32) -> (i32, i32) {
    %c0_i32 = arith.constant 0 : i32
    %c0_i32_0 = arith.constant 0 : i32
    %c0_i32_1 = arith.constant 0 : i32
    return %c0_i32, %c0_i32_0 : i32, i32
  }
  func.func @transform_8(%arg0: i32) -> (i32, i32) {
    %c0_i32 = arith.constant 0 : i32
    %c0_i32_0 = arith.constant 0 : i32
    %c0_i32_1 = arith.constant 0 : i32
    return %c0_i32, %c0_i32_0 : i32, i32
  }
  func.func @transform_9(%arg0: i32) -> (i32, i32) {
    %c0_i32 = arith.constant 0 : i32
    %c0_i32_0 = arith.constant 0 : i32
    %c0_i32_1 = arith.constant 0 : i32
    return %c0_i32, %c0_i32_0 : i32, i32
  }
  func.func @transform_10(%arg0: i32) -> (i32, i32) {
    %c0_i32 = arith.constant 0 : i32
    %c0_i32_0 = arith.constant 0 : i32
    %c0_i32_1 = arith.constant 0 : i32
    return %c0_i32, %c0_i32_0 : i32, i32
  }
  func.func @transform_11(%arg0: i32) -> (i32, i32) {
    %c0_i32 = arith.constant 0 : i32
    %c0_i32_0 = arith.constant 0 : i32
    return %arg0, %c0_i32 : i32, i32
  }
}

</mosaic_0001>

<bundles_post_ra>
// kernel: tpu_custom_call.1
= control target key start
LH: loop header
LB: loop body
LE: loop exit
PB: predicated region body
PF: predicated region fallthrough
CT: control target
= control target key end

     0   :  { %s3233_s17 = smov 0   ;;  %s3662_s0 = inlined_call_operand.vmem [shape: bf16[32,16], index: 0, kind: input, shape index: {}]   ;;  %s3663_s1 = inlined_call_operand.vmem [shape: bf16[32,16], index: 1, kind: input, shape index: {}]   ;;  %s3664_s2 = inlined_call_operand.vmem [shape: bf16[32,16], index: 2, kind: input, shape index: {}]   ;;  %s3665_s3 = inlined_call_operand.vmem [shape: bf16[16,64], index: 3, kind: input, shape index: {}]   ;;  %s3666_s4 = inlined_call_operand.vmem [shape: f32[1,64], index: 4, kind: input, shape index: {}]   ;;  %s3667_s5 = inlined_call_operand.vmem [shape: bf16[16,64], index: 5, kind: input, shape index: {}]   ;;  %s3668_s6 = inlined_call_operand.vmem [shape: f32[1,64], index: 6, kind: input, shape index: {}]   ;;  %s3669_s7 = inlined_call_operand.vmem [shape: bf16[16,64], index: 7, kind: input, shape index: {}]   ;;  %s3670_s8 = inlined_call_operand.vmem [shape: f32[1,64], index: 8, kind: input, shape index: {}]   ;;  %s3671_s9 = inlined_call_operand.vmem [shape: bf16[64,16], index: 9, kind: input, shape index: {}]   ;;  %s3672_s10 = inlined_call_operand.vmem [shape: f32[1,16], index: 10, kind: input, shape index: {}]   ;;  %s3673_s11 = inlined_call_operand.vmem [shape: f32[32,16], index: 11, kind: output, shape index: {}]  }
   0x1 LB: > { %s2654_s18 = sadd.s32 4294967295, %s3155_s17   ;;  %p2658_p0 = scmp.ge.s32.totalorder %s3155_s17, 1  ;;  %s3155_s17 = sphi %s3233_s17, %s21_s17  }
   0x2   : > { %p360_p1 = scmp.lt.s32.totalorder %s3155_s17, 3 }
   0x4   : > { %p361_p2 = pnand %p2658_p0, %p360_p1 }
   0x5   : > { %v3075_v0 = vld [vmem:[%s3667_s5] sm:$0xff] (!%p361_p2)   ;;  %v3157_v1 = vmov (!%p361_p2), 0.0   ;;  %s2659_s21 = sshll.u32 (!%p361_p2), %s2654_s18, 1  ;;  %vm3158_vm0 = vmmov (!%p361_p2), 0   ;;  %vm457_vm1 = vcmask (!%p361_p2), 130048   ;;  %vm640_vm2 = vcmask (!%p361_p2), 64512  }
   0x6   : > { %364 = sbr.rel (%p361_p2) target bundleno = 5104 (0x13f0), region = 64  ;;  %2800 = vmatprep.subr.bf16.mxu1 (!%p361_p2), %v3157_v1  ;;  %2794 = vmatprep.subr.bf16.mxu0 (!%p361_p2), %v3157_v1  ;;  %v3077_v2 = vld [vmem:[%s3665_s3] sm:$0xff] (!%p361_p2)   ;;  %p411_p3 = scmp.lt.s32.totalorder (!%p361_p2), %s2659_s21, 3  ;;  %vm762_vm3 = vcmask (!%p361_p2), 1043456   ;;  %vm2472_vm4 = vcmask (!%p361_p2), 195584   ;;  %vm2475_vm5 = vcmask (!%p361_p2), 261120  }
   0x7   : > { %2801 = vmatpush3.bf16.msra.mxu1 (!%p361_p2), %v3075_v0  ;;  %2802 = vmatprep.mubr.msk.bf16.mxu1 (!%p361_p2), %vm3158_vm0, %v3157_v1  ;;  %v3079_v3 = vld [vmem:[%s3669_s7] sm:$0xff] (!%p361_p2)   ;;  %s3159_s23 = smov (!%p361_p2), 120   ;;  %s3160_s26 = smov (!%p361_p2), 112   ;;  %vm2478_vm6 = vcmask (!%p361_p2), 326656   ;;  %vm2481_vm7 = vcmask (!%p361_p2), 392192   ;;  %vm2484_vm8 = vcmask (!%p361_p2), 457728  }
   0x8   : > { %2795 = vmatpush3.bf16.msra.mxu0 (!%p361_p2), %v3077_v2  ;;  %2796 = vmatprep.mubr.msk.bf16.mxu0 (!%p361_p2), %vm3158_vm0, %v3157_v1  ;;  %v2671_v7 = vld [vmem:[%s3668_s6] ss:$0 sm:$0xff] (!%p361_p2)  ;;  %s3162_s28 = smov (!%p361_p2), 96   ;;  %s3163_s29 = smov (!%p361_p2), 88   ;;  %vm2527_vm9 = vcmask (!%p361_p2), 523264  }
   0x9   : > { %2806 = vmatprep.subr.bf16.mxu0 (!%p361_p2), %v3157_v1  ;;  %2812 = vmatprep.subr.bf16.mxu1 (!%p361_p2), %v3157_v1  ;;  %v2667_v13 = vld [vmem:[%s3666_s4] ss:$0 sm:$0xff] (!%p361_p2)  ;;  %s3165_s12 = smov (!%p361_p2), 72   ;;  %s3166_s13 = smov (!%p361_p2), 8  }
   0xa   : > { %v2675_v27 = vld [vmem:[%s3670_s8] ss:$0 sm:$0xff] (!%p361_p2)  ;;  %s3167_s14 = smov (!%p361_p2), 16   ;;  %s3168_s15 = smov (!%p361_p2), 32  }
   0xb   : > { %s3170_s18 = smov (!%p361_p2), 24   ;;  %s3171_s19 = smov (!%p361_p2), 40  }
   0xd   : > { %s3675_s21 = smov (!%p411_p3, %s2659_s21), 3 }
   0xe   : > { %s2660_s24 = sshll.u32 %s3675_s21, 2 }
   0xf   : > { %s420_s27 = scalar_lea.vmem %s3663_s1, %s2660_s24  ;;  %s414_s30 = scalar_lea.vmem %s3662_s0, %s2660_s24 }
  0x10   : > { %v3076_v4 = vld [vmem:[%s420_s27] sm:$0xff]   ;;  %s426_s16 = scalar_lea.vmem %s3664_s2, %s2660_s24  ;;  %s3161_s27 = smov 104  }
  0x11   : > { %v3078_v5 = vld [vmem:[%s414_s30] sm:$0xff]   ;;  %2803 = vmatmul.mubr.msk.bf16.vlgmr.msra.gmra.mrb[0].mxu1 %vm457_vm1, %v3076_v4  ;;  %s3164_s30 = smov 80  }
  0x12   : > { %2797 = vmatmul.mubr.msk.bf16.vlgmr.msra.gmra.mrb[0].mxu0 %vm457_vm1, %v3078_v5  ;;  %2814 = vmatprep.mubr.msk.bf16.mxu1 %vm3158_vm0, %v3157_v1  ;;  %v3080_v6 = vld [vmem:[%s426_s16] sm:$0xff]   ;;  %s3169_s16 = smov 48  }
  0x13   : > { %2807 = vmatpush3.bf16.msra.mxu0 %v3079_v3  ;;  %2808 = vmatprep.mubr.msk.bf16.mxu0 %vm3158_vm0, %v3157_v1 }
  0x14   : > { %2818 = vmatprep.subr.bf16.mxu0 %v3157_v1 }
  0x1a   : > { %2809 = vmatmul.mubr.msk.bf16.vlgmr.msra.gmra.mrb[4].mxu0 %vm457_vm1, %v3080_v6 }
  0x1b   : > { %2820 = vmatprep.mubr.msk.bf16.mxu0 %vm3158_vm0, %v3157_v1 }
  0xe4   : > { %v561_v8 = vpop.f32.mrb[0].mxu1 }
  0xe5   : > { %v562_v9 = vadd.f32 %v2671_v7, %v561_v8  ;;  %v2804_v10 = vpop.f32.mrb[1].mxu1  ;;  %v495_v11 = vpop.f32.mrb[0].mxu0 }
  0xe6   : > { %v564_v12 = vpop.f32.mrb[2].mxu1  ;;  %v2798_v14 = vpop.f32.mrb[1].mxu0  ;;  %v496_v21 = vadd.f32 %v2667_v13, %v495_v11 }
  0xe7   : > { %v3286_v15 = vpack.c.bf16 %v562_v9, %v562_v9  ;;  %v565_v16 = vadd.f32 %v2671_v7, %v564_v12  ;;  %v2805_v17 = vpop.f32.mrb[3].mxu1  ;;  %v498_v18 = vpop.f32.mrb[2].mxu0 }
  0xe8   : > { %v2799_v19 = vpop.f32.mrb[3].mxu0  ;;  %v3297_v24 = vpack.c.bf16 %v496_v21, %v496_v21  ;;  %v499_v25 = vadd.f32 %v2667_v13, %v498_v18 }
  0xe9   : > { %v3288_v20 = vpack.c.bf16 %v565_v16, %v565_v16  ;;  %v645_v22 = vsel %vm640_vm2, %v3286_v15, 0 }
  0xea   : > { %2813 = vmatpush3.bf16.xpose.msra.mxu1 %v645_v22  ;;  %v3300_v26 = vpack.c.bf16 %v499_v25, %v499_v25 }
  0xeb   : > { %908 = vrot.lane.b32.xlu1 %v3288_v20, %s3159_s23  ;;  %v691_v23 = vsel %vm640_vm2, %v3288_v20, 0  ;;  %2824 = vmatprep.subr.bf16.mxu1 %v3157_v1 }
  0xec   : > { %2819 = vmatpush3.bf16.xpose.msra.mxu0 %v691_v23 }
  0xed   : > { %2830 = vmatprep.subr.bf16.mxu0 %v3157_v1  ;;  %v627_v28 = vpop.f32.mrb[4].mxu0 }
  0xee   : > { %v628_v29 = vadd.f32 %v2675_v27, %v627_v28  ;;  %v2810_v30 = vpop.f32.mrb[5].mxu0 }
  0xef   : > { %v630_v31 = vpop.f32.mrb[6].mxu0 }
  0xf0   : > { %v631_v32 = vadd.f32 %v2675_v27, %v630_v31  ;;  %v2811_v33 = vpop.f32.mrb[7].mxu0  ;;  %v3313_v34 = vpack.c.bf16 %v628_v29, %v628_v29 }
  0xf1   : > { %2815 = vmatmul.mubr.msk.bf16.vlgmr.msra.gmra.mrb[4].mxu1 %vm640_vm2, %v3297_v24 }
  0xf2   : > { %2826 = vmatprep.mubr.msk.bf16.mxu1 %vm3158_vm0, %v3157_v1  ;;  %v3315_v35 = vpack.c.bf16 %v631_v32, %v631_v32  ;;  %v764_v36 = vsel %vm762_vm3, %v3313_v34, 0 }
  0xf3   : > { %2821 = vmatmul.mubr.msk.bf16.vlgmr.msra.gmra.mrb[8].mxu0 %vm640_vm2, %v3300_v26  ;;  %2825 = vmatpush3.bf16.msra.mxu1 %v764_v36 }
  0xf4   : > { %2832 = vmatprep.mubr.msk.bf16.mxu0 %vm3158_vm0, %v3157_v1  ;;  %v810_v37 = vsel %vm762_vm3, %v3315_v35, 0  ;;  %2836 = vmatprep.subr.bf16.mxu1 %v3157_v1 }
  0xf5   : > { %2831 = vmatpush3.bf16.msra.mxu0 %v810_v37 }
  0xf6   : > { %2842 = vmatprep.subr.bf16.mxu0 %v3157_v1 }
 0x15d   : > { %v909_v60 = vpop.permute.xlu1 %908 }
 0x15e   : > { %v914_v8 = vsel %vm640_vm2, %v909_v60, 0 }
 0x1c4   : > { %v681_v38 = vpop.f32.mrb[4].mxu1 }
 0x1c5   : > { %v733_v39 = vmul.f32 0.35355338, %v681_v38  ;;  %v2816_v40 = vpop.f32.mrb[5].mxu1 }
 0x1c6   : > { %v684_v41 = vpop.f32.mrb[6].mxu1  ;;  %v727_v42 = vpop.f32.mrb[8].mxu0 }
 0x1c7   : > { %v734_v43 = vmul.f32 0.35355338, %v727_v42  ;;  %v2817_v44 = vpop.f32.mrb[7].mxu1  ;;  %v2822_v45 = vpop.f32.mrb[9].mxu0  ;;  %v735_v46 = vsel %vm640_vm2, %v733_v39, -inf }
 0x1c8   : > { %736 = vmax.xlane.f32.xlu0 %v735_v46  ;;  %v730_v47 = vpop.f32.mrb[10].mxu0 }
 0x1c9   : > { %v2823_v48 = vpop.f32.mrb[11].mxu0  ;;  %v738_v49 = vsel %vm640_vm2, %v734_v43, -inf }
 0x1cc   : > { %739 = vmax.xlane.f32.xlu0 %v738_v49 }
 0x1e2   : > { %856 = vrot.lane.b32.xlu0 %v3286_v15, %s3159_s23 }
 0x255   : > { %v737_v50 = vpop.xlane.xlu0 %736 }
 0x256   : > { %v741_v51 = vsub.f32 %v733_v39, %v737_v50 }
 0x258   : > { %v743_v52 = vmul.f32 1.442695, %v741_v51 }
 0x259   : > { %v740_v53 = vpop.xlane.xlu0 %739 }
 0x25a   : > { %3085 = vpow2.f32 %v743_v52  ;;  %v742_v54 = vsub.f32 %v734_v43, %v740_v53 }
 0x25c   : > { %v745_v55 = vmul.f32 1.442695, %v742_v54 }
 0x25d   : > { %v857_v2 = vpop.permute.xlu0 %856 }
 0x25e   : > { %3087 = vpow2.f32 %v745_v55  ;;  %v862_v5 = vsel %vm640_vm2, %v857_v2, 0 }
 0x264   : > { %v3086_v56 = vpop.eup %3085 }
 0x265   : > { %v747_v57 = vsel %vm640_vm2, %v3086_v56, 0.0 }
 0x266   : > { %748 = vadd.xlane.f32.xlu1 %v747_v57 }
 0x268   : > { %v3088_v58 = vpop.eup %3087 }
 0x269   : > { %v750_v59 = vsel %vm640_vm2, %v3088_v58, 0.0 }
 0x26a   : > { %751 = vadd.xlane.f32.xlu1 %v750_v59 }
 0x27b   : > { %853 = vrot.lane.b32.xlu1 %v3297_v24, %s3159_s23 }
 0x27f   : > { %905 = vrot.lane.b32.xlu1 %v3300_v26, %s3159_s23 }
 0x2f3   : > { %v749_v61 = vpop.xlane.xlu1 %748 }
 0x2f4   : > { %3089 = vrcp.f32 %v749_v61 }
 0x2f7   : > { %v752_v62 = vpop.xlane.xlu1 %751 }
 0x2f8   : > { %3091 = vrcp.f32 %v752_v62 }
 0x2fb   : > { %v854_v9 = vpop.permute.xlu1 %853 }
 0x2fe   : > { %v3090_v63 = vpop.eup %3089 }
 0x2ff   : > { %v755_v0 = vmul.f32 %v3090_v63, %v3086_v56  ;;  %v906_v10 = vpop.permute.xlu1 %905 }
 0x301   : > { %v757_v3 = vpack.c.bf16 %v755_v0, %v755_v0 }
 0x302   : > { %v3092_v4 = vpop.eup %3091 }
 0x303   : > { %v756_v6 = vmul.f32 %v3092_v4, %v3088_v58  ;;  %2827 = vmatmul.mubr.msk.bf16.vlgmr.msra.gmra.mrb[8].mxu1 %vm640_vm2, %v757_v3 }
 0x304   : > { %2837 = vmatpush3.bf16.xpose.msra.mxu1 %v862_v5  ;;  %2838 = vmatprep.mubr.msk.bf16.mxu1 %vm3158_vm0, %v3157_v1 }
 0x305   : > { %v758_v7 = vpack.c.bf16 %v756_v6, %v756_v6  ;;  %2848 = vmatprep.subr.bf16.mxu1 %v3157_v1 }
 0x307   : > { %2833 = vmatmul.mubr.msk.bf16.vlgmr.msra.gmra.mrb[12].mxu0 %vm640_vm2, %v758_v7 }
 0x308   : > { %2843 = vmatpush3.bf16.xpose.msra.mxu0 %v914_v8  ;;  %2844 = vmatprep.mubr.msk.bf16.mxu0 %vm3158_vm0, %v3157_v1 }
 0x309   : > { %2854 = vmatprep.subr.bf16.mxu0 %v3157_v1 }
 0x30b   : > { %2839 = vmatmul.mubr.msk.bf16.vlgmr.msra.gmra.mrb[12].mxu1 %vm640_vm2, %v854_v9 }
 0x30c   : > { %2850 = vmatprep.mubr.msk.bf16.mxu1 %vm3158_vm0, %v3157_v1 }
 0x30f   : > { %2845 = vmatmul.mubr.msk.bf16.vlgmr.msra.gmra.mrb[16].mxu0 %vm640_vm2, %v906_v10 }
 0x310   : > { %2856 = vmatprep.mubr.msk.bf16.mxu0 %vm3158_vm0, %v3157_v1 }
 0x3d6   : > { %v3349_v11 = vpop.f32.mrb[8].mxu1 }
 0x3d7   : > { %v2828_v12 = vpop.f32.mrb[9].mxu1 }
 0x3d8   : > { %v803_v13 = vpop.f32.mrb[10].mxu1 }
 0x3d9   : > { %v2829_v14 = vpop.f32.mrb[11].mxu1 }
 0x3da   : > { %v3351_v16 = vpop.f32.mrb[12].mxu0 }
 0x3db   : > { %v2834_v17 = vpop.f32.mrb[13].mxu0 }
 0x3dc   : > { %v849_v18 = vpop.f32.mrb[14].mxu0 }
 0x3dd   : > { %v2835_v19 = vpop.f32.mrb[15].mxu0 }
 0x3de   : > { %v898_v21 = vpop.f32.mrb[12].mxu1 }
 0x3df   : > { %v956_v22 = vmul.f32 0.35355338, %v898_v21  ;;  %v2840_v23 = vpop.f32.mrb[13].mxu1 }
 0x3e0   : > { %v901_v25 = vpop.f32.mrb[14].mxu1 }
 0x3e1   : > { %v2841_v27 = vpop.f32.mrb[15].mxu1  ;;  %v958_v28 = vsel %vm640_vm2, %v956_v22, -inf }
 0x3e2   : > { %959 = vmax.xlane.f32.xlu0 %v958_v28  ;;  %v950_v29 = vpop.f32.mrb[16].mxu0 }
 0x3e3   : > { %v957_v30 = vmul.f32 0.35355338, %v950_v29  ;;  %v2846_v31 = vpop.f32.mrb[17].mxu0 }
 0x3e4   : > { %v953_v32 = vpop.f32.mrb[18].mxu0 }
 0x3e5   : > { %v2847_v33 = vpop.f32.mrb[19].mxu0  ;;  %v961_v36 = vsel %vm640_vm2, %v957_v30, -inf }
 0x3e6   : > { %962 = vmax.xlane.f32.xlu1 %v961_v36 }
 0x3f7   : > { %1032 = vrot.lane.b32.xlu1 %v3315_v35, %s3159_s23 }
 0x3fb   : > { %1082 = vrot.lane.b32.xlu1 %v3286_v15, %s3160_s26 }
 0x3ff   : > { %1132 = vrot.lane.b32.xlu1 %v3288_v20, %s3160_s26 }
 0x403   : > { %1130 = vrot.lane.b32.xlu1 %v3300_v26, %s3160_s26 }
 0x46f   : > { %v960_v37 = vpop.xlane.xlu0 %959 }
 0x470   : > { %v964_v38 = vsub.f32 %v956_v22, %v960_v37 }
 0x472   : > { %v966_v39 = vmul.f32 1.442695, %v964_v38 }
 0x473   : > { %v963_v40 = vpop.xlane.xlu1 %962 }
 0x474   : > { %3093 = vpow2.f32 %v966_v39  ;;  %v965_v41 = vsub.f32 %v957_v30, %v963_v40 }
 0x476   : > { %v968_v42 = vmul.f32 1.442695, %v965_v41 }
 0x477   : > { %v1033_v43 = vpop.permute.xlu1 %1032 }
 0x478   : > { %3095 = vpow2.f32 %v968_v42  ;;  %v1038_v44 = vsel %vm762_vm3, %v1033_v43, 0 }
 0x479   : > { %2855 = vmatpush3.bf16.msra.mxu0 %v1038_v44 }
 0x47a   : > { %2866 = vmatprep.subr.bf16.mxu0 %v3157_v1 }
 0x47b   : > { %v1083_v54 = vpop.permute.xlu1 %1082 }
 0x47c   : > { %v1088_v60 = vsel %vm640_vm2, %v1083_v54, 0 }
 0x47e   : > { %v3094_v45 = vpop.eup %3093 }
 0x47f   : > { %v970_v46 = vsel %vm640_vm2, %v3094_v45, 0.0  ;;  %v1133_v59 = vpop.permute.xlu1 %1132 }
 0x480   : > { %971 = vadd.xlane.f32.xlu0 %v970_v46  ;;  %v1138_v62 = vsel %vm640_vm2, %v1133_v59, 0 }
 0x482   : > { %v3096_v47 = vpop.eup %3095 }
 0x483   : > { %v973_v48 = vsel %vm640_vm2, %v3096_v47, 0.0  ;;  %v1131_v0 = vpop.permute.xlu1 %1130 }
 0x484   : > { %974 = vadd.xlane.f32.xlu0 %v973_v48 }
 0x49a   : > { %983 = vrot.lane.b32.xlu0 %v3313_v34, %s3159_s23 }
 0x49e   : > { %1080 = vrot.lane.b32.xlu0 %v3297_v24, %s3160_s26 }
 0x50d   : > { %v972_v49 = vpop.xlane.xlu0 %971 }
 0x50e   : > { %3097 = vrcp.f32 %v972_v49 }
 0x511   : > { %v975_v50 = vpop.xlane.xlu0 %974 }
 0x512   : > { %3099 = vrcp.f32 %v975_v50 }
 0x515   : > { %v984_v51 = vpop.permute.xlu0 %983 }
 0x516   : > { %v989_v52 = vsel %vm762_vm3, %v984_v51, 0 }
 0x517   : > { %2849 = vmatpush3.bf16.msra.mxu1 %v989_v52 }
 0x518   : > { %v3098_v53 = vpop.eup %3097  ;;  %2860 = vmatprep.subr.bf16.mxu1 %v3157_v1 }
 0x519   : > { %v978_v55 = vmul.f32 %v3098_v53, %v3094_v45  ;;  %v1081_v63 = vpop.permute.xlu0 %1080 }
 0x51b   : > { %v980_v56 = vpack.c.bf16 %v978_v55, %v978_v55 }
 0x51c   : > { %v3100_v57 = vpop.eup %3099 }
 0x51d   : > { %v979_v58 = vmul.f32 %v3100_v57, %v3096_v47  ;;  %2851 = vmatmul.mubr.msk.bf16.vlgmr.msra.gmra.mrb[16].mxu1 %vm640_vm2, %v980_v56 }
 0x51e   : > { %2862 = vmatprep.mubr.msk.bf16.mxu1 %vm3158_vm0, %v3157_v1 }
 0x51f   : > { %v981_v61 = vpack.c.bf16 %v979_v58, %v979_v58 }
 0x520   : > { %2861 = vmatpush3.bf16.xpose.msra.mxu1 %v1088_v60 }
 0x521   : > { %2857 = vmatmul.mubr.msk.bf16.vlgmr.msra.gmra.mrb[20].mxu0 %vm640_vm2, %v981_v61  ;;  %2872 = vmatprep.subr.bf16.mxu1 %v3157_v1 }
 0x522   : > { %2867 = vmatpush3.bf16.xpose.msra.mxu0 %v1138_v62  ;;  %2868 = vmatprep.mubr.msk.bf16.mxu0 %vm3158_vm0, %v3157_v1 }
 0x523   : > { %2878 = vmatprep.subr.bf16.mxu0 %v3157_v1 }
 0x527   : > { %2863 = vmatmul.mubr.msk.bf16.vlgmr.msra.gmra.mrb[20].mxu1 %vm640_vm2, %v1081_v63 }
 0x528   : > { %2874 = vmatprep.mubr.msk.bf16.mxu1 %vm3158_vm0, %v3157_v1 }
 0x529   : > { %2869 = vmatmul.mubr.msk.bf16.vlgmr.msra.gmra.mrb[24].mxu0 %vm640_vm2, %v1131_v0 }
 0x52a   : > { %2880 = vmatprep.mubr.msk.bf16.mxu0 %vm3158_vm0, %v3157_v1 }
 0x5f0   : > { %v3389_v2 = vpop.f32.mrb[16].mxu1 }
 0x5f1   : > { %v2852_v3 = vpop.f32.mrb[17].mxu1 }
 0x5f2   : > { %v1028_v4 = vpop.f32.mrb[18].mxu1 }
 0x5f3   : > { %v2853_v5 = vpop.f32.mrb[19].mxu1 }
 0x5f4   : > { %v3391_v6 = vpop.f32.mrb[20].mxu0 }
 0x5f5   : > { %v3040_v7 = vpack.i.bf16 %v3391_v6, %v3389_v2  ;;  %v2858_v8 = vpop.f32.mrb[21].mxu0 }
 0x5f6   : > { %v1077_v9 = vpop.f32.mrb[22].mxu0 }
 0x5f7   : > { %v2859_v10 = vpop.f32.mrb[23].mxu0 }
 0x5fa   : > { %v1124_v12 = vpop.f32.mrb[20].mxu1 }
 0x5fb   : > { %v1180_v13 = vmul.f32 0.35355338, %v1124_v12  ;;  %v2864_v14 = vpop.f32.mrb[21].mxu1 }
 0x5fc   : > { %v1127_v17 = vpop.f32.mrb[22].mxu1  ;;  %v1174_v18 = vpop.f32.mrb[24].mxu0 }
 0x5fd   : > { %v1181_v19 = vmul.f32 0.35355338, %v1174_v18  ;;  %v2865_v21 = vpop.f32.mrb[23].mxu1  ;;  %v2870_v22 = vpop.f32.mrb[25].mxu0  ;;  %v1182_v23 = vsel %vm640_vm2, %v1180_v13, -inf }
 0x5fe   : > { %1183 = vmax.xlane.f32.xlu0 %v1182_v23  ;;  %v1177_v25 = vpop.f32.mrb[26].mxu0 }
 0x5ff   : > { %v2871_v27 = vpop.f32.mrb[27].mxu0  ;;  %v1185_v28 = vsel %vm640_vm2, %v1181_v19, -inf }
 0x600   : > { %1186 = vmax.xlane.f32.xlu1 %v1185_v28 }
 0x611   : > { %1254 = vrot.lane.b32.xlu1 %v3315_v35, %s3160_s26 }
 0x615   : > { %1304 = vrot.lane.b32.xlu1 %v3286_v15, %s3161_s27 }
 0x619   : > { %1354 = vrot.lane.b32.xlu1 %v3288_v20, %s3161_s27 }
 0x61d   : > { %1352 = vrot.lane.b32.xlu1 %v3300_v26, %s3161_s27 }
 0x68b   : > { %v1184_v29 = vpop.xlane.xlu0 %1183 }
 0x68c   : > { %v1188_v30 = vsub.f32 %v1180_v13, %v1184_v29 }
 0x68d   : > { %v1187_v31 = vpop.xlane.xlu1 %1186 }
 0x68e   : > { %v1190_v32 = vmul.f32 1.442695, %v1188_v30  ;;  %v1189_v33 = vsub.f32 %v1181_v19, %v1187_v31 }
 0x690   : > { %3101 = vpow2.f32 %v1190_v32  ;;  %v1192_v36 = vmul.f32 1.442695, %v1189_v33 }
 0x691   : > { %v1255_v37 = vpop.permute.xlu1 %1254 }
 0x692   : > { %3103 = vpow2.f32 %v1192_v36  ;;  %v1260_v38 = vsel %vm762_vm3, %v1255_v37, 0 }
 0x693   : > { %2879 = vmatpush3.bf16.msra.mxu0 %v1260_v38 }
 0x694   : > { %2890 = vmatprep.subr.bf16.mxu0 %v3157_v1 }
 0x695   : > { %v1305_v48 = vpop.permute.xlu1 %1304 }
 0x696   : > { %v1310_v54 = vsel %vm640_vm2, %v1305_v48, 0 }
 0x699   : > { %v1355_v53 = vpop.permute.xlu1 %1354 }
 0x69a   : > { %v3102_v39 = vpop.eup %3101  ;;  %v1360_v56 = vsel %vm640_vm2, %v1355_v53, 0 }
 0x69b   : > { %v1194_v40 = vsel %vm640_vm2, %v3102_v39, 0.0 }
 0x69c   : > { %v3104_v41 = vpop.eup %3103  ;;  %1195 = vadd.xlane.f32.xlu0 %v1194_v40 }
 0x69d   : > { %v1197_v42 = vsel %vm640_vm2, %v3104_v41, 0.0  ;;  %v1353_v58 = vpop.permute.xlu1 %1352 }
 0x6a0   : > { %1198 = vadd.xlane.f32.xlu0 %v1197_v42 }
 0x6b6   : > { %1206 = vrot.lane.b32.xlu0 %v3313_v34, %s3160_s26 }
 0x6ba   : > { %1302 = vrot.lane.b32.xlu0 %v3297_v24, %s3161_s27 }
 0x729   : > { %v1196_v43 = vpop.xlane.xlu0 %1195 }
 0x72a   : > { %3105 = vrcp.f32 %v1196_v43 }
 0x72d   : > { %v1199_v44 = vpop.xlane.xlu0 %1198 }
 0x72e   : > { %3107 = vrcp.f32 %v1199_v44 }
 0x731   : > { %v1207_v45 = vpop.permute.xlu0 %1206 }
 0x732   : > { %v1212_v46 = vsel %vm762_vm3, %v1207_v45, 0 }
 0x733   : > { %2873 = vmatpush3.bf16.msra.mxu1 %v1212_v46 }
 0x734   : > { %v3106_v47 = vpop.eup %3105  ;;  %2884 = vmatprep.subr.bf16.mxu1 %v3157_v1 }
 0x735   : > { %v1202_v49 = vmul.f32 %v3106_v47, %v3102_v39  ;;  %v1303_v57 = vpop.permute.xlu0 %1302 }
 0x737   : > { %v1204_v50 = vpack.c.bf16 %v1202_v49, %v1202_v49 }
 0x738   : > { %v3108_v51 = vpop.eup %3107 }
 0x739   : > { %v1203_v52 = vmul.f32 %v3108_v51, %v3104_v41  ;;  %2875 = vmatmul.mubr.msk.bf16.vlgmr.msra.gmra.mrb[24].mxu1 %vm640_vm2, %v1204_v50 }
 0x73a   : > { %2886 = vmatprep.mubr.msk.bf16.mxu1 %vm3158_vm0, %v3157_v1 }
 0x73b   : > { %v1205_v55 = vpack.c.bf16 %v1203_v52, %v1203_v52 }
 0x73c   : > { %2885 = vmatpush3.bf16.xpose.msra.mxu1 %v1310_v54 }
 0x73d   : > { %2881 = vmatmul.mubr.msk.bf16.vlgmr.msra.gmra.mrb[28].mxu0 %vm640_vm2, %v1205_v55  ;;  %2896 = vmatprep.subr.bf16.mxu1 %v3157_v1 }
 0x73e   : > { %2891 = vmatpush3.bf16.xpose.msra.mxu0 %v1360_v56  ;;  %2892 = vmatprep.mubr.msk.bf16.mxu0 %vm3158_vm0, %v3157_v1 }
 0x73f   : > { %2902 = vmatprep.subr.bf16.mxu0 %v3157_v1 }
 0x743   : > { %2887 = vmatmul.mubr.msk.bf16.vlgmr.msra.gmra.mrb[28].mxu1 %vm640_vm2, %v1303_v57 }
 0x744   : > { %2898 = vmatprep.mubr.msk.bf16.mxu1 %vm3158_vm0, %v3157_v1 }
 0x745   : > { %2893 = vmatmul.mubr.msk.bf16.vlgmr.msra.gmra.mrb[32].mxu0 %vm640_vm2, %v1353_v58 }
 0x746   : > { %2904 = vmatprep.mubr.msk.bf16.mxu0 %vm3158_vm0, %v3157_v1 }
 0x80c   : > { %v3431_v59 = vpop.f32.mrb[24].mxu1 }
 0x80d   : > { %v2876_v60 = vpop.f32.mrb[25].mxu1 }
 0x80e   : > { %v1251_v61 = vpop.f32.mrb[26].mxu1 }
 0x80f   : > { %v2877_v62 = vpop.f32.mrb[27].mxu1 }
 0x810   : > { %v3433_v63 = vpop.f32.mrb[28].mxu0 }
 0x811   : > { %v3045_v0 = vpack.i.bf16 %v3433_v63, %v3431_v59  ;;  %v2882_v3 = vpop.f32.mrb[29].mxu0 }
 0x812   : > { %v1299_v4 = vpop.f32.mrb[30].mxu0 }
 0x813   : > { %v2883_v5 = vpop.f32.mrb[31].mxu0 }
 0x816   : > { %v1346_v8 = vpop.f32.mrb[28].mxu1 }
 0x817   : > { %v1402_v9 = vmul.f32 0.35355338, %v1346_v8  ;;  %v2888_v10 = vpop.f32.mrb[29].mxu1 }
 0x818   : > { %v1349_v12 = vpop.f32.mrb[30].mxu1  ;;  %v1396_v13 = vpop.f32.mrb[32].mxu0 }
 0x819   : > { %v1403_v14 = vmul.f32 0.35355338, %v1396_v13  ;;  %v2889_v17 = vpop.f32.mrb[31].mxu1  ;;  %v2894_v18 = vpop.f32.mrb[33].mxu0  ;;  %v1404_v19 = vsel %vm640_vm2, %v1402_v9, -inf }
 0x81a   : > { %1405 = vmax.xlane.f32.xlu0 %v1404_v19  ;;  %v1399_v21 = vpop.f32.mrb[34].mxu0 }
 0x81b   : > { %v2895_v22 = vpop.f32.mrb[35].mxu0  ;;  %v1407_v23 = vsel %vm640_vm2, %v1403_v14, -inf }
 0x81c   : > { %1408 = vmax.xlane.f32.xlu1 %v1407_v23 }
 0x82d   : > { %1476 = vrot.lane.b32.xlu1 %v3315_v35, %s3161_s27 }
 0x831   : > { %1526 = vrot.lane.b32.xlu1 %v3286_v15, %s3162_s28 }
 0x835   : > { %1576 = vrot.lane.b32.xlu1 %v3288_v20, %s3162_s28 }
 0x839   : > { %1574 = vrot.lane.b32.xlu1 %v3300_v26, %s3162_s28 }
 0x8a7   : > { %v1406_v25 = vpop.xlane.xlu0 %1405 }
 0x8a8   : > { %v1410_v27 = vsub.f32 %v1402_v9, %v1406_v25 }
 0x8a9   : > { %v1409_v28 = vpop.xlane.xlu1 %1408 }
 0x8aa   : > { %v1412_v29 = vmul.f32 1.442695, %v1410_v27  ;;  %v1411_v30 = vsub.f32 %v1403_v14, %v1409_v28 }
 0x8ac   : > { %3109 = vpow2.f32 %v1412_v29  ;;  %v1414_v31 = vmul.f32 1.442695, %v1411_v30 }
 0x8ad   : > { %v1477_v32 = vpop.permute.xlu1 %1476 }
 0x8ae   : > { %3111 = vpow2.f32 %v1414_v31  ;;  %v1482_v33 = vsel %vm762_vm3, %v1477_v32, 0 }
 0x8af   : > { %2903 = vmatpush3.bf16.msra.mxu0 %v1482_v33 }
 0x8b0   : > { %2914 = vmatprep.subr.bf16.mxu0 %v3157_v1 }
 0x8b1   : > { %v1527_v45 = vpop.permute.xlu1 %1526 }
 0x8b2   : > { %v1532_v51 = vsel %vm640_vm2, %v1527_v45, 0 }
 0x8b5   : > { %v1577_v50 = vpop.permute.xlu1 %1576 }
 0x8b6   : > { %v3110_v36 = vpop.eup %3109  ;;  %v1582_v53 = vsel %vm640_vm2, %v1577_v50, 0 }
 0x8b7   : > { %v1416_v37 = vsel %vm640_vm2, %v3110_v36, 0.0 }
 0x8b8   : > { %v3112_v38 = vpop.eup %3111  ;;  %1417 = vadd.xlane.f32.xlu0 %v1416_v37 }
 0x8b9   : > { %v1419_v39 = vsel %vm640_vm2, %v3112_v38, 0.0  ;;  %v1575_v55 = vpop.permute.xlu1 %1574 }
 0x8bc   : > { %1420 = vadd.xlane.f32.xlu0 %v1419_v39 }
 0x8d2   : > { %1428 = vrot.lane.b32.xlu0 %v3313_v34, %s3161_s27 }
 0x8d6   : > { %1524 = vrot.lane.b32.xlu0 %v3297_v24, %s3162_s28 }
 0x945   : > { %v1418_v40 = vpop.xlane.xlu0 %1417 }
 0x946   : > { %3113 = vrcp.f32 %v1418_v40 }
 0x949   : > { %v1421_v41 = vpop.xlane.xlu0 %1420 }
 0x94a   : > { %3115 = vrcp.f32 %v1421_v41 }
 0x94d   : > { %v1429_v42 = vpop.permute.xlu0 %1428 }
 0x94e   : > { %v1434_v43 = vsel %vm762_vm3, %v1429_v42, 0 }
 0x94f   : > { %2897 = vmatpush3.bf16.msra.mxu1 %v1434_v43 }
 0x950   : > { %v3114_v44 = vpop.eup %3113  ;;  %2908 = vmatprep.subr.bf16.mxu1 %v3157_v1 }
 0x951   : > { %v1424_v46 = vmul.f32 %v3114_v44, %v3110_v36  ;;  %v1525_v54 = vpop.permute.xlu0 %1524 }
 0x953   : > { %v1426_v47 = vpack.c.bf16 %v1424_v46, %v1424_v46 }
 0x954   : > { %v3116_v48 = vpop.eup %3115 }
 0x955   : > { %v1425_v49 = vmul.f32 %v3116_v48, %v3112_v38  ;;  %2899 = vmatmul.mubr.msk.bf16.vlgmr.msra.gmra.mrb[32].mxu1 %vm640_vm2, %v1426_v47 }
 0x956   : > { %2910 = vmatprep.mubr.msk.bf16.mxu1 %vm3158_vm0, %v3157_v1 }
 0x957   : > { %v1427_v52 = vpack.c.bf16 %v1425_v49, %v1425_v49 }
 0x958   : > { %2909 = vmatpush3.bf16.xpose.msra.mxu1 %v1532_v51 }
 0x959   : > { %2905 = vmatmul.mubr.msk.bf16.vlgmr.msra.gmra.mrb[36].mxu0 %vm640_vm2, %v1427_v52  ;;  %2920 = vmatprep.subr.bf16.mxu1 %v3157_v1 }
 0x95a   : > { %2915 = vmatpush3.bf16.xpose.msra.mxu0 %v1582_v53  ;;  %2916 = vmatprep.mubr.msk.bf16.mxu0 %vm3158_vm0, %v3157_v1 }
 0x95b   : > { %2926 = vmatprep.subr.bf16.mxu0 %v3157_v1 }
 0x95f   : > { %2911 = vmatmul.mubr.msk.bf16.vlgmr.msra.gmra.mrb[36].mxu1 %vm640_vm2, %v1525_v54 }
 0x960   : > { %2922 = vmatprep.mubr.msk.bf16.mxu1 %vm3158_vm0, %v3157_v1 }
 0x961   : > { %2917 = vmatmul.mubr.msk.bf16.vlgmr.msra.gmra.mrb[40].mxu0 %vm640_vm2, %v1575_v55 }
 0x962   : > { %2928 = vmatprep.mubr.msk.bf16.mxu0 %vm3158_vm0, %v3157_v1 }
 0xa28   : > { %v3473_v56 = vpop.f32.mrb[32].mxu1 }
 0xa29   : > { %v2900_v57 = vpop.f32.mrb[33].mxu1 }
 0xa2a   : > { %v1473_v58 = vpop.f32.mrb[34].mxu1 }
 0xa2b   : > { %v2901_v60 = vpop.f32.mrb[35].mxu1 }
 0xa2c   : > { %v3475_v61 = vpop.f32.mrb[36].mxu0 }
 0xa2d   : > { %v3050_v62 = vpack.i.bf16 %v3475_v61, %v3473_v56  ;;  %v2906_v3 = vpop.f32.mrb[37].mxu0 }
 0xa2e   : > { %v1521_v4 = vpop.f32.mrb[38].mxu0 }
 0xa2f   : > { %v2907_v5 = vpop.f32.mrb[39].mxu0 }
 0xa32   : > { %v1568_v8 = vpop.f32.mrb[36].mxu1 }
 0xa33   : > { %v1624_v9 = vmul.f32 0.35355338, %v1568_v8  ;;  %v2912_v10 = vpop.f32.mrb[37].mxu1 }
 0xa34   : > { %v1571_v12 = vpop.f32.mrb[38].mxu1  ;;  %v1618_v13 = vpop.f32.mrb[40].mxu0 }
 0xa35   : > { %v1625_v14 = vmul.f32 0.35355338, %v1618_v13  ;;  %v2913_v17 = vpop.f32.mrb[39].mxu1  ;;  %v2918_v18 = vpop.f32.mrb[41].mxu0  ;;  %v1626_v19 = vsel %vm640_vm2, %v1624_v9, -inf }
 0xa36   : > { %1627 = vmax.xlane.f32.xlu0 %v1626_v19  ;;  %v1621_v21 = vpop.f32.mrb[42].mxu0 }
 0xa37   : > { %v2919_v22 = vpop.f32.mrb[43].mxu0  ;;  %v1629_v23 = vsel %vm640_vm2, %v1625_v14, -inf }
 0xa38   : > { %1630 = vmax.xlane.f32.xlu1 %v1629_v23 }
 0xa49   : > { %1698 = vrot.lane.b32.xlu1 %v3315_v35, %s3162_s28 }
 0xa4d   : > { %1748 = vrot.lane.b32.xlu1 %v3286_v15, %s3163_s29 }
 0xa51   : > { %1798 = vrot.lane.b32.xlu1 %v3288_v20, %s3163_s29 }
 0xa55   : > { %1796 = vrot.lane.b32.xlu1 %v3300_v26, %s3163_s29 }
 0xac3   : > { %v1628_v25 = vpop.xlane.xlu0 %1627 }
 0xac4   : > { %v1632_v27 = vsub.f32 %v1624_v9, %v1628_v25 }
 0xac5   : > { %v1631_v28 = vpop.xlane.xlu1 %1630 }
 0xac6   : > { %v1634_v29 = vmul.f32 1.442695, %v1632_v27  ;;  %v1633_v30 = vsub.f32 %v1625_v14, %v1631_v28 }
 0xac8   : > { %3117 = vpow2.f32 %v1634_v29  ;;  %v1636_v31 = vmul.f32 1.442695, %v1633_v30 }
 0xac9   : > { %v1699_v32 = vpop.permute.xlu1 %1698 }
 0xaca   : > { %3119 = vpow2.f32 %v1636_v31  ;;  %v1704_v33 = vsel %vm762_vm3, %v1699_v32, 0 }
 0xacb   : > { %2927 = vmatpush3.bf16.msra.mxu0 %v1704_v33 }
 0xacc   : > { %2938 = vmatprep.subr.bf16.mxu0 %v3157_v1 }
 0xacd   : > { %v1749_v45 = vpop.permute.xlu1 %1748 }
 0xace   : > { %v1754_v51 = vsel %vm640_vm2, %v1749_v45, 0 }
 0xad1   : > { %v1799_v50 = vpop.permute.xlu1 %1798 }
 0xad2   : > { %v3118_v36 = vpop.eup %3117  ;;  %v1804_v53 = vsel %vm640_vm2, %v1799_v50, 0 }
 0xad3   : > { %v1638_v37 = vsel %vm640_vm2, %v3118_v36, 0.0 }
 0xad4   : > { %v3120_v38 = vpop.eup %3119  ;;  %1639 = vadd.xlane.f32.xlu0 %v1638_v37 }
 0xad5   : > { %v1641_v39 = vsel %vm640_vm2, %v3120_v38, 0.0  ;;  %v1797_v55 = vpop.permute.xlu1 %1796 }
 0xad8   : > { %1642 = vadd.xlane.f32.xlu0 %v1641_v39 }
 0xaee   : > { %1650 = vrot.lane.b32.xlu0 %v3313_v34, %s3162_s28 }
 0xaf2   : > { %1746 = vrot.lane.b32.xlu0 %v3297_v24, %s3163_s29 }
 0xb61   : > { %v1640_v40 = vpop.xlane.xlu0 %1639 }
 0xb62   : > { %3121 = vrcp.f32 %v1640_v40 }
 0xb65   : > { %v1643_v41 = vpop.xlane.xlu0 %1642 }
 0xb66   : > { %3123 = vrcp.f32 %v1643_v41 }
 0xb69   : > { %v1651_v42 = vpop.permute.xlu0 %1650 }
 0xb6a   : > { %v1656_v43 = vsel %vm762_vm3, %v1651_v42, 0 }
 0xb6b   : > { %2921 = vmatpush3.bf16.msra.mxu1 %v1656_v43 }
 0xb6c   : > { %v3122_v44 = vpop.eup %3121  ;;  %2932 = vmatprep.subr.bf16.mxu1 %v3157_v1 }
 0xb6d   : > { %v1646_v46 = vmul.f32 %v3122_v44, %v3118_v36  ;;  %v1747_v54 = vpop.permute.xlu0 %1746 }
 0xb6f   : > { %v1648_v47 = vpack.c.bf16 %v1646_v46, %v1646_v46 }
 0xb70   : > { %v3124_v48 = vpop.eup %3123 }
 0xb71   : > { %v1647_v49 = vmul.f32 %v3124_v48, %v3120_v38  ;;  %2923 = vmatmul.mubr.msk.bf16.vlgmr.msra.gmra.mrb[40].mxu1 %vm640_vm2, %v1648_v47 }
 0xb72   : > { %2934 = vmatprep.mubr.msk.bf16.mxu1 %vm3158_vm0, %v3157_v1 }
 0xb73   : > { %v1649_v52 = vpack.c.bf16 %v1647_v49, %v1647_v49 }
 0xb74   : > { %2933 = vmatpush3.bf16.xpose.msra.mxu1 %v1754_v51 }
 0xb75   : > { %2929 = vmatmul.mubr.msk.bf16.vlgmr.msra.gmra.mrb[44].mxu0 %vm640_vm2, %v1649_v52  ;;  %2944 = vmatprep.subr.bf16.mxu1 %v3157_v1 }
 0xb76   : > { %2939 = vmatpush3.bf16.xpose.msra.mxu0 %v1804_v53  ;;  %2940 = vmatprep.mubr.msk.bf16.mxu0 %vm3158_vm0, %v3157_v1 }
 0xb77   : > { %2950 = vmatprep.subr.bf16.mxu0 %v3157_v1 }
 0xb7b   : > { %2935 = vmatmul.mubr.msk.bf16.vlgmr.msra.gmra.mrb[44].mxu1 %vm640_vm2, %v1747_v54 }
 0xb7c   : > { %2946 = vmatprep.mubr.msk.bf16.mxu1 %vm3158_vm0, %v3157_v1 }
 0xb7d   : > { %2941 = vmatmul.mubr.msk.bf16.vlgmr.msra.gmra.mrb[48].mxu0 %vm640_vm2, %v1797_v55 }
 0xb7e   : > { %2952 = vmatprep.mubr.msk.bf16.mxu0 %vm3158_vm0, %v3157_v1 }
 0xc44   : > { %v3515_v57 = vpop.f32.mrb[40].mxu1 }
 0xc45   : > { %v2924_v58 = vpop.f32.mrb[41].mxu1 }
 0xc46   : > { %v1695_v60 = vpop.f32.mrb[42].mxu1 }
 0xc47   : > { %v2925_v3 = vpop.f32.mrb[43].mxu1 }
 0xc48   : > { %v3517_v4 = vpop.f32.mrb[44].mxu0 }
 0xc49   : > { %v3055_v5 = vpack.i.bf16 %v3517_v4, %v3515_v57  ;;  %v2930_v8 = vpop.f32.mrb[45].mxu0 }
 0xc4a   : > { %v1743_v9 = vpop.f32.mrb[46].mxu0 }
 0xc4b   : > { %v2931_v10 = vpop.f32.mrb[47].mxu0 }
 0xc4e   : > { %v1790_v12 = vpop.f32.mrb[44].mxu1 }
 0xc4f   : > { %v1846_v13 = vmul.f32 0.35355338, %v1790_v12  ;;  %v2936_v14 = vpop.f32.mrb[45].mxu1 }
 0xc50   : > { %v1793_v17 = vpop.f32.mrb[46].mxu1  ;;  %v1840_v18 = vpop.f32.mrb[48].mxu0 }
 0xc51   : > { %v1847_v19 = vmul.f32 0.35355338, %v1840_v18  ;;  %v2937_v21 = vpop.f32.mrb[47].mxu1  ;;  %v2942_v22 = vpop.f32.mrb[49].mxu0  ;;  %v1848_v23 = vsel %vm640_vm2, %v1846_v13, -inf }
 0xc52   : > { %1849 = vmax.xlane.f32.xlu0 %v1848_v23  ;;  %v1843_v25 = vpop.f32.mrb[50].mxu0 }
 0xc53   : > { %v2943_v27 = vpop.f32.mrb[51].mxu0  ;;  %v1851_v28 = vsel %vm640_vm2, %v1847_v19, -inf }
 0xc54   : > { %1852 = vmax.xlane.f32.xlu1 %v1851_v28 }
 0xc65   : > { %1920 = vrot.lane.b32.xlu1 %v3315_v35, %s3163_s29 }
 0xc69   : > { %1970 = vrot.lane.b32.xlu1 %v3286_v15, %s3164_s30 }
 0xc6d   : > { %2020 = vrot.lane.b32.xlu1 %v3288_v20, %s3164_s30 }
 0xc71   : > { %2018 = vrot.lane.b32.xlu1 %v3300_v26, %s3164_s30 }
 0xcdf   : > { %v1850_v29 = vpop.xlane.xlu0 %1849 }
 0xce0   : > { %v1854_v30 = vsub.f32 %v1846_v13, %v1850_v29 }
 0xce1   : > { %v1853_v31 = vpop.xlane.xlu1 %1852 }
 0xce2   : > { %v1856_v32 = vmul.f32 1.442695, %v1854_v30  ;;  %v1855_v33 = vsub.f32 %v1847_v19, %v1853_v31 }
 0xce4   : > { %3125 = vpow2.f32 %v1856_v32  ;;  %v1858_v36 = vmul.f32 1.442695, %v1855_v33 }
 0xce5   : > { %v1921_v37 = vpop.permute.xlu1 %1920 }
 0xce6   : > { %3127 = vpow2.f32 %v1858_v36  ;;  %v1926_v38 = vsel %vm762_vm3, %v1921_v37, 0 }
 0xce7   : > { %2951 = vmatpush3.bf16.msra.mxu0 %v1926_v38 }
 0xce8   : > { %2962 = vmatprep.subr.bf16.mxu0 %v3157_v1 }
 0xce9   : > { %v1971_v48 = vpop.permute.xlu1 %1970 }
 0xcea   : > { %v1976_v54 = vsel %vm640_vm2, %v1971_v48, 0 }
 0xced   : > { %v2021_v53 = vpop.permute.xlu1 %2020 }
 0xcee   : > { %v3126_v39 = vpop.eup %3125  ;;  %v2026_v58 = vsel %vm640_vm2, %v2021_v53, 0 }
 0xcef   : > { %v1860_v40 = vsel %vm640_vm2, %v3126_v39, 0.0 }
 0xcf0   : > { %v3128_v41 = vpop.eup %3127  ;;  %1861 = vadd.xlane.f32.xlu0 %v1860_v40 }
 0xcf1   : > { %v1863_v42 = vsel %vm640_vm2, %v3128_v41, 0.0  ;;  %v2019_v3 = vpop.permute.xlu1 %2018 }
 0xcf4   : > { %1864 = vadd.xlane.f32.xlu0 %v1863_v42 }
 0xd0a   : > { %1872 = vrot.lane.b32.xlu0 %v3313_v34, %s3163_s29  ;;  %s3172_s29 = smov 56  }
 0xd0e   : > { %1968 = vrot.lane.b32.xlu0 %v3297_v24, %s3164_s30 }
 0xd7d   : > { %v1862_v43 = vpop.xlane.xlu0 %1861 }
 0xd7e   : > { %3129 = vrcp.f32 %v1862_v43 }
 0xd81   : > { %v1865_v44 = vpop.xlane.xlu0 %1864 }
 0xd82   : > { %3131 = vrcp.f32 %v1865_v44 }
 0xd85   : > { %v1873_v45 = vpop.permute.xlu0 %1872 }
 0xd86   : > { %v1878_v46 = vsel %vm762_vm3, %v1873_v45, 0 }
 0xd87   : > { %2945 = vmatpush3.bf16.msra.mxu1 %v1878_v46 }
 0xd88   : > { %v3130_v47 = vpop.eup %3129  ;;  %2956 = vmatprep.subr.bf16.mxu1 %v3157_v1 }
 0xd89   : > { %v1868_v49 = vmul.f32 %v3130_v47, %v3126_v39  ;;  %v1969_v60 = vpop.permute.xlu0 %1968 }
 0xd8b   : > { %v1870_v50 = vpack.c.bf16 %v1868_v49, %v1868_v49 }
 0xd8c   : > { %v3132_v51 = vpop.eup %3131 }
 0xd8d   : > { %v1869_v52 = vmul.f32 %v3132_v51, %v3128_v41  ;;  %2947 = vmatmul.mubr.msk.bf16.vlgmr.msra.gmra.mrb[48].mxu1 %vm640_vm2, %v1870_v50 }
 0xd8e   : > { %2958 = vmatprep.mubr.msk.bf16.mxu1 %vm3158_vm0, %v3157_v1 }
 0xd8f   : > { %v1871_v55 = vpack.c.bf16 %v1869_v52, %v1869_v52 }
 0xd90   : > { %2957 = vmatpush3.bf16.xpose.msra.mxu1 %v1976_v54 }
 0xd91   : > { %2953 = vmatmul.mubr.msk.bf16.vlgmr.msra.gmra.mrb[52].mxu0 %vm640_vm2, %v1871_v55  ;;  %2968 = vmatprep.subr.bf16.mxu1 %v3157_v1 }
 0xd92   : > { %2963 = vmatpush3.bf16.xpose.msra.mxu0 %v2026_v58  ;;  %2964 = vmatprep.mubr.msk.bf16.mxu0 %vm3158_vm0, %v3157_v1 }
 0xd93   : > { %2974 = vmatprep.subr.bf16.mxu0 %v3157_v1 }
 0xd97   : > { %2959 = vmatmul.mubr.msk.bf16.vlgmr.msra.gmra.mrb[52].mxu1 %vm640_vm2, %v1969_v60 }
 0xd98   : > { %2970 = vmatprep.mubr.msk.bf16.mxu1 %vm3158_vm0, %v3157_v1 }
 0xd99   : > { %2965 = vmatmul.mubr.msk.bf16.vlgmr.msra.gmra.mrb[56].mxu0 %vm640_vm2, %v2019_v3 }
 0xd9a   : > { %2976 = vmatprep.mubr.msk.bf16.mxu0 %vm3158_vm0, %v3157_v1 }
 0xe60   : > { %v3557_v8 = vpop.f32.mrb[48].mxu1 }
 0xe61   : > { %v2948_v9 = vpop.f32.mrb[49].mxu1 }
 0xe62   : > { %v1917_v10 = vpop.f32.mrb[50].mxu1 }
 0xe63   : > { %v2949_v12 = vpop.f32.mrb[51].mxu1 }
 0xe64   : > { %v3559_v13 = vpop.f32.mrb[52].mxu0 }
 0xe65   : > { %v3060_v14 = vpack.i.bf16 %v3559_v13, %v3557_v8  ;;  %v2954_v17 = vpop.f32.mrb[53].mxu0  ;;  %v3081_v8 = vld [vmem:[%s3671_s9] sm:$0xff]   ;;  %v3082_v13 = vld [vmem:[%s3671_s9 + $0x8] sm:$0xff]  }
 0xe66   : > { %v1965_v18 = vpop.f32.mrb[54].mxu0 }
 0xe67   : > { %v2955_v19 = vpop.f32.mrb[55].mxu0 }
 0xe6a   : > { %v2012_v21 = vpop.f32.mrb[52].mxu1 }
 0xe6b   : > { %v2068_v22 = vmul.f32 0.35355338, %v2012_v21  ;;  %v2960_v23 = vpop.f32.mrb[53].mxu1 }
 0xe6c   : > { %v2015_v25 = vpop.f32.mrb[54].mxu1  ;;  %v2062_v27 = vpop.f32.mrb[56].mxu0 }
 0xe6d   : > { %v2069_v28 = vmul.f32 0.35355338, %v2062_v27  ;;  %v2961_v29 = vpop.f32.mrb[55].mxu1  ;;  %v2966_v30 = vpop.f32.mrb[57].mxu0  ;;  %v2070_v31 = vsel %vm640_vm2, %v2068_v22, -inf }
 0xe6e   : > { %2071 = vmax.xlane.f32.xlu0 %v2070_v31  ;;  %v2065_v32 = vpop.f32.mrb[58].mxu0 }
 0xe6f   : > { %v2967_v33 = vpop.f32.mrb[59].mxu0  ;;  %v2073_v36 = vsel %vm640_vm2, %v2069_v28, -inf }
 0xe70   : > { %2074 = vmax.xlane.f32.xlu1 %v2073_v36 }
 0xe81   : > { %2142 = vrot.lane.b32.xlu1 %v3315_v35, %s3164_s30 }
 0xe85   : > { %2192 = vrot.lane.b32.xlu1 %v3286_v15, %s3165_s12 }
 0xe89   : > { %2242 = vrot.lane.b32.xlu1 %v3288_v20, %s3165_s12 }
 0xe8d   : > { %2240 = vrot.lane.b32.xlu1 %v3300_v26, %s3165_s12 }
 0xefb   : > { %v2072_v37 = vpop.xlane.xlu0 %2071 }
 0xefc   : > { %v2076_v38 = vsub.f32 %v2068_v22, %v2072_v37 }
 0xefd   : > { %v2075_v39 = vpop.xlane.xlu1 %2074 }
 0xefe   : > { %v2078_v40 = vmul.f32 1.442695, %v2076_v38  ;;  %v2077_v41 = vsub.f32 %v2069_v28, %v2075_v39 }
 0xf00   : > { %3133 = vpow2.f32 %v2078_v40  ;;  %v2080_v42 = vmul.f32 1.442695, %v2077_v41 }
 0xf01   : > { %v2143_v43 = vpop.permute.xlu1 %2142 }
 0xf02   : > { %3135 = vpow2.f32 %v2080_v42  ;;  %v2148_v44 = vsel %vm762_vm3, %v2143_v43, 0 }
 0xf03   : > { %2975 = vmatpush3.bf16.msra.mxu0 %v2148_v44 }
 0xf04   : > { %2986 = vmatprep.subr.bf16.mxu0 %v3157_v1 }
 0xf05   : > { %v2193_v51 = vpop.permute.xlu1 %2192 }
 0xf09   : > { %v2243_v58 = vpop.permute.xlu1 %2242 }
 0xf0a   : > { %v3134_v15 = vpop.eup %3133  ;;  %v2248_v3 = vsel %vm640_vm2, %v2243_v58, 0 }
 0xf0b   : > { %v2082_v20 = vsel %vm640_vm2, %v3134_v15, 0.0 }
 0xf0c   : > { %v3136_v45 = vpop.eup %3135  ;;  %2083 = vadd.xlane.f32.xlu0 %v2082_v20 }
 0xf0d   : > { %v2085_v26 = vsel %vm640_vm2, %v3136_v45, 0.0  ;;  %v2241_v10 = vpop.permute.xlu1 %2240 }
 0xf10   : > { %2086 = vadd.xlane.f32.xlu0 %v2085_v26 }
 0xf26   : > { %2094 = vrot.lane.b32.xlu0 %v3313_v34, %s3164_s30  ;;  %s2666_s30 = sshll.u32 %s3675_s21, 3 }
 0xf2a   : > { %2190 = vrot.lane.b32.xlu0 %v3297_v24, %s3165_s12  ;;  %v2198_v24 = vsel %vm640_vm2, %v2193_v51, 0 }
 0xf99   : > { %v2084_v46 = vpop.xlane.xlu0 %2083 }
 0xf9a   : > { %3137 = vrcp.f32 %v2084_v46 }
 0xf9d   : > { %v2087_v47 = vpop.xlane.xlu0 %2086 }
 0xf9e   : > { %3139 = vrcp.f32 %v2087_v47  ;;  %v3084_v47 = vld [vmem:[%s3671_s9 + $0x18] sm:$0xff]  }
 0xfa1   : > { %v2095_v48 = vpop.permute.xlu0 %2094 }
 0xfa2   : > { %v2100_v49 = vsel %vm762_vm3, %v2095_v48, 0 }
 0xfa3   : > { %2969 = vmatpush3.bf16.msra.mxu1 %v2100_v49 }
 0xfa4   : > { %v3138_v50 = vpop.eup %3137  ;;  %2980 = vmatprep.subr.bf16.mxu1 %v3157_v1 }
 0xfa5   : > { %v2090_v52 = vmul.f32 %v3138_v50, %v3134_v15  ;;  %v2191_v9 = vpop.permute.xlu0 %2190 }
 0xfa7   : > { %v2092_v53 = vpack.c.bf16 %v2090_v52, %v2090_v52 }
 0xfa8   : > { %v3140_v54 = vpop.eup %3139 }
 0xfa9   : > { %v2091_v55 = vmul.f32 %v3140_v54, %v3136_v45  ;;  %2971 = vmatmul.mubr.msk.bf16.vlgmr.msra.gmra.mrb[56].mxu1 %vm640_vm2, %v2092_v53 }
 0xfaa   : > { %2982 = vmatprep.mubr.msk.bf16.mxu1 %vm3158_vm0, %v3157_v1 }
 0xfab   : > { %v2093_v60 = vpack.c.bf16 %v2091_v55, %v2091_v55 }
 0xfac   : > { %2981 = vmatpush3.bf16.xpose.msra.mxu1 %v2198_v24 }
 0xfad   : > { %2977 = vmatmul.mubr.msk.bf16.vlgmr.msra.gmra.mrb[60].mxu0 %vm640_vm2, %v2093_v60  ;;  %2992 = vmatprep.subr.bf16.mxu1 %v3157_v1 }
 0xfae   : > { %2987 = vmatpush3.bf16.xpose.msra.mxu0 %v2248_v3  ;;  %2988 = vmatprep.mubr.msk.bf16.mxu0 %vm3158_vm0, %v3157_v1 }
 0xfaf   : > { %2998 = vmatprep.subr.bf16.mxu0 %v3157_v1 }
 0xfb3   : > { %2983 = vmatmul.mubr.msk.bf16.vlgmr.msra.gmra.mrb[60].mxu1 %vm640_vm2, %v2191_v9 }
 0xfb4   : > { %2994 = vmatprep.mubr.msk.bf16.mxu1 %vm3158_vm0, %v3157_v1 }
 0xfb5   : > { %2989 = vmatmul.mubr.msk.bf16.vlgmr.msra.gmra.mrb[64].mxu0 %vm640_vm2, %v2241_v10 }
 0xfb6   : > { %3000 = vmatprep.mubr.msk.bf16.mxu0 %vm3158_vm0, %v3157_v1 }
0x107c   : > { %v2136_v12 = vpop.f32.mrb[56].mxu1 }
0x107d   : > { %v2972_v17 = vpop.f32.mrb[57].mxu1 }
0x107e   : > { %v2139_v18 = vpop.f32.mrb[58].mxu1 }
0x107f   : > { %v2973_v19 = vpop.f32.mrb[59].mxu1 }
0x1080   : > { %v2184_v21 = vpop.f32.mrb[60].mxu0 }
0x1081   : > { %v3065_v22 = vpack.i.bf16 %v2184_v21, %v2136_v12  ;;  %v2978_v23 = vpop.f32.mrb[61].mxu0 }
0x1082   : > { %v2187_v25 = vpop.f32.mrb[62].mxu0 }
0x1083   : > { %v2979_v27 = vpop.f32.mrb[63].mxu0 }
0x1086   : > { %v2234_v28 = vpop.f32.mrb[60].mxu1 }
0x1087   : > { %v2290_v29 = vmul.f32 0.35355338, %v2234_v28  ;;  %v2984_v30 = vpop.f32.mrb[61].mxu1 }
0x1088   : > { %v2237_v31 = vpop.f32.mrb[62].mxu1  ;;  %v2284_v32 = vpop.f32.mrb[64].mxu0 }
0x1089   : > { %v2291_v33 = vmul.f32 0.35355338, %v2284_v32  ;;  %v2985_v36 = vpop.f32.mrb[63].mxu1  ;;  %v2990_v37 = vpop.f32.mrb[65].mxu0  ;;  %v2292_v38 = vsel %vm640_vm2, %v2290_v29, -inf }
0x108a   : > { %2293 = vmax.xlane.f32.xlu0 %v2292_v38  ;;  %v2287_v39 = vpop.f32.mrb[66].mxu0 }
0x108b   : > { %v2991_v40 = vpop.f32.mrb[67].mxu0  ;;  %v2295_v41 = vsel %vm640_vm2, %v2291_v33, -inf }
0x108c   : > { %2296 = vmax.xlane.f32.xlu1 %v2295_v41 }
0x109d   : > { %2364 = vrot.lane.b32.xlu1 %v3315_v35, %s3165_s12 }
0x10a1   : > { %3041 = vrot.lane.b32.xlu1 %v3040_v7, %s3166_s13 }
0x10a5   : > { %3046 = vrot.lane.b32.xlu1 %v3045_v0, %s3167_s14 }
0x10a9   : > { %3056 = vrot.lane.b32.xlu1 %v3055_v5, %s3168_s15 }
0x10ad   : > { %3066 = vrot.lane.b32.xlu1 %v3065_v22, %s3169_s16  ;;  %s432_s16 = scalar_lea.vmem %s3673_s11, %s2666_s30 }
0x1117   : > { %v2294_v42 = vpop.xlane.xlu0 %2293 }
0x1118   : > { %v2298_v43 = vsub.f32 %v2290_v29, %v2294_v42 }
0x1119   : > { %v2297_v35 = vpop.xlane.xlu1 %2296 }
0x111a   : > { %v2300_v44 = vmul.f32 1.442695, %v2298_v43  ;;  %v2299_v15 = vsub.f32 %v2291_v33, %v2297_v35 }
0x111c   : > { %3141 = vpow2.f32 %v2300_v44  ;;  %v2302_v2 = vmul.f32 1.442695, %v2299_v15 }
0x111d   : > { %v2365_v6 = vpop.permute.xlu1 %2364 }
0x111e   : > { %3143 = vpow2.f32 %v2302_v2  ;;  %v2370_v7 = vsel %vm762_vm3, %v2365_v6, 0 }
0x111f   : > { %2999 = vmatpush3.bf16.msra.mxu0 %v2370_v7  ;;  %v2711_v7 = vld [vmem:[%s3672_s10] ss:$0 sm:$0xff] }
0x1121   : > { %v3042_v24 = vpop.permute.xlu1 %3041 }
0x1122   : > { %v3043_v9 = vunpack.i.l.bf16 %v3042_v24 }
0x1124   : > { %v2468_v23 = vsel %vm640_vm2, %v3349_v11, %v3043_v9 }
0x1125   : > { %v3047_v60 = vpop.permute.xlu1 %3046 }
0x1126   : > { %v3142_v59 = vpop.eup %3141  ;;  %v3049_v10 = vunpack.i.h.bf16 %v3047_v60  ;;  %v3048_v12 = vunpack.i.l.bf16 %v3047_v60 }
0x1127   : > { %v2304_v63 = vsel %vm640_vm2, %v3142_v59, 0.0 }
0x1128   : > { %v3144_v0 = vpop.eup %3143  ;;  %2305 = vadd.xlane.f32.xlu0 %v2304_v63  ;;  %v2470_v25 = vsel %vm457_vm1, %v2468_v23, %v3048_v12 }
0x1129   : > { %v2307_v57 = vsel %vm640_vm2, %v3144_v0, 0.0  ;;  %v3057_v17 = vpop.permute.xlu1 %3056 }
0x112a   : > { %v3059_v32 = vunpack.i.h.bf16 %v3057_v17  ;;  %v3058_v33 = vunpack.i.l.bf16 %v3057_v17 }
0x112c   : > { %2308 = vadd.xlane.f32.xlu0 %v2307_v57 }
0x112d   : > { %v3067_v36 = vpop.permute.xlu1 %3066 }
0x112e   : > { %v3069_v11 = vunpack.i.h.bf16 %v3067_v36  ;;  %v3068_v40 = vunpack.i.l.bf16 %v3067_v36 }
0x1142   : > { %2316 = vrot.lane.b32.xlu0 %v3313_v34, %s3165_s12 }
0x1146   : > { %3051 = vrot.lane.b32.xlu0 %v3050_v62, %s3170_s18 }
0x114a   : > { %3061 = vrot.lane.b32.xlu0 %v3060_v14, %s3171_s19  ;;  %v3083_v14 = vld [vmem:[%s3671_s9 + $0x10] sm:$0xff]  }
0x11b5   : > { %v2306_v4 = vpop.xlane.xlu0 %2305 }
0x11b6   : > { %3145 = vrcp.f32 %v2306_v4 }
0x11b9   : > { %v2309_v5 = vpop.xlane.xlu0 %2308 }
0x11ba   : > { %3147 = vrcp.f32 %v2309_v5 }
0x11bd   : > { %v2317_v20 = vpop.permute.xlu0 %2316 }
0x11be   : > { %v2322_v45 = vsel %vm762_vm3, %v2317_v20, 0 }
0x11bf   : > { %2993 = vmatpush3.bf16.msra.mxu1 %v2322_v45 }
0x11c0   : > { %v3146_v26 = vpop.eup %3145  ;;  %3004 = vmatprep.subr.bf16.mxu1 %v3157_v1 }
0x11c1   : > { %v2312_v34 = vmul.f32 %v3146_v26, %v3142_v59  ;;  %v3052_v3 = vpop.permute.xlu0 %3051 }
0x11c2   : > { %v3054_v18 = vunpack.i.h.bf16 %v3052_v3  ;;  %v3053_v19 = vunpack.i.l.bf16 %v3052_v3 }
0x11c3   : > { %v2314_v46 = vpack.c.bf16 %v2312_v34, %v2312_v34 }
0x11c4   : > { %v3148_v56 = vpop.eup %3147  ;;  %v2473_v28 = vsel %vm2472_vm4, %v2470_v25, %v3053_v19 }
0x11c5   : > { %v2313_v61 = vmul.f32 %v3148_v56, %v3144_v0  ;;  %2995 = vmatmul.mubr.msk.bf16.vlgmr.msra.gmra.mrb[64].mxu1 %vm640_vm2, %v2314_v46  ;;  %v3062_v21 = vpop.permute.xlu0 %3061  ;;  %v2476_v37 = vsel %vm2475_vm5, %v2473_v28, %v3058_v33 }
0x11c6   : > { %3012 = vmatprep.mubr.msk.bf16.mxu1 %vm3158_vm0, %v3157_v1  ;;  %3005 = vmatpush3.bf16.msra.mxu1 %v3081_v8  ;;  %v3064_v30 = vunpack.i.h.bf16 %v3062_v21  ;;  %v3063_v31 = vunpack.i.l.bf16 %v3062_v21 }
0x11c7   : > { %v2315_v62 = vpack.c.bf16 %v2313_v61, %v2313_v61  ;;  %3006 = vmatprep.subr.bf16.mxu1 %v3157_v1 }
0x11c8   : > { %v2479_v39 = vsel %vm2478_vm6, %v2476_v37, %v3063_v31 }
0x11c9   : > { %3001 = vmatmul.mubr.msk.bf16.vlgmr.msra.gmra.mrb[68].mxu0 %vm640_vm2, %v2315_v62  ;;  %v2482_v35 = vsel %vm2481_vm7, %v2479_v39, %v3068_v40 }
0x11ca   : > { %3007 = vmatpush3.bf16.msra.mxu1 %v3082_v13 }
0x11cb   : > { %3008 = vmatprep.subr.bf16.mxu1 %v3157_v1 }
0x11ce   : > { %3009 = vmatpush3.bf16.msra.mxu1 %v3083_v14 }
0x11cf   : > { %3010 = vmatprep.subr.bf16.mxu1 %v3157_v1  ;;  %v3044_v1 = vunpack.i.h.bf16 %v3042_v24 }
0x11d1   : > { %v2469_v22 = vsel %vm640_vm2, %v3351_v16, %v3044_v1 }
0x11d2   : > { %3011 = vmatpush3.bf16.msra.mxu1 %v3084_v47  ;;  %v2471_v27 = vsel %vm457_vm1, %v2469_v22, %v3049_v10 }
0x11d3   : > { %v2474_v29 = vsel %vm2472_vm4, %v2471_v27, %v3054_v18 }
0x11d4   : > { %v2477_v38 = vsel %vm2475_vm5, %v2474_v29, %v3059_v32 }
0x11d5   : > { %v2480_v16 = vsel %vm2478_vm6, %v2477_v38, %v3064_v30 }
0x11d6   : > { %v2483_v44 = vsel %vm2481_vm7, %v2480_v16, %v3069_v11 }
0x1298   : > { %v2358_v48 = vpop.f32.mrb[64].mxu1 }
0x1299   : > { %v2996_v49 = vpop.f32.mrb[65].mxu1 }
0x129a   : > { %v2361_v50 = vpop.f32.mrb[66].mxu1 }
0x129b   : > { %v2997_v51 = vpop.f32.mrb[67].mxu1 }
0x129c   : > { %v2406_v52 = vpop.f32.mrb[68].mxu0 }
0x129d   : > { %v3070_v53 = vpack.i.bf16 %v2406_v52, %v2358_v48  ;;  %v3002_v54 = vpop.f32.mrb[69].mxu0 }
0x129e   : > { %v2409_v55 = vpop.f32.mrb[70].mxu0 }
0x129f   : > { %3071 = vrot.lane.b32.xlu0 %v3070_v53, %s3172_s29  ;;  %v3003_v58 = vpop.f32.mrb[71].mxu0 }
0x1311   : > { %v3072_v41 = vpop.permute.xlu0 %3071 }
0x1312   : > { %v3074_v42 = vunpack.i.h.bf16 %v3072_v41  ;;  %v3073_v43 = vunpack.i.l.bf16 %v3072_v41 }
0x1314   : > { %v2486_v15 = vsel %vm2484_vm8, %v2483_v44, %v3074_v42  ;;  %v2485_v2 = vsel %vm2484_vm8, %v2482_v35, %v3073_v43 }
0x1315   : > { %v2487_v6 = vpack.c.bf16 %v2486_v15, %v2485_v2 }
0x1317   : > { %3013 = vmatmul.mubr.msk.bf16.vlgmr.msra.gmra.mrb[68].mxu1 %vm2527_vm9, %v2487_v6 }
0x13ea   : > { %v2565_v59 = vpop.f32.mrb[68].mxu1 }
0x13eb   : > { %v2566_v63 = vadd.f32 %v2711_v7, %v2565_v59  ;;  %v3014_v0 = vpop.f32.mrb[69].mxu1 }
0x13ec   : > { %v2568_v57 = vpop.f32.mrb[70].mxu1 }
0x13ed   : > { %2572 = vst.msk [vmem:[%s432_s16] sm:$0xff] %vm457_vm1, %v2566_v63  ;;  %v2569_v4 = vadd.f32 %v2711_v7, %v2568_v57  ;;  %v3015_v5 = vpop.f32.mrb[71].mxu1 }
0x13ef   : > { %2573 = vst.msk [vmem:[%s432_s16 + $0x8] sm:$0xff] %vm457_vm1, %v2569_v4 }
0x13f0 PF: > { %s21_s17 = sadd.s32 1, %s3155_s17  }
0x13f1   : > { %p18_p4 = scmp.ge.s32.totalorder %s21_s17, 4  }
0x13f3   :  { %20 = sbr.rel (!%p18_p4) target bundleno = 1 (0x1), region = 100 }

// kernel: tpu_custom_call.1
= control target key start
LH: loop header
LB: loop body
LE: loop exit
PB: predicated region body
PF: predicated region fallthrough
CT: control target
= control target key end

     0   :  { %s3233_s17 = smov 0   ;;  %s3662_s0 = inlined_call_operand.vmem [shape: bf16[32,16], index: 0, kind: input, shape index: {}]   ;;  %s3663_s1 = inlined_call_operand.vmem [shape: bf16[32,16], index: 1, kind: input, shape index: {}]   ;;  %s3664_s2 = inlined_call_operand.vmem [shape: bf16[32,16], index: 2, kind: input, shape index: {}]   ;;  %s3665_s3 = inlined_call_operand.vmem [shape: bf16[16,64], index: 3, kind: input, shape index: {}]   ;;  %s3666_s4 = inlined_call_operand.vmem [shape: f32[1,64], index: 4, kind: input, shape index: {}]   ;;  %s3667_s5 = inlined_call_operand.vmem [shape: bf16[16,64], index: 5, kind: input, shape index: {}]   ;;  %s3668_s6 = inlined_call_operand.vmem [shape: f32[1,64], index: 6, kind: input, shape index: {}]   ;;  %s3669_s7 = inlined_call_operand.vmem [shape: bf16[16,64], index: 7, kind: input, shape index: {}]   ;;  %s3670_s8 = inlined_call_operand.vmem [shape: f32[1,64], index: 8, kind: input, shape index: {}]   ;;  %s3671_s9 = inlined_call_operand.vmem [shape: bf16[64,16], index: 9, kind: input, shape index: {}]   ;;  %s3672_s10 = inlined_call_operand.vmem [shape: f32[1,16], index: 10, kind: input, shape index: {}]   ;;  %s3673_s11 = inlined_call_operand.vmem [shape: f32[32,16], index: 11, kind: output, shape index: {}]  }
   0x1 LB: > { %s2654_s18 = sadd.s32 4294967295, %s3155_s17   ;;  %p2658_p0 = scmp.ge.s32.totalorder %s3155_s17, 1  ;;  %s3155_s17 = sphi %s3233_s17, %s21_s17  }
   0x2   : > { %p360_p1 = scmp.lt.s32.totalorder %s3155_s17, 3 }
   0x4   : > { %p361_p2 = pnand %p2658_p0, %p360_p1 }
   0x5   : > { %v3075_v0 = vld [vmem:[%s3667_s5] sm:$0xff] (!%p361_p2)   ;;  %v3157_v1 = vmov (!%p361_p2), 0.0   ;;  %s2659_s21 = sshll.u32 (!%p361_p2), %s2654_s18, 1  ;;  %vm3158_vm0 = vmmov (!%p361_p2), 0   ;;  %vm457_vm1 = vcmask (!%p361_p2), 130048   ;;  %vm640_vm2 = vcmask (!%p361_p2), 64512  }
   0x6   : > { %364 = sbr.rel (%p361_p2) target bundleno = 5104 (0x13f0), region = 64  ;;  %2800 = vmatprep.subr.bf16.mxu1 (!%p361_p2), %v3157_v1  ;;  %2794 = vmatprep.subr.bf16.mxu0 (!%p361_p2), %v3157_v1  ;;  %v3077_v2 = vld [vmem:[%s3665_s3] sm:$0xff] (!%p361_p2)   ;;  %p411_p3 = scmp.lt.s32.totalorder (!%p361_p2), %s2659_s21, 3  ;;  %vm762_vm3 = vcmask (!%p361_p2), 1043456   ;;  %vm2472_vm4 = vcmask (!%p361_p2), 195584   ;;  %vm2475_vm5 = vcmask (!%p361_p2), 261120  }
   0x7   : > { %2801 = vmatpush3.bf16.msra.mxu1 (!%p361_p2), %v3075_v0  ;;  %2802 = vmatprep.mubr.msk.bf16.mxu1 (!%p361_p2), %vm3158_vm0, %v3157_v1  ;;  %v3079_v3 = vld [vmem:[%s3669_s7] sm:$0xff] (!%p361_p2)   ;;  %s3159_s23 = smov (!%p361_p2), 120   ;;  %s3160_s26 = smov (!%p361_p2), 112   ;;  %vm2478_vm6 = vcmask (!%p361_p2), 326656   ;;  %vm2481_vm7 = vcmask (!%p361_p2), 392192   ;;  %vm2484_vm8 = vcmask (!%p361_p2), 457728  }
   0x8   : > { %2795 = vmatpush3.bf16.msra.mxu0 (!%p361_p2), %v3077_v2  ;;  %2796 = vmatprep.mubr.msk.bf16.mxu0 (!%p361_p2), %vm3158_vm0, %v3157_v1  ;;  %v2671_v7 = vld [vmem:[%s3668_s6] ss:$0 sm:$0xff] (!%p361_p2)  ;;  %s3162_s28 = smov (!%p361_p2), 96   ;;  %s3163_s29 = smov (!%p361_p2), 88   ;;  %vm2527_vm9 = vcmask (!%p361_p2), 523264  }
   0x9   : > { %2806 = vmatprep.subr.bf16.mxu0 (!%p361_p2), %v3157_v1  ;;  %2812 = vmatprep.subr.bf16.mxu1 (!%p361_p2), %v3157_v1  ;;  %v2667_v13 = vld [vmem:[%s3666_s4] ss:$0 sm:$0xff] (!%p361_p2)  ;;  %s3165_s12 = smov (!%p361_p2), 72   ;;  %s3166_s13 = smov (!%p361_p2), 8  }
   0xa   : > { %v2675_v27 = vld [vmem:[%s3670_s8] ss:$0 sm:$0xff] (!%p361_p2)  ;;  %s3167_s14 = smov (!%p361_p2), 16   ;;  %s3168_s15 = smov (!%p361_p2), 32  }
   0xb   : > { %s3170_s18 = smov (!%p361_p2), 24   ;;  %s3171_s19 = smov (!%p361_p2), 40  }
   0xd   : > { %s3675_s21 = smov (!%p411_p3, %s2659_s21), 3 }
   0xe   : > { %s2660_s24 = sshll.u32 %s3675_s21, 2 }
   0xf   : > { %s420_s27 = scalar_lea.vmem %s3663_s1, %s2660_s24  ;;  %s414_s30 = scalar_lea.vmem %s3662_s0, %s2660_s24 }
  0x10   : > { %v3076_v4 = vld [vmem:[%s420_s27] sm:$0xff]   ;;  %s426_s16 = scalar_lea.vmem %s3664_s2, %s2660_s24  ;;  %s3161_s27 = smov 104  }
  0x11   : > { %v3078_v5 = vld [vmem:[%s414_s30] sm:$0xff]   ;;  %2803 = vmatmul.mubr.msk.bf16.vlgmr.msra.gmra.mrb[0].mxu1 %vm457_vm1, %v3076_v4  ;;  %s3164_s30 = smov 80  }
  0x12   : > { %2797 = vmatmul.mubr.msk.bf16.vlgmr.msra.gmra.mrb[0].mxu0 %vm457_vm1, %v3078_v5  ;;  %2814 = vmatprep.mubr.msk.bf16.mxu1 %vm3158_vm0, %v3157_v1  ;;  %v3080_v6 = vld [vmem:[%s426_s16] sm:$0xff]   ;;  %s3169_s16 = smov 48  }
  0x13   : > { %2807 = vmatpush3.bf16.msra.mxu0 %v3079_v3  ;;  %2808 = vmatprep.mubr.msk.bf16.mxu0 %vm3158_vm0, %v3157_v1 }
  0x14   : > { %2818 = vmatprep.subr.bf16.mxu0 %v3157_v1 }
  0x1a   : > { %2809 = vmatmul.mubr.msk.bf16.vlgmr.msra.gmra.mrb[4].mxu0 %vm457_vm1, %v3080_v6 }
  0x1b   : > { %2820 = vmatprep.mubr.msk.bf16.mxu0 %vm3158_vm0, %v3157_v1 }
  0xe4   : > { %v561_v8 = vpop.f32.mrb[0].mxu1 }
  0xe5   : > { %v562_v9 = vadd.f32 %v2671_v7, %v561_v8  ;;  %v2804_v10 = vpop.f32.mrb[1].mxu1  ;;  %v495_v11 = vpop.f32.mrb[0].mxu0 }
  0xe6   : > { %v564_v12 = vpop.f32.mrb[2].mxu1  ;;  %v2798_v14 = vpop.f32.mrb[1].mxu0  ;;  %v496_v21 = vadd.f32 %v2667_v13, %v495_v11 }
  0xe7   : > { %v3286_v15 = vpack.c.bf16 %v562_v9, %v562_v9  ;;  %v565_v16 = vadd.f32 %v2671_v7, %v564_v12  ;;  %v2805_v17 = vpop.f32.mrb[3].mxu1  ;;  %v498_v18 = vpop.f32.mrb[2].mxu0 }
  0xe8   : > { %v2799_v19 = vpop.f32.mrb[3].mxu0  ;;  %v3297_v24 = vpack.c.bf16 %v496_v21, %v496_v21  ;;  %v499_v25 = vadd.f32 %v2667_v13, %v498_v18 }
  0xe9   : > { %v3288_v20 = vpack.c.bf16 %v565_v16, %v565_v16  ;;  %v645_v22 = vsel %vm640_vm2, %v3286_v15, 0 }
  0xea   : > { %2813 = vmatpush3.bf16.xpose.msra.mxu1 %v645_v22  ;;  %v3300_v26 = vpack.c.bf16 %v499_v25, %v499_v25 }
  0xeb   : > { %908 = vrot.lane.b32.xlu1 %v3288_v20, %s3159_s23  ;;  %v691_v23 = vsel %vm640_vm2, %v3288_v20, 0  ;;  %2824 = vmatprep.subr.bf16.mxu1 %v3157_v1 }
  0xec   : > { %2819 = vmatpush3.bf16.xpose.msra.mxu0 %v691_v23 }
  0xed   : > { %2830 = vmatprep.subr.bf16.mxu0 %v3157_v1  ;;  %v627_v28 = vpop.f32.mrb[4].mxu0 }
  0xee   : > { %v628_v29 = vadd.f32 %v2675_v27, %v627_v28  ;;  %v2810_v30 = vpop.f32.mrb[5].mxu0 }
  0xef   : > { %v630_v31 = vpop.f32.mrb[6].mxu0 }
  0xf0   : > { %v631_v32 = vadd.f32 %v2675_v27, %v630_v31  ;;  %v2811_v33 = vpop.f32.mrb[7].mxu0  ;;  %v3313_v34 = vpack.c.bf16 %v628_v29, %v628_v29 }
  0xf1   : > { %2815 = vmatmul.mubr.msk.bf16.vlgmr.msra.gmra.mrb[4].mxu1 %vm640_vm2, %v3297_v24 }
  0xf2   : > { %2826 = vmatprep.mubr.msk.bf16.mxu1 %vm3158_vm0, %v3157_v1  ;;  %v3315_v35 = vpack.c.bf16 %v631_v32, %v631_v32  ;;  %v764_v36 = vsel %vm762_vm3, %v3313_v34, 0 }
  0xf3   : > { %2821 = vmatmul.mubr.msk.bf16.vlgmr.msra.gmra.mrb[8].mxu0 %vm640_vm2, %v3300_v26  ;;  %2825 = vmatpush3.bf16.msra.mxu1 %v764_v36 }
  0xf4   : > { %2832 = vmatprep.mubr.msk.bf16.mxu0 %vm3158_vm0, %v3157_v1  ;;  %v810_v37 = vsel %vm762_vm3, %v3315_v35, 0  ;;  %2836 = vmatprep.subr.bf16.mxu1 %v3157_v1 }
  0xf5   : > { %2831 = vmatpush3.bf16.msra.mxu0 %v810_v37 }
  0xf6   : > { %2842 = vmatprep.subr.bf16.mxu0 %v3157_v1 }
 0x15d   : > { %v909_v60 = vpop.permute.xlu1 %908 }
 0x15e   : > { %v914_v8 = vsel %vm640_vm2, %v909_v60, 0 }
 0x1c4   : > { %v681_v38 = vpop.f32.mrb[4].mxu1 }
 0x1c5   : > { %v733_v39 = vmul.f32 0.35355338, %v681_v38  ;;  %v2816_v40 = vpop.f32.mrb[5].mxu1 }
 0x1c6   : > { %v684_v41 = vpop.f32.mrb[6].mxu1  ;;  %v727_v42 = vpop.f32.mrb[8].mxu0 }
 0x1c7   : > { %v734_v43 = vmul.f32 0.35355338, %v727_v42  ;;  %v2817_v44 = vpop.f32.mrb[7].mxu1  ;;  %v2822_v45 = vpop.f32.mrb[9].mxu0  ;;  %v735_v46 = vsel %vm640_vm2, %v733_v39, -inf }
 0x1c8   : > { %736 = vmax.xlane.f32.xlu0 %v735_v46  ;;  %v730_v47 = vpop.f32.mrb[10].mxu0 }
 0x1c9   : > { %v2823_v48 = vpop.f32.mrb[11].mxu0  ;;  %v738_v49 = vsel %vm640_vm2, %v734_v43, -inf }
 0x1cc   : > { %739 = vmax.xlane.f32.xlu0 %v738_v49 }
 0x1e2   : > { %856 = vrot.lane.b32.xlu0 %v3286_v15, %s3159_s23 }
 0x255   : > { %v737_v50 = vpop.xlane.xlu0 %736 }
 0x256   : > { %v741_v51 = vsub.f32 %v733_v39, %v737_v50 }
 0x258   : > { %v743_v52 = vmul.f32 1.442695, %v741_v51 }
 0x259   : > { %v740_v53 = vpop.xlane.xlu0 %739 }
 0x25a   : > { %3085 = vpow2.f32 %v743_v52  ;;  %v742_v54 = vsub.f32 %v734_v43, %v740_v53 }
 0x25c   : > { %v745_v55 = vmul.f32 1.442695, %v742_v54 }
 0x25d   : > { %v857_v2 = vpop.permute.xlu0 %856 }
 0x25e   : > { %3087 = vpow2.f32 %v745_v55  ;;  %v862_v5 = vsel %vm640_vm2, %v857_v2, 0 }
 0x264   : > { %v3086_v56 = vpop.eup %3085 }
 0x265   : > { %v747_v57 = vsel %vm640_vm2, %v3086_v56, 0.0 }
 0x266   : > { %748 = vadd.xlane.f32.xlu1 %v747_v57 }
 0x268   : > { %v3088_v58 = vpop.eup %3087 }
 0x269   : > { %v750_v59 = vsel %vm640_vm2, %v3088_v58, 0.0 }
 0x26a   : > { %751 = vadd.xlane.f32.xlu1 %v750_v59 }
 0x27b   : > { %853 = vrot.lane.b32.xlu1 %v3297_v24, %s3159_s23 }
 0x27f   : > { %905 = vrot.lane.b32.xlu1 %v3300_v26, %s3159_s23 }
 0x2f3   : > { %v749_v61 = vpop.xlane.xlu1 %748 }
 0x2f4   : > { %3089 = vrcp.f32 %v749_v61 }
 0x2f7   : > { %v752_v62 = vpop.xlane.xlu1 %751 }
 0x2f8   : > { %3091 = vrcp.f32 %v752_v62 }
 0x2fb   : > { %v854_v9 = vpop.permute.xlu1 %853 }
 0x2fe   : > { %v3090_v63 = vpop.eup %3089 }
 0x2ff   : > { %v755_v0 = vmul.f32 %v3090_v63, %v3086_v56  ;;  %v906_v10 = vpop.permute.xlu1 %905 }
 0x301   : > { %v757_v3 = vpack.c.bf16 %v755_v0, %v755_v0 }
 0x302   : > { %v3092_v4 = vpop.eup %3091 }
 0x303   : > { %v756_v6 = vmul.f32 %v3092_v4, %v3088_v58  ;;  %2827 = vmatmul.mubr.msk.bf16.vlgmr.msra.gmra.mrb[8].mxu1 %vm640_vm2, %v757_v3 }
 0x304   : > { %2837 = vmatpush3.bf16.xpose.msra.mxu1 %v862_v5  ;;  %2838 = vmatprep.mubr.msk.bf16.mxu1 %vm3158_vm0, %v3157_v1 }
 0x305   : > { %v758_v7 = vpack.c.bf16 %v756_v6, %v756_v6  ;;  %2848 = vmatprep.subr.bf16.mxu1 %v3157_v1 }
 0x307   : > { %2833 = vmatmul.mubr.msk.bf16.vlgmr.msra.gmra.mrb[12].mxu0 %vm640_vm2, %v758_v7 }
 0x308   : > { %2843 = vmatpush3.bf16.xpose.msra.mxu0 %v914_v8  ;;  %2844 = vmatprep.mubr.msk.bf16.mxu0 %vm3158_vm0, %v3157_v1 }
 0x309   : > { %2854 = vmatprep.subr.bf16.mxu0 %v3157_v1 }
 0x30b   : > { %2839 = vmatmul.mubr.msk.bf16.vlgmr.msra.gmra.mrb[12].mxu1 %vm640_vm2, %v854_v9 }
 0x30c   : > { %2850 = vmatprep.mubr.msk.bf16.mxu1 %vm3158_vm0, %v3157_v1 }
 0x30f   : > { %2845 = vmatmul.mubr.msk.bf16.vlgmr.msra.gmra.mrb[16].mxu0 %vm640_vm2, %v906_v10 }
 0x310   : > { %2856 = vmatprep.mubr.msk.bf16.mxu0 %vm3158_vm0, %v3157_v1 }
 0x3d6   : > { %v3349_v11 = vpop.f32.mrb[8].mxu1 }
 0x3d7   : > { %v2828_v12 = vpop.f32.mrb[9].mxu1 }
 0x3d8   : > { %v803_v13 = vpop.f32.mrb[10].mxu1 }
 0x3d9   : > { %v2829_v14 = vpop.f32.mrb[11].mxu1 }
 0x3da   : > { %v3351_v16 = vpop.f32.mrb[12].mxu0 }
 0x3db   : > { %v2834_v17 = vpop.f32.mrb[13].mxu0 }
 0x3dc   : > { %v849_v18 = vpop.f32.mrb[14].mxu0 }
 0x3dd   : > { %v2835_v19 = vpop.f32.mrb[15].mxu0 }
 0x3de   : > { %v898_v21 = vpop.f32.mrb[12].mxu1 }
 0x3df   : > { %v956_v22 = vmul.f32 0.35355338, %v898_v21  ;;  %v2840_v23 = vpop.f32.mrb[13].mxu1 }
 0x3e0   : > { %v901_v25 = vpop.f32.mrb[14].mxu1 }
 0x3e1   : > { %v2841_v27 = vpop.f32.mrb[15].mxu1  ;;  %v958_v28 = vsel %vm640_vm2, %v956_v22, -inf }
 0x3e2   : > { %959 = vmax.xlane.f32.xlu0 %v958_v28  ;;  %v950_v29 = vpop.f32.mrb[16].mxu0 }
 0x3e3   : > { %v957_v30 = vmul.f32 0.35355338, %v950_v29  ;;  %v2846_v31 = vpop.f32.mrb[17].mxu0 }
 0x3e4   : > { %v953_v32 = vpop.f32.mrb[18].mxu0 }
 0x3e5   : > { %v2847_v33 = vpop.f32.mrb[19].mxu0  ;;  %v961_v36 = vsel %vm640_vm2, %v957_v30, -inf }
 0x3e6   : > { %962 = vmax.xlane.f32.xlu1 %v961_v36 }
 0x3f7   : > { %1032 = vrot.lane.b32.xlu1 %v3315_v35, %s3159_s23 }
 0x3fb   : > { %1082 = vrot.lane.b32.xlu1 %v3286_v15, %s3160_s26 }
 0x3ff   : > { %1132 = vrot.lane.b32.xlu1 %v3288_v20, %s3160_s26 }
 0x403   : > { %1130 = vrot.lane.b32.xlu1 %v3300_v26, %s3160_s26 }
 0x46f   : > { %v960_v37 = vpop.xlane.xlu0 %959 }
 0x470   : > { %v964_v38 = vsub.f32 %v956_v22, %v960_v37 }
 0x472   : > { %v966_v39 = vmul.f32 1.442695, %v964_v38 }
 0x473   : > { %v963_v40 = vpop.xlane.xlu1 %962 }
 0x474   : > { %3093 = vpow2.f32 %v966_v39  ;;  %v965_v41 = vsub.f32 %v957_v30, %v963_v40 }
 0x476   : > { %v968_v42 = vmul.f32 1.442695, %v965_v41 }
 0x477   : > { %v1033_v43 = vpop.permute.xlu1 %1032 }
 0x478   : > { %3095 = vpow2.f32 %v968_v42  ;;  %v1038_v44 = vsel %vm762_vm3, %v1033_v43, 0 }
 0x479   : > { %2855 = vmatpush3.bf16.msra.mxu0 %v1038_v44 }
 0x47a   : > { %2866 = vmatprep.subr.bf16.mxu0 %v3157_v1 }
 0x47b   : > { %v1083_v54 = vpop.permute.xlu1 %1082 }
 0x47c   : > { %v1088_v60 = vsel %vm640_vm2, %v1083_v54, 0 }
 0x47e   : > { %v3094_v45 = vpop.eup %3093 }
 0x47f   : > { %v970_v46 = vsel %vm640_vm2, %v3094_v45, 0.0  ;;  %v1133_v59 = vpop.permute.xlu1 %1132 }
 0x480   : > { %971 = vadd.xlane.f32.xlu0 %v970_v46  ;;  %v1138_v62 = vsel %vm640_vm2, %v1133_v59, 0 }
 0x482   : > { %v3096_v47 = vpop.eup %3095 }
 0x483   : > { %v973_v48 = vsel %vm640_vm2, %v3096_v47, 0.0  ;;  %v1131_v0 = vpop.permute.xlu1 %1130 }
 0x484   : > { %974 = vadd.xlane.f32.xlu0 %v973_v48 }
 0x49a   : > { %983 = vrot.lane.b32.xlu0 %v3313_v34, %s3159_s23 }
 0x49e   : > { %1080 = vrot.lane.b32.xlu0 %v3297_v24, %s3160_s26 }
 0x50d   : > { %v972_v49 = vpop.xlane.xlu0 %971 }
 0x50e   : > { %3097 = vrcp.f32 %v972_v49 }
 0x511   : > { %v975_v50 = vpop.xlane.xlu0 %974 }
 0x512   : > { %3099 = vrcp.f32 %v975_v50 }
 0x515   : > { %v984_v51 = vpop.permute.xlu0 %983 }
 0x516   : > { %v989_v52 = vsel %vm762_vm3, %v984_v51, 0 }
 0x517   : > { %2849 = vmatpush3.bf16.msra.mxu1 %v989_v52 }
 0x518   : > { %v3098_v53 = vpop.eup %3097  ;;  %2860 = vmatprep.subr.bf16.mxu1 %v3157_v1 }
 0x519   : > { %v978_v55 = vmul.f32 %v3098_v53, %v3094_v45  ;;  %v1081_v63 = vpop.permute.xlu0 %1080 }
 0x51b   : > { %v980_v56 = vpack.c.bf16 %v978_v55, %v978_v55 }
 0x51c   : > { %v3100_v57 = vpop.eup %3099 }
 0x51d   : > { %v979_v58 = vmul.f32 %v3100_v57, %v3096_v47  ;;  %2851 = vmatmul.mubr.msk.bf16.vlgmr.msra.gmra.mrb[16].mxu1 %vm640_vm2, %v980_v56 }
 0x51e   : > { %2862 = vmatprep.mubr.msk.bf16.mxu1 %vm3158_vm0, %v3157_v1 }
 0x51f   : > { %v981_v61 = vpack.c.bf16 %v979_v58, %v979_v58 }
 0x520   : > { %2861 = vmatpush3.bf16.xpose.msra.mxu1 %v1088_v60 }
 0x521   : > { %2857 = vmatmul.mubr.msk.bf16.vlgmr.msra.gmra.mrb[20].mxu0 %vm640_vm2, %v981_v61  ;;  %2872 = vmatprep.subr.bf16.mxu1 %v3157_v1 }
 0x522   : > { %2867 = vmatpush3.bf16.xpose.msra.mxu0 %v1138_v62  ;;  %2868 = vmatprep.mubr.msk.bf16.mxu0 %vm3158_vm0, %v3157_v1 }
 0x523   : > { %2878 = vmatprep.subr.bf16.mxu0 %v3157_v1 }
 0x527   : > { %2863 = vmatmul.mubr.msk.bf16.vlgmr.msra.gmra.mrb[20].mxu1 %vm640_vm2, %v1081_v63 }
 0x528   : > { %2874 = vmatprep.mubr.msk.bf16.mxu1 %vm3158_vm0, %v3157_v1 }
 0x529   : > { %2869 = vmatmul.mubr.msk.bf16.vlgmr.msra.gmra.mrb[24].mxu0 %vm640_vm2, %v1131_v0 }
 0x52a   : > { %2880 = vmatprep.mubr.msk.bf16.mxu0 %vm3158_vm0, %v3157_v1 }
 0x5f0   : > { %v3389_v2 = vpop.f32.mrb[16].mxu1 }
 0x5f1   : > { %v2852_v3 = vpop.f32.mrb[17].mxu1 }
 0x5f2   : > { %v1028_v4 = vpop.f32.mrb[18].mxu1 }
 0x5f3   : > { %v2853_v5 = vpop.f32.mrb[19].mxu1 }
 0x5f4   : > { %v3391_v6 = vpop.f32.mrb[20].mxu0 }
 0x5f5   : > { %v3040_v7 = vpack.i.bf16 %v3391_v6, %v3389_v2  ;;  %v2858_v8 = vpop.f32.mrb[21].mxu0 }
 0x5f6   : > { %v1077_v9 = vpop.f32.mrb[22].mxu0 }
 0x5f7   : > { %v2859_v10 = vpop.f32.mrb[23].mxu0 }
 0x5fa   : > { %v1124_v12 = vpop.f32.mrb[20].mxu1 }
 0x5fb   : > { %v1180_v13 = vmul.f32 0.35355338, %v1124_v12  ;;  %v2864_v14 = vpop.f32.mrb[21].mxu1 }
 0x5fc   : > { %v1127_v17 = vpop.f32.mrb[22].mxu1  ;;  %v1174_v18 = vpop.f32.mrb[24].mxu0 }
 0x5fd   : > { %v1181_v19 = vmul.f32 0.35355338, %v1174_v18  ;;  %v2865_v21 = vpop.f32.mrb[23].mxu1  ;;  %v2870_v22 = vpop.f32.mrb[25].mxu0  ;;  %v1182_v23 = vsel %vm640_vm2, %v1180_v13, -inf }
 0x5fe   : > { %1183 = vmax.xlane.f32.xlu0 %v1182_v23  ;;  %v1177_v25 = vpop.f32.mrb[26].mxu0 }
 0x5ff   : > { %v2871_v27 = vpop.f32.mrb[27].mxu0  ;;  %v1185_v28 = vsel %vm640_vm2, %v1181_v19, -inf }
 0x600   : > { %1186 = vmax.xlane.f32.xlu1 %v1185_v28 }
 0x611   : > { %1254 = vrot.lane.b32.xlu1 %v3315_v35, %s3160_s26 }
 0x615   : > { %1304 = vrot.lane.b32.xlu1 %v3286_v15, %s3161_s27 }
 0x619   : > { %1354 = vrot.lane.b32.xlu1 %v3288_v20, %s3161_s27 }
 0x61d   : > { %1352 = vrot.lane.b32.xlu1 %v3300_v26, %s3161_s27 }
 0x68b   : > { %v1184_v29 = vpop.xlane.xlu0 %1183 }
 0x68c   : > { %v1188_v30 = vsub.f32 %v1180_v13, %v1184_v29 }
 0x68d   : > { %v1187_v31 = vpop.xlane.xlu1 %1186 }
 0x68e   : > { %v1190_v32 = vmul.f32 1.442695, %v1188_v30  ;;  %v1189_v33 = vsub.f32 %v1181_v19, %v1187_v31 }
 0x690   : > { %3101 = vpow2.f32 %v1190_v32  ;;  %v1192_v36 = vmul.f32 1.442695, %v1189_v33 }
 0x691   : > { %v1255_v37 = vpop.permute.xlu1 %1254 }
 0x692   : > { %3103 = vpow2.f32 %v1192_v36  ;;  %v1260_v38 = vsel %vm762_vm3, %v1255_v37, 0 }
 0x693   : > { %2879 = vmatpush3.bf16.msra.mxu0 %v1260_v38 }
 0x694   : > { %2890 = vmatprep.subr.bf16.mxu0 %v3157_v1 }
 0x695   : > { %v1305_v48 = vpop.permute.xlu1 %1304 }
 0x696   : > { %v1310_v54 = vsel %vm640_vm2, %v1305_v48, 0 }
 0x699   : > { %v1355_v53 = vpop.permute.xlu1 %1354 }
 0x69a   : > { %v3102_v39 = vpop.eup %3101  ;;  %v1360_v56 = vsel %vm640_vm2, %v1355_v53, 0 }
 0x69b   : > { %v1194_v40 = vsel %vm640_vm2, %v3102_v39, 0.0 }
 0x69c   : > { %v3104_v41 = vpop.eup %3103  ;;  %1195 = vadd.xlane.f32.xlu0 %v1194_v40 }
 0x69d   : > { %v1197_v42 = vsel %vm640_vm2, %v3104_v41, 0.0  ;;  %v1353_v58 = vpop.permute.xlu1 %1352 }
 0x6a0   : > { %1198 = vadd.xlane.f32.xlu0 %v1197_v42 }
 0x6b6   : > { %1206 = vrot.lane.b32.xlu0 %v3313_v34, %s3160_s26 }
 0x6ba   : > { %1302 = vrot.lane.b32.xlu0 %v3297_v24, %s3161_s27 }
 0x729   : > { %v1196_v43 = vpop.xlane.xlu0 %1195 }
 0x72a   : > { %3105 = vrcp.f32 %v1196_v43 }
 0x72d   : > { %v1199_v44 = vpop.xlane.xlu0 %1198 }
 0x72e   : > { %3107 = vrcp.f32 %v1199_v44 }
 0x731   : > { %v1207_v45 = vpop.permute.xlu0 %1206 }
 0x732   : > { %v1212_v46 = vsel %vm762_vm3, %v1207_v45, 0 }
 0x733   : > { %2873 = vmatpush3.bf16.msra.mxu1 %v1212_v46 }
 0x734   : > { %v3106_v47 = vpop.eup %3105  ;;  %2884 = vmatprep.subr.bf16.mxu1 %v3157_v1 }
 0x735   : > { %v1202_v49 = vmul.f32 %v3106_v47, %v3102_v39  ;;  %v1303_v57 = vpop.permute.xlu0 %1302 }
 0x737   : > { %v1204_v50 = vpack.c.bf16 %v1202_v49, %v1202_v49 }
 0x738   : > { %v3108_v51 = vpop.eup %3107 }
 0x739   : > { %v1203_v52 = vmul.f32 %v3108_v51, %v3104_v41  ;;  %2875 = vmatmul.mubr.msk.bf16.vlgmr.msra.gmra.mrb[24].mxu1 %vm640_vm2, %v1204_v50 }
 0x73a   : > { %2886 = vmatprep.mubr.msk.bf16.mxu1 %vm3158_vm0, %v3157_v1 }
 0x73b   : > { %v1205_v55 = vpack.c.bf16 %v1203_v52, %v1203_v52 }
 0x73c   : > { %2885 = vmatpush3.bf16.xpose.msra.mxu1 %v1310_v54 }
 0x73d   : > { %2881 = vmatmul.mubr.msk.bf16.vlgmr.msra.gmra.mrb[28].mxu0 %vm640_vm2, %v1205_v55  ;;  %2896 = vmatprep.subr.bf16.mxu1 %v3157_v1 }
 0x73e   : > { %2891 = vmatpush3.bf16.xpose.msra.mxu0 %v1360_v56  ;;  %2892 = vmatprep.mubr.msk.bf16.mxu0 %vm3158_vm0, %v3157_v1 }
 0x73f   : > { %2902 = vmatprep.subr.bf16.mxu0 %v3157_v1 }
 0x743   : > { %2887 = vmatmul.mubr.msk.bf16.vlgmr.msra.gmra.mrb[28].mxu1 %vm640_vm2, %v1303_v57 }
 0x744   : > { %2898 = vmatprep.mubr.msk.bf16.mxu1 %vm3158_vm0, %v3157_v1 }
 0x745   : > { %2893 = vmatmul.mubr.msk.bf16.vlgmr.msra.gmra.mrb[32].mxu0 %vm640_vm2, %v1353_v58 }
 0x746   : > { %2904 = vmatprep.mubr.msk.bf16.mxu0 %vm3158_vm0, %v3157_v1 }
 0x80c   : > { %v3431_v59 = vpop.f32.mrb[24].mxu1 }
 0x80d   : > { %v2876_v60 = vpop.f32.mrb[25].mxu1 }
 0x80e   : > { %v1251_v61 = vpop.f32.mrb[26].mxu1 }
 0x80f   : > { %v2877_v62 = vpop.f32.mrb[27].mxu1 }
 0x810   : > { %v3433_v63 = vpop.f32.mrb[28].mxu0 }
 0x811   : > { %v3045_v0 = vpack.i.bf16 %v3433_v63, %v3431_v59  ;;  %v2882_v3 = vpop.f32.mrb[29].mxu0 }
 0x812   : > { %v1299_v4 = vpop.f32.mrb[30].mxu0 }
 0x813   : > { %v2883_v5 = vpop.f32.mrb[31].mxu0 }
 0x816   : > { %v1346_v8 = vpop.f32.mrb[28].mxu1 }
 0x817   : > { %v1402_v9 = vmul.f32 0.35355338, %v1346_v8  ;;  %v2888_v10 = vpop.f32.mrb[29].mxu1 }
 0x818   : > { %v1349_v12 = vpop.f32.mrb[30].mxu1  ;;  %v1396_v13 = vpop.f32.mrb[32].mxu0 }
 0x819   : > { %v1403_v14 = vmul.f32 0.35355338, %v1396_v13  ;;  %v2889_v17 = vpop.f32.mrb[31].mxu1  ;;  %v2894_v18 = vpop.f32.mrb[33].mxu0  ;;  %v1404_v19 = vsel %vm640_vm2, %v1402_v9, -inf }
 0x81a   : > { %1405 = vmax.xlane.f32.xlu0 %v1404_v19  ;;  %v1399_v21 = vpop.f32.mrb[34].mxu0 }
 0x81b   : > { %v2895_v22 = vpop.f32.mrb[35].mxu0  ;;  %v1407_v23 = vsel %vm640_vm2, %v1403_v14, -inf }
 0x81c   : > { %1408 = vmax.xlane.f32.xlu1 %v1407_v23 }
 0x82d   : > { %1476 = vrot.lane.b32.xlu1 %v3315_v35, %s3161_s27 }
 0x831   : > { %1526 = vrot.lane.b32.xlu1 %v3286_v15, %s3162_s28 }
 0x835   : > { %1576 = vrot.lane.b32.xlu1 %v3288_v20, %s3162_s28 }
 0x839   : > { %1574 = vrot.lane.b32.xlu1 %v3300_v26, %s3162_s28 }
 0x8a7   : > { %v1406_v25 = vpop.xlane.xlu0 %1405 }
 0x8a8   : > { %v1410_v27 = vsub.f32 %v1402_v9, %v1406_v25 }
 0x8a9   : > { %v1409_v28 = vpop.xlane.xlu1 %1408 }
 0x8aa   : > { %v1412_v29 = vmul.f32 1.442695, %v1410_v27  ;;  %v1411_v30 = vsub.f32 %v1403_v14, %v1409_v28 }
 0x8ac   : > { %3109 = vpow2.f32 %v1412_v29  ;;  %v1414_v31 = vmul.f32 1.442695, %v1411_v30 }
 0x8ad   : > { %v1477_v32 = vpop.permute.xlu1 %1476 }
 0x8ae   : > { %3111 = vpow2.f32 %v1414_v31  ;;  %v1482_v33 = vsel %vm762_vm3, %v1477_v32, 0 }
 0x8af   : > { %2903 = vmatpush3.bf16.msra.mxu0 %v1482_v33 }
 0x8b0   : > { %2914 = vmatprep.subr.bf16.mxu0 %v3157_v1 }
 0x8b1   : > { %v1527_v45 = vpop.permute.xlu1 %1526 }
 0x8b2   : > { %v1532_v51 = vsel %vm640_vm2, %v1527_v45, 0 }
 0x8b5   : > { %v1577_v50 = vpop.permute.xlu1 %1576 }
 0x8b6   : > { %v3110_v36 = vpop.eup %3109  ;;  %v1582_v53 = vsel %vm640_vm2, %v1577_v50, 0 }
 0x8b7   : > { %v1416_v37 = vsel %vm640_vm2, %v3110_v36, 0.0 }
 0x8b8   : > { %v3112_v38 = vpop.eup %3111  ;;  %1417 = vadd.xlane.f32.xlu0 %v1416_v37 }
 0x8b9   : > { %v1419_v39 = vsel %vm640_vm2, %v3112_v38, 0.0  ;;  %v1575_v55 = vpop.permute.xlu1 %1574 }
 0x8bc   : > { %1420 = vadd.xlane.f32.xlu0 %v1419_v39 }
 0x8d2   : > { %1428 = vrot.lane.b32.xlu0 %v3313_v34, %s3161_s27 }
 0x8d6   : > { %1524 = vrot.lane.b32.xlu0 %v3297_v24, %s3162_s28 }
 0x945   : > { %v1418_v40 = vpop.xlane.xlu0 %1417 }
 0x946   : > { %3113 = vrcp.f32 %v1418_v40 }
 0x949   : > { %v1421_v41 = vpop.xlane.xlu0 %1420 }
 0x94a   : > { %3115 = vrcp.f32 %v1421_v41 }
 0x94d   : > { %v1429_v42 = vpop.permute.xlu0 %1428 }
 0x94e   : > { %v1434_v43 = vsel %vm762_vm3, %v1429_v42, 0 }
 0x94f   : > { %2897 = vmatpush3.bf16.msra.mxu1 %v1434_v43 }
 0x950   : > { %v3114_v44 = vpop.eup %3113  ;;  %2908 = vmatprep.subr.bf16.mxu1 %v3157_v1 }
 0x951   : > { %v1424_v46 = vmul.f32 %v3114_v44, %v3110_v36  ;;  %v1525_v54 = vpop.permute.xlu0 %1524 }
 0x953   : > { %v1426_v47 = vpack.c.bf16 %v1424_v46, %v1424_v46 }
 0x954   : > { %v3116_v48 = vpop.eup %3115 }
 0x955   : > { %v1425_v49 = vmul.f32 %v3116_v48, %v3112_v38  ;;  %2899 = vmatmul.mubr.msk.bf16.vlgmr.msra.gmra.mrb[32].mxu1 %vm640_vm2, %v1426_v47 }
 0x956   : > { %2910 = vmatprep.mubr.msk.bf16.mxu1 %vm3158_vm0, %v3157_v1 }
 0x957   : > { %v1427_v52 = vpack.c.bf16 %v1425_v49, %v1425_v49 }
 0x958   : > { %2909 = vmatpush3.bf16.xpose.msra.mxu1 %v1532_v51 }
 0x959   : > { %2905 = vmatmul.mubr.msk.bf16.vlgmr.msra.gmra.mrb[36].mxu0 %vm640_vm2, %v1427_v52  ;;  %2920 = vmatprep.subr.bf16.mxu1 %v3157_v1 }
 0x95a   : > { %2915 = vmatpush3.bf16.xpose.msra.mxu0 %v1582_v53  ;;  %2916 = vmatprep.mubr.msk.bf16.mxu0 %vm3158_vm0, %v3157_v1 }
 0x95b   : > { %2926 = vmatprep.subr.bf16.mxu0 %v3157_v1 }
 0x95f   : > { %2911 = vmatmul.mubr.msk.bf16.vlgmr.msra.gmra.mrb[36].mxu1 %vm640_vm2, %v1525_v54 }
 0x960   : > { %2922 = vmatprep.mubr.msk.bf16.mxu1 %vm3158_vm0, %v3157_v1 }
 0x961   : > { %2917 = vmatmul.mubr.msk.bf16.vlgmr.msra.gmra.mrb[40].mxu0 %vm640_vm2, %v1575_v55 }
 0x962   : > { %2928 = vmatprep.mubr.msk.bf16.mxu0 %vm3158_vm0, %v3157_v1 }
 0xa28   : > { %v3473_v56 = vpop.f32.mrb[32].mxu1 }
 0xa29   : > { %v2900_v57 = vpop.f32.mrb[33].mxu1 }
 0xa2a   : > { %v1473_v58 = vpop.f32.mrb[34].mxu1 }
 0xa2b   : > { %v2901_v60 = vpop.f32.mrb[35].mxu1 }
 0xa2c   : > { %v3475_v61 = vpop.f32.mrb[36].mxu0 }
 0xa2d   : > { %v3050_v62 = vpack.i.bf16 %v3475_v61, %v3473_v56  ;;  %v2906_v3 = vpop.f32.mrb[37].mxu0 }
 0xa2e   : > { %v1521_v4 = vpop.f32.mrb[38].mxu0 }
 0xa2f   : > { %v2907_v5 = vpop.f32.mrb[39].mxu0 }
 0xa32   : > { %v1568_v8 = vpop.f32.mrb[36].mxu1 }
 0xa33   : > { %v1624_v9 = vmul.f32 0.35355338, %v1568_v8  ;;  %v2912_v10 = vpop.f32.mrb[37].mxu1 }
 0xa34   : > { %v1571_v12 = vpop.f32.mrb[38].mxu1  ;;  %v1618_v13 = vpop.f32.mrb[40].mxu0 }
 0xa35   : > { %v1625_v14 = vmul.f32 0.35355338, %v1618_v13  ;;  %v2913_v17 = vpop.f32.mrb[39].mxu1  ;;  %v2918_v18 = vpop.f32.mrb[41].mxu0  ;;  %v1626_v19 = vsel %vm640_vm2, %v1624_v9, -inf }
 0xa36   : > { %1627 = vmax.xlane.f32.xlu0 %v1626_v19  ;;  %v1621_v21 = vpop.f32.mrb[42].mxu0 }
 0xa37   : > { %v2919_v22 = vpop.f32.mrb[43].mxu0  ;;  %v1629_v23 = vsel %vm640_vm2, %v1625_v14, -inf }
 0xa38   : > { %1630 = vmax.xlane.f32.xlu1 %v1629_v23 }
 0xa49   : > { %1698 = vrot.lane.b32.xlu1 %v3315_v35, %s3162_s28 }
 0xa4d   : > { %1748 = vrot.lane.b32.xlu1 %v3286_v15, %s3163_s29 }
 0xa51   : > { %1798 = vrot.lane.b32.xlu1 %v3288_v20, %s3163_s29 }
 0xa55   : > { %1796 = vrot.lane.b32.xlu1 %v3300_v26, %s3163_s29 }
 0xac3   : > { %v1628_v25 = vpop.xlane.xlu0 %1627 }
 0xac4   : > { %v1632_v27 = vsub.f32 %v1624_v9, %v1628_v25 }
 0xac5   : > { %v1631_v28 = vpop.xlane.xlu1 %1630 }
 0xac6   : > { %v1634_v29 = vmul.f32 1.442695, %v1632_v27  ;;  %v1633_v30 = vsub.f32 %v1625_v14, %v1631_v28 }
 0xac8   : > { %3117 = vpow2.f32 %v1634_v29  ;;  %v1636_v31 = vmul.f32 1.442695, %v1633_v30 }
 0xac9   : > { %v1699_v32 = vpop.permute.xlu1 %1698 }
 0xaca   : > { %3119 = vpow2.f32 %v1636_v31  ;;  %v1704_v33 = vsel %vm762_vm3, %v1699_v32, 0 }
 0xacb   : > { %2927 = vmatpush3.bf16.msra.mxu0 %v1704_v33 }
 0xacc   : > { %2938 = vmatprep.subr.bf16.mxu0 %v3157_v1 }
 0xacd   : > { %v1749_v45 = vpop.permute.xlu1 %1748 }
 0xace   : > { %v1754_v51 = vsel %vm640_vm2, %v1749_v45, 0 }
 0xad1   : > { %v1799_v50 = vpop.permute.xlu1 %1798 }
 0xad2   : > { %v3118_v36 = vpop.eup %3117  ;;  %v1804_v53 = vsel %vm640_vm2, %v1799_v50, 0 }
 0xad3   : > { %v1638_v37 = vsel %vm640_vm2, %v3118_v36, 0.0 }
 0xad4   : > { %v3120_v38 = vpop.eup %3119  ;;  %1639 = vadd.xlane.f32.xlu0 %v1638_v37 }
 0xad5   : > { %v1641_v39 = vsel %vm640_vm2, %v3120_v38, 0.0  ;;  %v1797_v55 = vpop.permute.xlu1 %1796 }
 0xad8   : > { %1642 = vadd.xlane.f32.xlu0 %v1641_v39 }
 0xaee   : > { %1650 = vrot.lane.b32.xlu0 %v3313_v34, %s3162_s28 }
 0xaf2   : > { %1746 = vrot.lane.b32.xlu0 %v3297_v24, %s3163_s29 }
 0xb61   : > { %v1640_v40 = vpop.xlane.xlu0 %1639 }
 0xb62   : > { %3121 = vrcp.f32 %v1640_v40 }
 0xb65   : > { %v1643_v41 = vpop.xlane.xlu0 %1642 }
 0xb66   : > { %3123 = vrcp.f32 %v1643_v41 }
 0xb69   : > { %v1651_v42 = vpop.permute.xlu0 %1650 }
 0xb6a   : > { %v1656_v43 = vsel %vm762_vm3, %v1651_v42, 0 }
 0xb6b   : > { %2921 = vmatpush3.bf16.msra.mxu1 %v1656_v43 }
 0xb6c   : > { %v3122_v44 = vpop.eup %3121  ;;  %2932 = vmatprep.subr.bf16.mxu1 %v3157_v1 }
 0xb6d   : > { %v1646_v46 = vmul.f32 %v3122_v44, %v3118_v36  ;;  %v1747_v54 = vpop.permute.xlu0 %1746 }
 0xb6f   : > { %v1648_v47 = vpack.c.bf16 %v1646_v46, %v1646_v46 }
 0xb70   : > { %v3124_v48 = vpop.eup %3123 }
 0xb71   : > { %v1647_v49 = vmul.f32 %v3124_v48, %v3120_v38  ;;  %2923 = vmatmul.mubr.msk.bf16.vlgmr.msra.gmra.mrb[40].mxu1 %vm640_vm2, %v1648_v47 }
 0xb72   : > { %2934 = vmatprep.mubr.msk.bf16.mxu1 %vm3158_vm0, %v3157_v1 }
 0xb73   : > { %v1649_v52 = vpack.c.bf16 %v1647_v49, %v1647_v49 }
 0xb74   : > { %2933 = vmatpush3.bf16.xpose.msra.mxu1 %v1754_v51 }
 0xb75   : > { %2929 = vmatmul.mubr.msk.bf16.vlgmr.msra.gmra.mrb[44].mxu0 %vm640_vm2, %v1649_v52  ;;  %2944 = vmatprep.subr.bf16.mxu1 %v3157_v1 }
 0xb76   : > { %2939 = vmatpush3.bf16.xpose.msra.mxu0 %v1804_v53  ;;  %2940 = vmatprep.mubr.msk.bf16.mxu0 %vm3158_vm0, %v3157_v1 }
 0xb77   : > { %2950 = vmatprep.subr.bf16.mxu0 %v3157_v1 }
 0xb7b   : > { %2935 = vmatmul.mubr.msk.bf16.vlgmr.msra.gmra.mrb[44].mxu1 %vm640_vm2, %v1747_v54 }
 0xb7c   : > { %2946 = vmatprep.mubr.msk.bf16.mxu1 %vm3158_vm0, %v3157_v1 }
 0xb7d   : > { %2941 = vmatmul.mubr.msk.bf16.vlgmr.msra.gmra.mrb[48].mxu0 %vm640_vm2, %v1797_v55 }
 0xb7e   : > { %2952 = vmatprep.mubr.msk.bf16.mxu0 %vm3158_vm0, %v3157_v1 }
 0xc44   : > { %v3515_v57 = vpop.f32.mrb[40].mxu1 }
 0xc45   : > { %v2924_v58 = vpop.f32.mrb[41].mxu1 }
 0xc46   : > { %v1695_v60 = vpop.f32.mrb[42].mxu1 }
 0xc47   : > { %v2925_v3 = vpop.f32.mrb[43].mxu1 }
 0xc48   : > { %v3517_v4 = vpop.f32.mrb[44].mxu0 }
 0xc49   : > { %v3055_v5 = vpack.i.bf16 %v3517_v4, %v3515_v57  ;;  %v2930_v8 = vpop.f32.mrb[45].mxu0 }
 0xc4a   : > { %v1743_v9 = vpop.f32.mrb[46].mxu0 }
 0xc4b   : > { %v2931_v10 = vpop.f32.mrb[47].mxu0 }
 0xc4e   : > { %v1790_v12 = vpop.f32.mrb[44].mxu1 }
 0xc4f   : > { %v1846_v13 = vmul.f32 0.35355338, %v1790_v12  ;;  %v2936_v14 = vpop.f32.mrb[45].mxu1 }
 0xc50   : > { %v1793_v17 = vpop.f32.mrb[46].mxu1  ;;  %v1840_v18 = vpop.f32.mrb[48].mxu0 }
 0xc51   : > { %v1847_v19 = vmul.f32 0.35355338, %v1840_v18  ;;  %v2937_v21 = vpop.f32.mrb[47].mxu1  ;;  %v2942_v22 = vpop.f32.mrb[49].mxu0  ;;  %v1848_v23 = vsel %vm640_vm2, %v1846_v13, -inf }
 0xc52   : > { %1849 = vmax.xlane.f32.xlu0 %v1848_v23  ;;  %v1843_v25 = vpop.f32.mrb[50].mxu0 }
 0xc53   : > { %v2943_v27 = vpop.f32.mrb[51].mxu0  ;;  %v1851_v28 = vsel %vm640_vm2, %v1847_v19, -inf }
 0xc54   : > { %1852 = vmax.xlane.f32.xlu1 %v1851_v28 }
 0xc65   : > { %1920 = vrot.lane.b32.xlu1 %v3315_v35, %s3163_s29 }
 0xc69   : > { %1970 = vrot.lane.b32.xlu1 %v3286_v15, %s3164_s30 }
 0xc6d   : > { %2020 = vrot.lane.b32.xlu1 %v3288_v20, %s3164_s30 }
 0xc71   : > { %2018 = vrot.lane.b32.xlu1 %v3300_v26, %s3164_s30 }
 0xcdf   : > { %v1850_v29 = vpop.xlane.xlu0 %1849 }
 0xce0   : > { %v1854_v30 = vsub.f32 %v1846_v13, %v1850_v29 }
 0xce1   : > { %v1853_v31 = vpop.xlane.xlu1 %1852 }
 0xce2   : > { %v1856_v32 = vmul.f32 1.442695, %v1854_v30  ;;  %v1855_v33 = vsub.f32 %v1847_v19, %v1853_v31 }
 0xce4   : > { %3125 = vpow2.f32 %v1856_v32  ;;  %v1858_v36 = vmul.f32 1.442695, %v1855_v33 }
 0xce5   : > { %v1921_v37 = vpop.permute.xlu1 %1920 }
 0xce6   : > { %3127 = vpow2.f32 %v1858_v36  ;;  %v1926_v38 = vsel %vm762_vm3, %v1921_v37, 0 }
 0xce7   : > { %2951 = vmatpush3.bf16.msra.mxu0 %v1926_v38 }
 0xce8   : > { %2962 = vmatprep.subr.bf16.mxu0 %v3157_v1 }
 0xce9   : > { %v1971_v48 = vpop.permute.xlu1 %1970 }
 0xcea   : > { %v1976_v54 = vsel %vm640_vm2, %v1971_v48, 0 }
 0xced   : > { %v2021_v53 = vpop.permute.xlu1 %2020 }
 0xcee   : > { %v3126_v39 = vpop.eup %3125  ;;  %v2026_v58 = vsel %vm640_vm2, %v2021_v53, 0 }
 0xcef   : > { %v1860_v40 = vsel %vm640_vm2, %v3126_v39, 0.0 }
 0xcf0   : > { %v3128_v41 = vpop.eup %3127  ;;  %1861 = vadd.xlane.f32.xlu0 %v1860_v40 }
 0xcf1   : > { %v1863_v42 = vsel %vm640_vm2, %v3128_v41, 0.0  ;;  %v2019_v3 = vpop.permute.xlu1 %2018 }
 0xcf4   : > { %1864 = vadd.xlane.f32.xlu0 %v1863_v42 }
 0xd0a   : > { %1872 = vrot.lane.b32.xlu0 %v3313_v34, %s3163_s29  ;;  %s3172_s29 = smov 56  }
 0xd0e   : > { %1968 = vrot.lane.b32.xlu0 %v3297_v24, %s3164_s30 }
 0xd7d   : > { %v1862_v43 = vpop.xlane.xlu0 %1861 }
 0xd7e   : > { %3129 = vrcp.f32 %v1862_v43 }
 0xd81   : > { %v1865_v44 = vpop.xlane.xlu0 %1864 }
 0xd82   : > { %3131 = vrcp.f32 %v1865_v44 }
 0xd85   : > { %v1873_v45 = vpop.permute.xlu0 %1872 }
 0xd86   : > { %v1878_v46 = vsel %vm762_vm3, %v1873_v45, 0 }
 0xd87   : > { %2945 = vmatpush3.bf16.msra.mxu1 %v1878_v46 }
 0xd88   : > { %v3130_v47 = vpop.eup %3129  ;;  %2956 = vmatprep.subr.bf16.mxu1 %v3157_v1 }
 0xd89   : > { %v1868_v49 = vmul.f32 %v3130_v47, %v3126_v39  ;;  %v1969_v60 = vpop.permute.xlu0 %1968 }
 0xd8b   : > { %v1870_v50 = vpack.c.bf16 %v1868_v49, %v1868_v49 }
 0xd8c   : > { %v3132_v51 = vpop.eup %3131 }
 0xd8d   : > { %v1869_v52 = vmul.f32 %v3132_v51, %v3128_v41  ;;  %2947 = vmatmul.mubr.msk.bf16.vlgmr.msra.gmra.mrb[48].mxu1 %vm640_vm2, %v1870_v50 }
 0xd8e   : > { %2958 = vmatprep.mubr.msk.bf16.mxu1 %vm3158_vm0, %v3157_v1 }
 0xd8f   : > { %v1871_v55 = vpack.c.bf16 %v1869_v52, %v1869_v52 }
 0xd90   : > { %2957 = vmatpush3.bf16.xpose.msra.mxu1 %v1976_v54 }
 0xd91   : > { %2953 = vmatmul.mubr.msk.bf16.vlgmr.msra.gmra.mrb[52].mxu0 %vm640_vm2, %v1871_v55  ;;  %2968 = vmatprep.subr.bf16.mxu1 %v3157_v1 }
 0xd92   : > { %2963 = vmatpush3.bf16.xpose.msra.mxu0 %v2026_v58  ;;  %2964 = vmatprep.mubr.msk.bf16.mxu0 %vm3158_vm0, %v3157_v1 }
 0xd93   : > { %2974 = vmatprep.subr.bf16.mxu0 %v3157_v1 }
 0xd97   : > { %2959 = vmatmul.mubr.msk.bf16.vlgmr.msra.gmra.mrb[52].mxu1 %vm640_vm2, %v1969_v60 }
 0xd98   : > { %2970 = vmatprep.mubr.msk.bf16.mxu1 %vm3158_vm0, %v3157_v1 }
 0xd99   : > { %2965 = vmatmul.mubr.msk.bf16.vlgmr.msra.gmra.mrb[56].mxu0 %vm640_vm2, %v2019_v3 }
 0xd9a   : > { %2976 = vmatprep.mubr.msk.bf16.mxu0 %vm3158_vm0, %v3157_v1 }
 0xe60   : > { %v3557_v8 = vpop.f32.mrb[48].mxu1 }
 0xe61   : > { %v2948_v9 = vpop.f32.mrb[49].mxu1 }
 0xe62   : > { %v1917_v10 = vpop.f32.mrb[50].mxu1 }
 0xe63   : > { %v2949_v12 = vpop.f32.mrb[51].mxu1 }
 0xe64   : > { %v3559_v13 = vpop.f32.mrb[52].mxu0 }
 0xe65   : > { %v3060_v14 = vpack.i.bf16 %v3559_v13, %v3557_v8  ;;  %v2954_v17 = vpop.f32.mrb[53].mxu0  ;;  %v3081_v8 = vld [vmem:[%s3671_s9] sm:$0xff]   ;;  %v3082_v13 = vld [vmem:[%s3671_s9 + $0x8] sm:$0xff]  }
 0xe66   : > { %v1965_v18 = vpop.f32.mrb[54].mxu0 }
 0xe67   : > { %v2955_v19 = vpop.f32.mrb[55].mxu0 }
 0xe6a   : > { %v2012_v21 = vpop.f32.mrb[52].mxu1 }
 0xe6b   : > { %v2068_v22 = vmul.f32 0.35355338, %v2012_v21  ;;  %v2960_v23 = vpop.f32.mrb[53].mxu1 }
 0xe6c   : > { %v2015_v25 = vpop.f32.mrb[54].mxu1  ;;  %v2062_v27 = vpop.f32.mrb[56].mxu0 }
 0xe6d   : > { %v2069_v28 = vmul.f32 0.35355338, %v2062_v27  ;;  %v2961_v29 = vpop.f32.mrb[55].mxu1  ;;  %v2966_v30 = vpop.f32.mrb[57].mxu0  ;;  %v2070_v31 = vsel %vm640_vm2, %v2068_v22, -inf }
 0xe6e   : > { %2071 = vmax.xlane.f32.xlu0 %v2070_v31  ;;  %v2065_v32 = vpop.f32.mrb[58].mxu0 }
 0xe6f   : > { %v2967_v33 = vpop.f32.mrb[59].mxu0  ;;  %v2073_v36 = vsel %vm640_vm2, %v2069_v28, -inf }
 0xe70   : > { %2074 = vmax.xlane.f32.xlu1 %v2073_v36 }
 0xe81   : > { %2142 = vrot.lane.b32.xlu1 %v3315_v35, %s3164_s30 }
 0xe85   : > { %2192 = vrot.lane.b32.xlu1 %v3286_v15, %s3165_s12 }
 0xe89   : > { %2242 = vrot.lane.b32.xlu1 %v3288_v20, %s3165_s12 }
 0xe8d   : > { %2240 = vrot.lane.b32.xlu1 %v3300_v26, %s3165_s12 }
 0xefb   : > { %v2072_v37 = vpop.xlane.xlu0 %2071 }
 0xefc   : > { %v2076_v38 = vsub.f32 %v2068_v22, %v2072_v37 }
 0xefd   : > { %v2075_v39 = vpop.xlane.xlu1 %2074 }
 0xefe   : > { %v2078_v40 = vmul.f32 1.442695, %v2076_v38  ;;  %v2077_v41 = vsub.f32 %v2069_v28, %v2075_v39 }
 0xf00   : > { %3133 = vpow2.f32 %v2078_v40  ;;  %v2080_v42 = vmul.f32 1.442695, %v2077_v41 }
 0xf01   : > { %v2143_v43 = vpop.permute.xlu1 %2142 }
 0xf02   : > { %3135 = vpow2.f32 %v2080_v42  ;;  %v2148_v44 = vsel %vm762_vm3, %v2143_v43, 0 }
 0xf03   : > { %2975 = vmatpush3.bf16.msra.mxu0 %v2148_v44 }
 0xf04   : > { %2986 = vmatprep.subr.bf16.mxu0 %v3157_v1 }
 0xf05   : > { %v2193_v51 = vpop.permute.xlu1 %2192 }
 0xf09   : > { %v2243_v58 = vpop.permute.xlu1 %2242 }
 0xf0a   : > { %v3134_v15 = vpop.eup %3133  ;;  %v2248_v3 = vsel %vm640_vm2, %v2243_v58, 0 }
 0xf0b   : > { %v2082_v20 = vsel %vm640_vm2, %v3134_v15, 0.0 }
 0xf0c   : > { %v3136_v45 = vpop.eup %3135  ;;  %2083 = vadd.xlane.f32.xlu0 %v2082_v20 }
 0xf0d   : > { %v2085_v26 = vsel %vm640_vm2, %v3136_v45, 0.0  ;;  %v2241_v10 = vpop.permute.xlu1 %2240 }
 0xf10   : > { %2086 = vadd.xlane.f32.xlu0 %v2085_v26 }
 0xf26   : > { %2094 = vrot.lane.b32.xlu0 %v3313_v34, %s3164_s30  ;;  %s2666_s30 = sshll.u32 %s3675_s21, 3 }
 0xf2a   : > { %2190 = vrot.lane.b32.xlu0 %v3297_v24, %s3165_s12  ;;  %v2198_v24 = vsel %vm640_vm2, %v2193_v51, 0 }
 0xf99   : > { %v2084_v46 = vpop.xlane.xlu0 %2083 }
 0xf9a   : > { %3137 = vrcp.f32 %v2084_v46 }
 0xf9d   : > { %v2087_v47 = vpop.xlane.xlu0 %2086 }
 0xf9e   : > { %3139 = vrcp.f32 %v2087_v47  ;;  %v3084_v47 = vld [vmem:[%s3671_s9 + $0x18] sm:$0xff]  }
 0xfa1   : > { %v2095_v48 = vpop.permute.xlu0 %2094 }
 0xfa2   : > { %v2100_v49 = vsel %vm762_vm3, %v2095_v48, 0 }
 0xfa3   : > { %2969 = vmatpush3.bf16.msra.mxu1 %v2100_v49 }
 0xfa4   : > { %v3138_v50 = vpop.eup %3137  ;;  %2980 = vmatprep.subr.bf16.mxu1 %v3157_v1 }
 0xfa5   : > { %v2090_v52 = vmul.f32 %v3138_v50, %v3134_v15  ;;  %v2191_v9 = vpop.permute.xlu0 %2190 }
 0xfa7   : > { %v2092_v53 = vpack.c.bf16 %v2090_v52, %v2090_v52 }
 0xfa8   : > { %v3140_v54 = vpop.eup %3139 }
 0xfa9   : > { %v2091_v55 = vmul.f32 %v3140_v54, %v3136_v45  ;;  %2971 = vmatmul.mubr.msk.bf16.vlgmr.msra.gmra.mrb[56].mxu1 %vm640_vm2, %v2092_v53 }
 0xfaa   : > { %2982 = vmatprep.mubr.msk.bf16.mxu1 %vm3158_vm0, %v3157_v1 }
 0xfab   : > { %v2093_v60 = vpack.c.bf16 %v2091_v55, %v2091_v55 }
 0xfac   : > { %2981 = vmatpush3.bf16.xpose.msra.mxu1 %v2198_v24 }
 0xfad   : > { %2977 = vmatmul.mubr.msk.bf16.vlgmr.msra.gmra.mrb[60].mxu0 %vm640_vm2, %v2093_v60  ;;  %2992 = vmatprep.subr.bf16.mxu1 %v3157_v1 }
 0xfae   : > { %2987 = vmatpush3.bf16.xpose.msra.mxu0 %v2248_v3  ;;  %2988 = vmatprep.mubr.msk.bf16.mxu0 %vm3158_vm0, %v3157_v1 }
 0xfaf   : > { %2998 = vmatprep.subr.bf16.mxu0 %v3157_v1 }
 0xfb3   : > { %2983 = vmatmul.mubr.msk.bf16.vlgmr.msra.gmra.mrb[60].mxu1 %vm640_vm2, %v2191_v9 }
 0xfb4   : > { %2994 = vmatprep.mubr.msk.bf16.mxu1 %vm3158_vm0, %v3157_v1 }
 0xfb5   : > { %2989 = vmatmul.mubr.msk.bf16.vlgmr.msra.gmra.mrb[64].mxu0 %vm640_vm2, %v2241_v10 }
 0xfb6   : > { %3000 = vmatprep.mubr.msk.bf16.mxu0 %vm3158_vm0, %v3157_v1 }
0x107c   : > { %v2136_v12 = vpop.f32.mrb[56].mxu1 }
0x107d   : > { %v2972_v17 = vpop.f32.mrb[57].mxu1 }
0x107e   : > { %v2139_v18 = vpop.f32.mrb[58].mxu1 }
0x107f   : > { %v2973_v19 = vpop.f32.mrb[59].mxu1 }
0x1080   : > { %v2184_v21 = vpop.f32.mrb[60].mxu0 }
0x1081   : > { %v3065_v22 = vpack.i.bf16 %v2184_v21, %v2136_v12  ;;  %v2978_v23 = vpop.f32.mrb[61].mxu0 }
0x1082   : > { %v2187_v25 = vpop.f32.mrb[62].mxu0 }
0x1083   : > { %v2979_v27 = vpop.f32.mrb[63].mxu0 }
0x1086   : > { %v2234_v28 = vpop.f32.mrb[60].mxu1 }
0x1087   : > { %v2290_v29 = vmul.f32 0.35355338, %v2234_v28  ;;  %v2984_v30 = vpop.f32.mrb[61].mxu1 }
0x1088   : > { %v2237_v31 = vpop.f32.mrb[62].mxu1  ;;  %v2284_v32 = vpop.f32.mrb[64].mxu0 }
0x1089   : > { %v2291_v33 = vmul.f32 0.35355338, %v2284_v32  ;;  %v2985_v36 = vpop.f32.mrb[63].mxu1  ;;  %v2990_v37 = vpop.f32.mrb[65].mxu0  ;;  %v2292_v38 = vsel %vm640_vm2, %v2290_v29, -inf }
0x108a   : > { %2293 = vmax.xlane.f32.xlu0 %v2292_v38  ;;  %v2287_v39 = vpop.f32.mrb[66].mxu0 }
0x108b   : > { %v2991_v40 = vpop.f32.mrb[67].mxu0  ;;  %v2295_v41 = vsel %vm640_vm2, %v2291_v33, -inf }
0x108c   : > { %2296 = vmax.xlane.f32.xlu1 %v2295_v41 }
0x109d   : > { %2364 = vrot.lane.b32.xlu1 %v3315_v35, %s3165_s12 }
0x10a1   : > { %3041 = vrot.lane.b32.xlu1 %v3040_v7, %s3166_s13 }
0x10a5   : > { %3046 = vrot.lane.b32.xlu1 %v3045_v0, %s3167_s14 }
0x10a9   : > { %3056 = vrot.lane.b32.xlu1 %v3055_v5, %s3168_s15 }
0x10ad   : > { %3066 = vrot.lane.b32.xlu1 %v3065_v22, %s3169_s16  ;;  %s432_s16 = scalar_lea.vmem %s3673_s11, %s2666_s30 }
0x1117   : > { %v2294_v42 = vpop.xlane.xlu0 %2293 }
0x1118   : > { %v2298_v43 = vsub.f32 %v2290_v29, %v2294_v42 }
0x1119   : > { %v2297_v35 = vpop.xlane.xlu1 %2296 }
0x111a   : > { %v2300_v44 = vmul.f32 1.442695, %v2298_v43  ;;  %v2299_v15 = vsub.f32 %v2291_v33, %v2297_v35 }
0x111c   : > { %3141 = vpow2.f32 %v2300_v44  ;;  %v2302_v2 = vmul.f32 1.442695, %v2299_v15 }
0x111d   : > { %v2365_v6 = vpop.permute.xlu1 %2364 }
0x111e   : > { %3143 = vpow2.f32 %v2302_v2  ;;  %v2370_v7 = vsel %vm762_vm3, %v2365_v6, 0 }
0x111f   : > { %2999 = vmatpush3.bf16.msra.mxu0 %v2370_v7  ;;  %v2711_v7 = vld [vmem:[%s3672_s10] ss:$0 sm:$0xff] }
0x1121   : > { %v3042_v24 = vpop.permute.xlu1 %3041 }
0x1122   : > { %v3043_v9 = vunpack.i.l.bf16 %v3042_v24 }
0x1124   : > { %v2468_v23 = vsel %vm640_vm2, %v3349_v11, %v3043_v9 }
0x1125   : > { %v3047_v60 = vpop.permute.xlu1 %3046 }
0x1126   : > { %v3142_v59 = vpop.eup %3141  ;;  %v3049_v10 = vunpack.i.h.bf16 %v3047_v60  ;;  %v3048_v12 = vunpack.i.l.bf16 %v3047_v60 }
0x1127   : > { %v2304_v63 = vsel %vm640_vm2, %v3142_v59, 0.0 }
0x1128   : > { %v3144_v0 = vpop.eup %3143  ;;  %2305 = vadd.xlane.f32.xlu0 %v2304_v63  ;;  %v2470_v25 = vsel %vm457_vm1, %v2468_v23, %v3048_v12 }
0x1129   : > { %v2307_v57 = vsel %vm640_vm2, %v3144_v0, 0.0  ;;  %v3057_v17 = vpop.permute.xlu1 %3056 }
0x112a   : > { %v3059_v32 = vunpack.i.h.bf16 %v3057_v17  ;;  %v3058_v33 = vunpack.i.l.bf16 %v3057_v17 }
0x112c   : > { %2308 = vadd.xlane.f32.xlu0 %v2307_v57 }
0x112d   : > { %v3067_v36 = vpop.permute.xlu1 %3066 }
0x112e   : > { %v3069_v11 = vunpack.i.h.bf16 %v3067_v36  ;;  %v3068_v40 = vunpack.i.l.bf16 %v3067_v36 }
0x1142   : > { %2316 = vrot.lane.b32.xlu0 %v3313_v34, %s3165_s12 }
0x1146   : > { %3051 = vrot.lane.b32.xlu0 %v3050_v62, %s3170_s18 }
0x114a   : > { %3061 = vrot.lane.b32.xlu0 %v3060_v14, %s3171_s19  ;;  %v3083_v14 = vld [vmem:[%s3671_s9 + $0x10] sm:$0xff]  }
0x11b5   : > { %v2306_v4 = vpop.xlane.xlu0 %2305 }
0x11b6   : > { %3145 = vrcp.f32 %v2306_v4 }
0x11b9   : > { %v2309_v5 = vpop.xlane.xlu0 %2308 }
0x11ba   : > { %3147 = vrcp.f32 %v2309_v5 }
0x11bd   : > { %v2317_v20 = vpop.permute.xlu0 %2316 }
0x11be   : > { %v2322_v45 = vsel %vm762_vm3, %v2317_v20, 0 }
0x11bf   : > { %2993 = vmatpush3.bf16.msra.mxu1 %v2322_v45 }
0x11c0   : > { %v3146_v26 = vpop.eup %3145  ;;  %3004 = vmatprep.subr.bf16.mxu1 %v3157_v1 }
0x11c1   : > { %v2312_v34 = vmul.f32 %v3146_v26, %v3142_v59  ;;  %v3052_v3 = vpop.permute.xlu0 %3051 }
0x11c2   : > { %v3054_v18 = vunpack.i.h.bf16 %v3052_v3  ;;  %v3053_v19 = vunpack.i.l.bf16 %v3052_v3 }
0x11c3   : > { %v2314_v46 = vpack.c.bf16 %v2312_v34, %v2312_v34 }
0x11c4   : > { %v3148_v56 = vpop.eup %3147  ;;  %v2473_v28 = vsel %vm2472_vm4, %v2470_v25, %v3053_v19 }
0x11c5   : > { %v2313_v61 = vmul.f32 %v3148_v56, %v3144_v0  ;;  %2995 = vmatmul.mubr.msk.bf16.vlgmr.msra.gmra.mrb[64].mxu1 %vm640_vm2, %v2314_v46  ;;  %v3062_v21 = vpop.permute.xlu0 %3061  ;;  %v2476_v37 = vsel %vm2475_vm5, %v2473_v28, %v3058_v33 }
0x11c6   : > { %3012 = vmatprep.mubr.msk.bf16.mxu1 %vm3158_vm0, %v3157_v1  ;;  %3005 = vmatpush3.bf16.msra.mxu1 %v3081_v8  ;;  %v3064_v30 = vunpack.i.h.bf16 %v3062_v21  ;;  %v3063_v31 = vunpack.i.l.bf16 %v3062_v21 }
0x11c7   : > { %v2315_v62 = vpack.c.bf16 %v2313_v61, %v2313_v61  ;;  %3006 = vmatprep.subr.bf16.mxu1 %v3157_v1 }
0x11c8   : > { %v2479_v39 = vsel %vm2478_vm6, %v2476_v37, %v3063_v31 }
0x11c9   : > { %3001 = vmatmul.mubr.msk.bf16.vlgmr.msra.gmra.mrb[68].mxu0 %vm640_vm2, %v2315_v62  ;;  %v2482_v35 = vsel %vm2481_vm7, %v2479_v39, %v3068_v40 }
0x11ca   : > { %3007 = vmatpush3.bf16.msra.mxu1 %v3082_v13 }
0x11cb   : > { %3008 = vmatprep.subr.bf16.mxu1 %v3157_v1 }
0x11ce   : > { %3009 = vmatpush3.bf16.msra.mxu1 %v3083_v14 }
0x11cf   : > { %3010 = vmatprep.subr.bf16.mxu1 %v3157_v1  ;;  %v3044_v1 = vunpack.i.h.bf16 %v3042_v24 }
0x11d1   : > { %v2469_v22 = vsel %vm640_vm2, %v3351_v16, %v3044_v1 }
0x11d2   : > { %3011 = vmatpush3.bf16.msra.mxu1 %v3084_v47  ;;  %v2471_v27 = vsel %vm457_vm1, %v2469_v22, %v3049_v10 }
0x11d3   : > { %v2474_v29 = vsel %vm2472_vm4, %v2471_v27, %v3054_v18 }
0x11d4   : > { %v2477_v38 = vsel %vm2475_vm5, %v2474_v29, %v3059_v32 }
0x11d5   : > { %v2480_v16 = vsel %vm2478_vm6, %v2477_v38, %v3064_v30 }
0x11d6   : > { %v2483_v44 = vsel %vm2481_vm7, %v2480_v16, %v3069_v11 }
0x1298   : > { %v2358_v48 = vpop.f32.mrb[64].mxu1 }
0x1299   : > { %v2996_v49 = vpop.f32.mrb[65].mxu1 }
0x129a   : > { %v2361_v50 = vpop.f32.mrb[66].mxu1 }
0x129b   : > { %v2997_v51 = vpop.f32.mrb[67].mxu1 }
0x129c   : > { %v2406_v52 = vpop.f32.mrb[68].mxu0 }
0x129d   : > { %v3070_v53 = vpack.i.bf16 %v2406_v52, %v2358_v48  ;;  %v3002_v54 = vpop.f32.mrb[69].mxu0 }
0x129e   : > { %v2409_v55 = vpop.f32.mrb[70].mxu0 }
0x129f   : > { %3071 = vrot.lane.b32.xlu0 %v3070_v53, %s3172_s29  ;;  %v3003_v58 = vpop.f32.mrb[71].mxu0 }
0x1311   : > { %v3072_v41 = vpop.permute.xlu0 %3071 }
0x1312   : > { %v3074_v42 = vunpack.i.h.bf16 %v3072_v41  ;;  %v3073_v43 = vunpack.i.l.bf16 %v3072_v41 }
0x1314   : > { %v2486_v15 = vsel %vm2484_vm8, %v2483_v44, %v3074_v42  ;;  %v2485_v2 = vsel %vm2484_vm8, %v2482_v35, %v3073_v43 }
0x1315   : > { %v2487_v6 = vpack.c.bf16 %v2486_v15, %v2485_v2 }
0x1317   : > { %3013 = vmatmul.mubr.msk.bf16.vlgmr.msra.gmra.mrb[68].mxu1 %vm2527_vm9, %v2487_v6 }
0x13ea   : > { %v2565_v59 = vpop.f32.mrb[68].mxu1 }
0x13eb   : > { %v2566_v63 = vadd.f32 %v2711_v7, %v2565_v59  ;;  %v3014_v0 = vpop.f32.mrb[69].mxu1 }
0x13ec   : > { %v2568_v57 = vpop.f32.mrb[70].mxu1 }
0x13ed   : > { %2572 = vst.msk [vmem:[%s432_s16] sm:$0xff] %vm457_vm1, %v2566_v63  ;;  %v2569_v4 = vadd.f32 %v2711_v7, %v2568_v57  ;;  %v3015_v5 = vpop.f32.mrb[71].mxu1 }
0x13ef   : > { %2573 = vst.msk [vmem:[%s432_s16 + $0x8] sm:$0xff] %vm457_vm1, %v2569_v4 }
0x13f0 PF: > { %s21_s17 = sadd.s32 1, %s3155_s17  }
0x13f1   : > { %p18_p4 = scmp.ge.s32.totalorder %s21_s17, 4  }
0x13f3   :  { %20 = sbr.rel (!%p18_p4) target bundleno = 1 (0x1), region = 100 }

</bundles_post_ra>
